<compile_context>
chip_gen: v5e
topology: v5e:2x2
jax: 0.10.0
libtpu: 0.0.40
codegen_flags: <defaults>
</compile_context>

<pallas_src>
import functools

import numpy as np
import jax
import jax.numpy as jnp
from jax import lax
from jax.experimental import pallas as pl
from jax.experimental.pallas import tpu as pltpu

F32 = jnp.float32


# ----------------------------------------------------------------------------
# small helpers used inside the kernel
# ----------------------------------------------------------------------------
def _dot(a, b):
    return jnp.dot(a, b, preferred_element_type=jnp.float32)


def _erf_approx(x):
    # Abramowitz & Stegun 7.1.26, |abs err| <= 1.5e-7 (avoids relying on a
    # lax.erf lowering inside Mosaic).
    a1, a2, a3, a4, a5 = (0.254829592, -0.284496736, 1.421413741,
                          -1.453152027, 1.061405429)
    p = 0.3275911
    z = jnp.abs(x)
    t = 1.0 / (1.0 + p * z)
    poly = ((((a5 * t + a4) * t + a3) * t + a2) * t + a1) * t
    y = 1.0 - poly * jnp.exp(-z * z)
    return jnp.where(x < 0.0, -y, y)


def _gelu_erf(x):
    # PyTorch nn.GELU() (erf formulation).
    return 0.5 * x * (1.0 + _erf_approx(x * 0.7071067811865476))


# ----------------------------------------------------------------------------
# the fused kernel: Bblk batch elements per grid step, M = Bblk*C matmul rows
# ----------------------------------------------------------------------------
def _stoken_kernel(x_ref, pmean_ref, me_ref, pmt_ref, bsum_ref, bexp_ref,
                   tilen_ref, w_ref, b_ref, cmatb_ref, dwmask_ref, brow_ref,
                   o_ref, *, scale, n_iter):
    # x_ref     : (M, HW)       pixel features, rows = (batch, channel)
    # pmean_ref : (HW, N)       2x2 average-pool operator
    # me_ref    : (N, 9*HW)     3x3-unfold + nearest-2x upsample (all 9 fused)
    # pmt_ref   : (9*HW, N)     2x2 block-sum + 3x3-fold (all 9 fused)
    # bsum_ref  : (Bblk, M)     0/1: sum channels within each batch element
    # bexp_ref  : (M, Bblk)     0/1: broadcast per-batch rows to (b, c) rows
    # tilen_ref : (N, C*N)      [I_N I_N ... I_N]: lane-tiles a (M,N) matrix
    # w_ref     : (3, M, M)     block-diag proj_1 / conv1 / proj_2 weights
    # b_ref     : (3, M, 1)     their biases (replicated per batch)
    # cmatb_ref : (C*N, N)      stacked per-channel collapsed depthwise operator
    # dwmask_ref: (M, C*N)      0/1 channel selector for the depthwise matmul
    # brow_ref  : (M, N)        collapsed depthwise bias (replicated per batch)
    # o_ref     : (M, HW)       output pixel features
    hw = x_ref.shape[1]

    x = x_ref[...]                                       # (M, HW)
    pooled = _dot(x, pmean_ref[...])                     # (M, N)
    x_rep = jnp.concatenate([x] * 9, axis=1)             # (M, 9*HW), 256-aligned

    me = me_ref[...]
    pmt = pmt_ref[...]
    bsum = bsum_ref[...]
    bexp = bexp_ref[...]

    def affinity(st_feat):
        # scale hoisted: logits are linear in the super-token features
        up_all = _dot(st_feat * scale, me)               # (M, 9*HW)
        logits = _dot(bsum, x_rep * up_all)              # (Bblk, 9*HW) chan-sum
        # softmax over the 9 neighbours (stored as 9 HW-wide lane slices)
        m = logits[:, 0:hw]
        for k in range(1, 9):
            m = jnp.maximum(m, logits[:, k * hw:(k + 1) * hw])
        e = jnp.exp(logits - jnp.concatenate([m] * 9, axis=1))
        den = e[:, 0:hw]
        for k in range(1, 9):
            den = den + e[:, k * hw:(k + 1) * hw]
        inv = pl.reciprocal(den, approx=True)            # EUP, (Bblk, HW)
        aff_all = e * jnp.concatenate([inv] * 9, axis=1)  # (Bblk, 9*HW)
        asum = _dot(aff_all, pmt)                        # (Bblk, N) folded sum
        aff_rep = _dot(bexp, aff_all)                    # (M, 9*HW) per-channel
        return aff_rep, asum

    st_feat = pooled
    aff_rep = None
    asum = None
    for it in range(n_iter):
        aff_rep, asum = affinity(st_feat)
        if it < n_iter - 1:
            sf = _dot(x_rep * aff_rep, pmt)              # (M, N)
            inv_asum = _dot(bexp, pl.reciprocal(asum + 1e-12, approx=True))
            st_feat = sf * inv_asum

    # ---- super-token features that feed the refinement block ----
    sf = _dot(x_rep * aff_rep, pmt)                      # (M, N)
    inv_asum = _dot(bexp, pl.reciprocal(asum + 1e-12, approx=True))
    stoken = sf * inv_asum                               # (M, N)

    # ---- stoken_refine: proj_1 -> GELU -> LKA gate -> conv1 -> proj_2 + skip
    w1, wc1, w2 = w_ref[0], w_ref[1], w_ref[2]           # (M, M) block-diag
    b1, bc1, b2 = b_ref[0], b_ref[1], b_ref[2]           # (M, 1)
    u = _gelu_erf(_dot(w1, stoken) + b1)                 # (M, N)
    # collapsed depthwise (5x5 then dilated 7x7): one matmul, no per-channel loop
    u_exp = dwmask_ref[...] * _dot(u, tilen_ref[...])    # (M, C*N)
    attn = _dot(u_exp, cmatb_ref[...]) + brow_ref[...]   # (M, N)
    f_x = _dot(wc1, attn) + bc1                          # conv1 (1x1)
    refined = _dot(w2, f_x * u) + b2 + stoken            # proj_2 + shortcut

    # ---- map refined super-tokens back to pixels through the affinity ----
    rec = _dot(refined, me) * aff_rep                    # (M, 9*HW)
    out = rec[:, 0:hw]
    for k in range(1, 9):
        out = out + rec[:, k * hw:(k + 1) * hw]
    o_ref[...] = out.astype(o_ref.dtype)


# ----------------------------------------------------------------------------
# constant-geometry / weight preprocessing (data independent)
# ----------------------------------------------------------------------------
def _block_matrices(H, W, h, w):
    hh, ww = H // h, W // w
    N, HW = hh * ww, H * W
    # pixel -> super-token assignment
    p_sum = np.zeros((HW, N), np.float32)
    for i in range(H):
        for j in range(W):
            p_sum[i * W + j, (i // h) * ww + (j // w)] = 1.0
    p_mean = p_sum / float(h * w)
    e_up = p_sum.T.copy()                                # (N, HW) nearest upsample
    # 3x3 unfold gather matrices on the (hh, ww) super-token grid
    m_shift = np.zeros((9, N, N), np.float32)
    for k in range(9):
        dy, dx = k // 3 - 1, k % 3 - 1
        for bi in range(hh):
            for bj in range(ww):
                ti, tj = bi + dy, bj + dx
                if 0 <= ti < hh and 0 <= tj < ww:
                    m_shift[k, ti * ww + tj, bi * ww + bj] = 1.0
    me = np.einsum('knm,mp->knp', m_shift, e_up)         # unfold + upsample fused
    pmt = np.einsum('pt,kst->kps', p_sum, m_shift)       # block-sum + fold fused
    return p_mean, me, pmt


def _shift_matrix(hh, ww, dy, dx):
    N = hh * ww
    s = np.zeros((N, N), np.float32)
    for i in range(hh):
        for j in range(ww):
            ti, tj = i + dy, j + dx
            if 0 <= ti < hh and 0 <= tj < ww:
                s[ti * ww + tj, i * ww + j] = 1.0
    return s


def _dw_operator(weight, pad, dilation, hh, ww):
    # weight: (C, k, k).  Returns (C, N, N) so that  out[c] = in[c] @ op[c]
    # realises the zero-padded depthwise correlation on the (hh, ww) grid.
    C, kh, kw = weight.shape
    N = hh * ww
    taps = np.zeros((kh * kw, N, N), np.float32)
    for a in range(kh):
        for b in range(kw):
            taps[a * kw + b] = _shift_matrix(hh, ww, a * dilation - pad,
                                             b * dilation - pad)
    return jnp.einsum('ct,tnm->cnm', weight.reshape(C, kh * kw),
                      jnp.asarray(taps), precision=lax.Precision.HIGHEST)


def _choose_batch_block(B, C):
    """Batch elements per grid step.

    Targets ~128 MXU rows (Bblk*C), must divide B, keeps the row-block either
    8-aligned or equal to the full B*C extent (Pallas tiling rule), and prefers
    >=2 grid steps (v7x megacore) when that still leaves >=64 rows.
    """
    target = max(1, 128 // max(C, 1))
    valid = [bb for bb in range(1, min(B, target) + 1)
             if B % bb == 0 and ((bb * C) % 8 == 0 or bb == B)]
    if not valid:
        return B
    best = max(valid)
    if B // best == 1:
        two_step = [bb for bb in valid if B // bb >= 2 and bb * C >= 64]
        if two_step:
            best = max(two_step)
    return best


# ----------------------------------------------------------------------------
# wrapper
# ----------------------------------------------------------------------------
def stoken_attention_forward(x, params, *, stoken_size=(2, 2), n_iter=1,
                             kernel_size=21, dilation=3, batch_block=None):
    """StokenAttention.forward for stoken_size > 1. x: (B, C, H, W) f32."""
    if stoken_size[0] <= 1 and stoken_size[1] <= 1:
        # TODO(synk): direct_forward (stoken_size<=1) path not implemented; the
        # default StokenAttention config (stoken_size=[2,2]) uses stoken_forward.
        raise NotImplementedError("direct_forward path not implemented")

    B, C, H0, W0 = x.shape
    h, w = stoken_size
    pad_r = (w - W0 % w) % w
    pad_b = (h - H0 % h) % h
    if pad_r or pad_b:
        x = jnp.pad(x, ((0, 0), (0, 0), (0, pad_b), (0, pad_r)))
    _, _, H, W = x.shape
    hh, ww = H // h, W // w
    N, HW = hh * ww, H * W
    scale = float(C) ** -0.5

    Bblk = batch_block if batch_block is not None else _choose_batch_block(B, C)
    assert B % Bblk == 0
    Mblk = Bblk * C
    grid = (B // Bblk,)

    # geometry operators (pool / unfold+upsample / block-sum+fold), 9-way fused
    p_mean, me, pmt = _block_matrices(H, W, h, w)
    me_flat = np.ascontiguousarray(me.transpose(1, 0, 2).reshape(N, 9 * HW))
    pmt_flat = np.ascontiguousarray(pmt.reshape(9 * HW, N))

    # batch bookkeeping matrices (0/1): channel-sum and channel-broadcast
    bsum = np.kron(np.eye(Bblk, dtype=np.float32),
                   np.ones((1, C), np.float32))           # (Bblk, Mblk)
    bexp = np.ascontiguousarray(bsum.T)                   # (Mblk, Bblk)
    tilen = np.tile(np.eye(N, dtype=np.float32), (1, C))  # (N, C*N)
    dwmask = np.tile(np.kron(np.eye(C, dtype=np.float32),
                             np.ones((1, N), np.float32)), (Bblk, 1))  # (Mblk,C*N)

    # 1x1-conv weights as block-diagonal (per batch-block) operators
    eyeb = jnp.eye(Bblk, dtype=F32)
    w_blk = jnp.stack([
        jnp.kron(eyeb, params['proj1_w'].reshape(C, C).astype(F32)),
        jnp.kron(eyeb, params['conv1_w'].reshape(C, C).astype(F32)),
        jnp.kron(eyeb, params['proj2_w'].reshape(C, C).astype(F32))])
    b_rep = jnp.stack([
        jnp.tile(params['proj1_b'].astype(F32), Bblk),
        jnp.tile(params['conv1_b'].astype(F32), Bblk),
        jnp.tile(params['proj2_b'].astype(F32), Bblk)]).reshape(3, Mblk, 1)

    # collapse the two depthwise convs of the LKA gate into one per-channel
    # (N, N) operator + bias row (weight-only preprocessing), stacked (C*N, N)
    d_k = 2 * dilation - 1
    d_p = (d_k - 1) // 2
    dd_k = kernel_size // dilation + (kernel_size // dilation % 2 - 1)
    dd_p = dilation * (dd_k - 1) // 2
    op0 = _dw_operator(params['conv0_w'].reshape(C, d_k, d_k).astype(F32),
                       d_p, 1, hh, ww)
    op_s = _dw_operator(params['convs_w'].reshape(C, dd_k, dd_k).astype(F32),
                        dd_p, dilation, hh, ww)
    cmat = jnp.einsum('cnm,cmk->cnk', op0, op_s,
                      precision=lax.Precision.HIGHEST)
    cmat_big = cmat.reshape(C * N, N)
    b_row = (params['conv0_b'].astype(F32)[:, None] * jnp.sum(op_s, axis=1)
             + params['convs_b'].astype(F32)[:, None])    # (C, N)
    brow_rep = jnp.tile(b_row, (Bblk, 1))                 # (Mblk, N)

    x2d = x.reshape(B * C, HW).astype(F32)                # free contiguous reshape

    kernel = functools.partial(_stoken_kernel, scale=scale, n_iter=n_iter)
    out2d = pl.pallas_call(
        kernel,
        out_shape=jax.ShapeDtypeStruct((B * C, HW), F32),
        grid_spec=pltpu.PrefetchScalarGridSpec(
            num_scalar_prefetch=0,
            grid=grid,
            in_specs=[
                pl.BlockSpec((Mblk, HW), lambda g: (g, 0)),        # x slab
                pl.BlockSpec((HW, N), lambda g: (0, 0)),           # pool op
                pl.BlockSpec((N, 9 * HW), lambda g: (0, 0)),       # unfold+up
                pl.BlockSpec((9 * HW, N), lambda g: (0, 0)),       # sum+fold
                pl.BlockSpec((Bblk, Mblk), lambda g: (0, 0)),      # chan-sum
                pl.BlockSpec((Mblk, Bblk), lambda g: (0, 0)),      # chan-bcast
                pl.BlockSpec((N, C * N), lambda g: (0, 0)),        # lane-tile op
                pl.BlockSpec((3, Mblk, Mblk), lambda g: (0, 0, 0)),  # 1x1 weights
                pl.BlockSpec((3, Mblk, 1), lambda g: (0, 0, 0)),   # 1x1 biases
                pl.BlockSpec((C * N, N), lambda g: (0, 0)),        # depthwise op
                pl.BlockSpec((Mblk, C * N), lambda g: (0, 0)),     # dw row mask
                pl.BlockSpec((Mblk, N), lambda g: (0, 0)),         # dw bias
            ],
            out_specs=pl.BlockSpec((Mblk, HW), lambda g: (g, 0)),
        ),
        compiler_params=pltpu.CompilerParams(
            dimension_semantics=("parallel",),
            vmem_limit_bytes=64 * 1024 * 1024),
    )(x2d, jnp.asarray(p_mean), jnp.asarray(me_flat), jnp.asarray(pmt_flat),
      jnp.asarray(bsum), jnp.asarray(bexp), jnp.asarray(tilen),
      w_blk, b_rep, cmat_big, jnp.asarray(dwmask), brow_rep)

    out = out2d.reshape(B, C, H, W)
    if pad_r or pad_b:
        out = out[:, :, :H0, :W0]
    return out


# ----------------------------------------------------------------------------
# pure-JAX reference (mirrors the PyTorch module) for validation
# ----------------------------------------------------------------------------
def _unfold3x3(x):
    B, C, hh, ww = x.shape
    xp = jnp.pad(x, ((0, 0), (0, 0), (1, 1), (1, 1)))
    cols = [xp[:, :, dy:dy + hh, dx:dx + ww] for dy in range(3) for dx in range(3)]
    return jnp.stack(cols, axis=2).reshape(B, C * 9, hh * ww)


def _fold3x3(x):
    B, _, hh, ww = x.shape
    acc = jnp.zeros((B, hh + 2, ww + 2), x.dtype)
    for k in range(9):
        dy, dx = k // 3, k % 3
        acc = acc.at[:, dy:dy + hh, dx:dx + ww].add(x[:, k])
    return acc[:, 1:1 + hh, 1:1 + ww][:, None]


def _conv1x1(x, w, b):
    y = jnp.einsum('oc,bchw->bohw', w.reshape(w.shape[0], w.shape[1]), x,
                   precision=lax.Precision.HIGHEST)
    return y + b[None, :, None, None]


def _dw_conv(x, w, b, pad, dil):
    y = lax.conv_general_dilated(
        x, w, window_strides=(1, 1), padding=((pad, pad), (pad, pad)),
        rhs_dilation=(dil, dil), dimension_numbers=("NCHW", "OIHW", "NCHW"),
        feature_group_count=x.shape[1], precision=lax.Precision.HIGHEST)
    return y + b[None, :, None, None]


def _temporal_attention_ref(x, p, kernel_size=21, dilation=3):
    d_k = 2 * dilation - 1
    d_p = (d_k - 1) // 2
    dd_k = kernel_size // dilation + (kernel_size // dilation % 2 - 1)
    dd_p = dilation * (dd_k - 1) // 2
    shortcut = x
    x = _conv1x1(x, p['proj1_w'], p['proj1_b'])
    x = jax.nn.gelu(x, approximate=False)
    u = x
    attn = _dw_conv(x, p['conv0_w'], p['conv0_b'], d_p, 1)
    attn = _dw_conv(attn, p['convs_w'], p['convs_b'], dd_p, dilation)
    f_x = _conv1x1(attn, p['conv1_w'], p['conv1_b'])
    x = f_x * u
    x = _conv1x1(x, p['proj2_w'], p['proj2_b'])
    return x + shortcut


def stoken_attention_ref(x, p, *, stoken_size=(2, 2), n_iter=1, kernel_size=21,
                         dilation=3):
    B, C, H0, W0 = x.shape
    h, w = stoken_size
    pad_r = (w - W0 % w) % w
    pad_b = (h - H0 % h) % h
    if pad_r or pad_b:
        x = jnp.pad(x, ((0, 0), (0, 0), (0, pad_b), (0, pad_r)))
    _, _, H, W = x.shape
    hh, ww = H // h, W // w
    scale = float(C) ** -0.5
    hi = lax.Precision.HIGHEST

    stoken = x.reshape(B, C, hh, h, ww, w).mean(axis=(3, 5))
    pixel = x.reshape(B, C, hh, h, ww, w).transpose(0, 2, 4, 3, 5, 1)
    pixel = pixel.reshape(B, hh * ww, h * w, C)

    aff = None
    aff_sum = None
    for idx in range(n_iter):
        sf = jnp.swapaxes(_unfold3x3(stoken), 1, 2).reshape(B, hh * ww, C, 9)
        aff = jax.nn.softmax(jnp.matmul(pixel, sf, precision=hi) * scale, axis=-1)
        aff_sum = jnp.swapaxes(aff.sum(axis=2), 1, 2).reshape(B, 9, hh, ww)
        aff_sum = _fold3x3(aff_sum)
        if idx < n_iter - 1:
            s2 = jnp.matmul(jnp.swapaxes(pixel, -1, -2), aff, precision=hi)
            s2 = _fold3x3(s2.transpose(0, 2, 3, 1).reshape(B * C, 9, hh, ww))
            stoken = s2.reshape(B, C, hh, ww) / (aff_sum + 1e-12)
    s2 = jnp.matmul(jnp.swapaxes(pixel, -1, -2), aff, precision=hi)
    s2 = _fold3x3(s2.transpose(0, 2, 3, 1).reshape(B * C, 9, hh, ww))
    stoken = s2.reshape(B, C, hh, ww) / (aff_sum + 1e-12)
    stoken = _temporal_attention_ref(stoken, p, kernel_size, dilation)
    sf = jnp.swapaxes(_unfold3x3(stoken), 1, 2).reshape(B, hh * ww, C, 9)
    pix = jnp.matmul(sf, jnp.swapaxes(aff, -1, -2), precision=hi)
    out = pix.reshape(B, hh, ww, C, h, w).transpose(0, 3, 1, 4, 2, 5)
    out = out.reshape(B, C, H, W)
    if pad_r or pad_b:
        out = out[:, :, :H0, :W0]
    return out


# ----------------------------------------------------------------------------
if __name__ == "__main__":
    B, C, H, W = 2, 4, 16, 16
    kernel_size, dilation = 21, 3
    d_k = 2 * dilation - 1
    dd_k = kernel_size // dilation + (kernel_size // dilation % 2 - 1)

    key = jax.random.PRNGKey(0)
    ks = jax.random.split(key, 11)
    x = jax.random.normal(ks[0], (B, C, H, W), dtype=jnp.float32)
    params = {
        'proj1_w': 0.30 * jax.random.normal(ks[1], (C, C, 1, 1), jnp.float32),
        'proj1_b': 0.10 * jax.random.normal(ks[2], (C,), jnp.float32),
        'conv0_w': 0.15 * jax.random.normal(ks[3], (C, 1, d_k, d_k), jnp.float32),
        'conv0_b': 0.10 * jax.random.normal(ks[4], (C,), jnp.float32),
        'convs_w': 0.08 * jax.random.normal(ks[5], (C, 1, dd_k, dd_k), jnp.float32),
        'convs_b': 0.10 * jax.random.normal(ks[6], (C,), jnp.float32),
        'conv1_w': 0.30 * jax.random.normal(ks[7], (C, C, 1, 1), jnp.float32),
        'conv1_b': 0.10 * jax.random.normal(ks[8], (C,), jnp.float32),
        'proj2_w': 0.30 * jax.random.normal(ks[9], (C, C, 1, 1), jnp.float32),
        'proj2_b': 0.10 * jax.random.normal(ks[10], (C,), jnp.float32),
    }

    out = stoken_attention_forward(x, params, stoken_size=(2, 2), n_iter=1,
                                   kernel_size=kernel_size, dilation=dilation)
    out = jax.block_until_ready(out)

    ref = stoken_attention_ref(x, params, stoken_size=(2, 2), n_iter=1,
                               kernel_size=kernel_size, dilation=dilation)
    assert out.shape == (B, C, H, W)
    err = float(jnp.max(jnp.abs(out - ref)))
    # tolerance slightly relaxed vs the exact-divide version to absorb the
    # approx (EUP) reciprocals (~2^-12 relative).
    assert jnp.allclose(out, ref, rtol=3e-3, atol=3e-3), (
        "mismatch vs reference, max abs err = %e" % err)

    print("KERNEL_OK")
</pallas_src>

<mosaic_0001>
module attributes {stable_mosaic.version = 11 : i64} {
  func.func @_stoken_kernel(%arg0: i32, %arg1: memref<8x256xf32, #tpu.memory_space<vmem>>, %arg2: memref<256x64xf32, #tpu.memory_space<vmem>>, %arg3: memref<64x2304xf32, #tpu.memory_space<vmem>>, %arg4: memref<2304x64xf32, #tpu.memory_space<vmem>>, %arg5: memref<2x8xf32, #tpu.memory_space<vmem>>, %arg6: memref<8x2xf32, #tpu.memory_space<vmem>>, %arg7: memref<64x256xf32, #tpu.memory_space<vmem>>, %arg8: memref<3x8x8xf32, #tpu.memory_space<vmem>>, %arg9: memref<3x8x1xf32, #tpu.memory_space<vmem>>, %arg10: memref<256x64xf32, #tpu.memory_space<vmem>>, %arg11: memref<8x256xf32, #tpu.memory_space<vmem>>, %arg12: memref<8x64xf32, #tpu.memory_space<vmem>>, %arg13: memref<8x256xf32, #tpu.memory_space<vmem>>) attributes {dimension_semantics = [#tpu.dimension_semantics<parallel>], iteration_bounds = array<i64: 1>, scalar_prefetch = 0 : i64, scratch_operands = 0 : i64, tpu.core_type = #tpu.core_type<tc>, window_params = [{transform_indices = @transform_0, window_bounds = array<i64: 8, 256>}, {pipeline_mode = #tpu.pipeline_mode<synchronous>, transform_indices = @transform_1, window_bounds = array<i64: 256, 64>}, {pipeline_mode = #tpu.pipeline_mode<synchronous>, transform_indices = @transform_2, window_bounds = array<i64: 64, 2304>}, {pipeline_mode = #tpu.pipeline_mode<synchronous>, transform_indices = @transform_3, window_bounds = array<i64: 2304, 64>}, {pipeline_mode = #tpu.pipeline_mode<synchronous>, transform_indices = @transform_4, window_bounds = array<i64: 2, 8>}, {pipeline_mode = #tpu.pipeline_mode<synchronous>, transform_indices = @transform_5, window_bounds = array<i64: 8, 2>}, {pipeline_mode = #tpu.pipeline_mode<synchronous>, transform_indices = @transform_6, window_bounds = array<i64: 64, 256>}, {pipeline_mode = #tpu.pipeline_mode<synchronous>, transform_indices = @transform_7, window_bounds = array<i64: 3, 8, 8>}, {pipeline_mode = #tpu.pipeline_mode<synchronous>, transform_indices = @transform_8, window_bounds = array<i64: 3, 8, 1>}, {pipeline_mode = #tpu.pipeline_mode<synchronous>, transform_indices = @transform_9, window_bounds = array<i64: 256, 64>}, {pipeline_mode = #tpu.pipeline_mode<synchronous>, transform_indices = @transform_10, window_bounds = array<i64: 8, 256>}, {pipeline_mode = #tpu.pipeline_mode<synchronous>, transform_indices = @transform_11, window_bounds = array<i64: 8, 64>}, {transform_indices = @transform_12, window_bounds = array<i64: 8, 256>}]} {
    %c0 = arith.constant 0 : index
    %c0_0 = arith.constant 0 : index
    %0 = vector.load %arg1[%c0, %c0_0] : memref<8x256xf32, #tpu.memory_space<vmem>>, vector<8x256xf32>
    %c0_1 = arith.constant 0 : index
    %c0_2 = arith.constant 0 : index
    %1 = vector.load %arg2[%c0_1, %c0_2] : memref<256x64xf32, #tpu.memory_space<vmem>>, vector<256x64xf32>
    %cst = arith.constant dense<0.000000e+00> : vector<8x64xf32>
    %2 = tpu.matmul %0, %1, %cst {dimension_numbers = #tpu.dot_dimension_numbers<[1], [0], [0], [1], [0, 0, 1, 1], [], []>} : vector<8x256xf32>, vector<256x64xf32>, vector<8x64xf32> -> vector<8x64xf32>
    %3 = tpu.concatenate %0, %0, %0, %0, %0, %0, %0, %0, %0 in 1 : vector<8x256xf32>, vector<8x256xf32>, vector<8x256xf32>, vector<8x256xf32>, vector<8x256xf32>, vector<8x256xf32>, vector<8x256xf32>, vector<8x256xf32>, vector<8x256xf32> -> vector<8x2304xf32>
    %c0_3 = arith.constant 0 : index
    %c0_4 = arith.constant 0 : index
    %4 = vector.load %arg3[%c0_3, %c0_4] : memref<64x2304xf32, #tpu.memory_space<vmem>>, vector<64x2304xf32>
    %c0_5 = arith.constant 0 : index
    %c0_6 = arith.constant 0 : index
    %5 = vector.load %arg4[%c0_5, %c0_6] : memref<2304x64xf32, #tpu.memory_space<vmem>>, vector<2304x64xf32>
    %c0_7 = arith.constant 0 : index
    %c0_8 = arith.constant 0 : index
    %6 = vector.load %arg5[%c0_7, %c0_8] : memref<2x8xf32, #tpu.memory_space<vmem>>, vector<2x8xf32>
    %c0_9 = arith.constant 0 : index
    %c0_10 = arith.constant 0 : index
    %7 = vector.load %arg6[%c0_9, %c0_10] : memref<8x2xf32, #tpu.memory_space<vmem>>, vector<8x2xf32>
    %cst_11 = arith.constant 5.000000e-01 : f32
    %8 = vector.broadcast %cst_11 : f32 to vector<8x64xf32>
    %9 = arith.mulf %2, %8 : vector<8x64xf32>
    %cst_12 = arith.constant dense<0.000000e+00> : vector<8x2304xf32>
    %10 = tpu.matmul %9, %4, %cst_12 {dimension_numbers = #tpu.dot_dimension_numbers<[1], [0], [0], [1], [0, 0, 1, 1], [], []>} : vector<8x64xf32>, vector<64x2304xf32>, vector<8x2304xf32> -> vector<8x2304xf32>
    %11 = arith.mulf %3, %10 : vector<8x2304xf32>
    %cst_13 = arith.constant dense<0.000000e+00> : vector<2x2304xf32>
    %12 = tpu.matmul %6, %11, %cst_13 {dimension_numbers = #tpu.dot_dimension_numbers<[1], [0], [0], [1], [0, 0, 1, 1], [], []>} : vector<2x8xf32>, vector<8x2304xf32>, vector<2x2304xf32> -> vector<2x2304xf32>
    %13 = vector.extract_strided_slice %12 {offsets = [0, 0], sizes = [2, 256], strides = [1, 1]} : vector<2x2304xf32> to vector<2x256xf32>
    %14 = vector.extract_strided_slice %12 {offsets = [0, 256], sizes = [2, 256], strides = [1, 1]} : vector<2x2304xf32> to vector<2x256xf32>
    %15 = arith.maximumf %13, %14 : vector<2x256xf32>
    %16 = vector.extract_strided_slice %12 {offsets = [0, 512], sizes = [2, 256], strides = [1, 1]} : vector<2x2304xf32> to vector<2x256xf32>
    %17 = arith.maximumf %15, %16 : vector<2x256xf32>
    %18 = vector.extract_strided_slice %12 {offsets = [0, 768], sizes = [2, 256], strides = [1, 1]} : vector<2x2304xf32> to vector<2x256xf32>
    %19 = arith.maximumf %17, %18 : vector<2x256xf32>
    %20 = vector.extract_strided_slice %12 {offsets = [0, 1024], sizes = [2, 256], strides = [1, 1]} : vector<2x2304xf32> to vector<2x256xf32>
    %21 = arith.maximumf %19, %20 : vector<2x256xf32>
    %22 = vector.extract_strided_slice %12 {offsets = [0, 1280], sizes = [2, 256], strides = [1, 1]} : vector<2x2304xf32> to vector<2x256xf32>
    %23 = arith.maximumf %21, %22 : vector<2x256xf32>
    %24 = vector.extract_strided_slice %12 {offsets = [0, 1536], sizes = [2, 256], strides = [1, 1]} : vector<2x2304xf32> to vector<2x256xf32>
    %25 = arith.maximumf %23, %24 : vector<2x256xf32>
    %26 = vector.extract_strided_slice %12 {offsets = [0, 1792], sizes = [2, 256], strides = [1, 1]} : vector<2x2304xf32> to vector<2x256xf32>
    %27 = arith.maximumf %25, %26 : vector<2x256xf32>
    %28 = vector.extract_strided_slice %12 {offsets = [0, 2048], sizes = [2, 256], strides = [1, 1]} : vector<2x2304xf32> to vector<2x256xf32>
    %29 = arith.maximumf %27, %28 : vector<2x256xf32>
    %30 = tpu.concatenate %29, %29, %29, %29, %29, %29, %29, %29, %29 in 1 : vector<2x256xf32>, vector<2x256xf32>, vector<2x256xf32>, vector<2x256xf32>, vector<2x256xf32>, vector<2x256xf32>, vector<2x256xf32>, vector<2x256xf32>, vector<2x256xf32> -> vector<2x2304xf32>
    %31 = arith.subf %12, %30 : vector<2x2304xf32>
    %32 = math.exp %31 : vector<2x2304xf32>
    %33 = vector.extract_strided_slice %32 {offsets = [0, 0], sizes = [2, 256], strides = [1, 1]} : vector<2x2304xf32> to vector<2x256xf32>
    %34 = vector.extract_strided_slice %32 {offsets = [0, 256], sizes = [2, 256], strides = [1, 1]} : vector<2x2304xf32> to vector<2x256xf32>
    %35 = arith.addf %33, %34 : vector<2x256xf32>
    %36 = vector.extract_strided_slice %32 {offsets = [0, 512], sizes = [2, 256], strides = [1, 1]} : vector<2x2304xf32> to vector<2x256xf32>
    %37 = arith.addf %35, %36 : vector<2x256xf32>
    %38 = vector.extract_strided_slice %32 {offsets = [0, 768], sizes = [2, 256], strides = [1, 1]} : vector<2x2304xf32> to vector<2x256xf32>
    %39 = arith.addf %37, %38 : vector<2x256xf32>
    %40 = vector.extract_strided_slice %32 {offsets = [0, 1024], sizes = [2, 256], strides = [1, 1]} : vector<2x2304xf32> to vector<2x256xf32>
    %41 = arith.addf %39, %40 : vector<2x256xf32>
    %42 = vector.extract_strided_slice %32 {offsets = [0, 1280], sizes = [2, 256], strides = [1, 1]} : vector<2x2304xf32> to vector<2x256xf32>
    %43 = arith.addf %41, %42 : vector<2x256xf32>
    %44 = vector.extract_strided_slice %32 {offsets = [0, 1536], sizes = [2, 256], strides = [1, 1]} : vector<2x2304xf32> to vector<2x256xf32>
    %45 = arith.addf %43, %44 : vector<2x256xf32>
    %46 = vector.extract_strided_slice %32 {offsets = [0, 1792], sizes = [2, 256], strides = [1, 1]} : vector<2x2304xf32> to vector<2x256xf32>
    %47 = arith.addf %45, %46 : vector<2x256xf32>
    %48 = vector.extract_strided_slice %32 {offsets = [0, 2048], sizes = [2, 256], strides = [1, 1]} : vector<2x2304xf32> to vector<2x256xf32>
    %49 = arith.addf %47, %48 : vector<2x256xf32>
    %50 = tpu.reciprocal %49 {approx = true} : vector<2x256xf32> -> vector<2x256xf32>
    %51 = tpu.concatenate %50, %50, %50, %50, %50, %50, %50, %50, %50 in 1 : vector<2x256xf32>, vector<2x256xf32>, vector<2x256xf32>, vector<2x256xf32>, vector<2x256xf32>, vector<2x256xf32>, vector<2x256xf32>, vector<2x256xf32>, vector<2x256xf32> -> vector<2x2304xf32>
    %52 = arith.mulf %32, %51 : vector<2x2304xf32>
    %cst_14 = arith.constant dense<0.000000e+00> : vector<2x64xf32>
    %53 = tpu.matmul %52, %5, %cst_14 {dimension_numbers = #tpu.dot_dimension_numbers<[1], [0], [0], [1], [0, 0, 1, 1], [], []>} : vector<2x2304xf32>, vector<2304x64xf32>, vector<2x64xf32> -> vector<2x64xf32>
    %cst_15 = arith.constant dense<0.000000e+00> : vector<8x2304xf32>
    %54 = tpu.matmul %7, %52, %cst_15 {dimension_numbers = #tpu.dot_dimension_numbers<[1], [0], [0], [1], [0, 0, 1, 1], [], []>} : vector<8x2xf32>, vector<2x2304xf32>, vector<8x2304xf32> -> vector<8x2304xf32>
    %55 = arith.mulf %3, %54 : vector<8x2304xf32>
    %cst_16 = arith.constant dense<0.000000e+00> : vector<8x64xf32>
    %56 = tpu.matmul %55, %5, %cst_16 {dimension_numbers = #tpu.dot_dimension_numbers<[1], [0], [0], [1], [0, 0, 1, 1], [], []>} : vector<8x2304xf32>, vector<2304x64xf32>, vector<8x64xf32> -> vector<8x64xf32>
    %cst_17 = arith.constant 9.99999996E-13 : f32
    %57 = vector.broadcast %cst_17 : f32 to vector<2x64xf32>
    %58 = arith.addf %53, %57 : vector<2x64xf32>
    %59 = tpu.reciprocal %58 {approx = true} : vector<2x64xf32> -> vector<2x64xf32>
    %cst_18 = arith.constant dense<0.000000e+00> : vector<8x64xf32>
    %60 = tpu.matmul %7, %59, %cst_18 {dimension_numbers = #tpu.dot_dimension_numbers<[1], [0], [0], [1], [0, 0, 1, 1], [], []>} : vector<8x2xf32>, vector<2x64xf32>, vector<8x64xf32> -> vector<8x64xf32>
    %61 = arith.mulf %56, %60 : vector<8x64xf32>
    %c0_19 = arith.constant 0 : index
    %c0_20 = arith.constant 0 : index
    %c0_21 = arith.constant 0 : index
    %62 = vector.load %arg8[%c0_19, %c0_20, %c0_21] : memref<3x8x8xf32, #tpu.memory_space<vmem>>, vector<1x8x8xf32>
    %63 = vector.shape_cast %62 : vector<1x8x8xf32> to vector<8x8xf32>
    %c1 = arith.constant 1 : index
    %c0_22 = arith.constant 0 : index
    %c0_23 = arith.constant 0 : index
    %64 = vector.load %arg8[%c1, %c0_22, %c0_23] : memref<3x8x8xf32, #tpu.memory_space<vmem>>, vector<1x8x8xf32>
    %65 = vector.shape_cast %64 : vector<1x8x8xf32> to vector<8x8xf32>
    %c2 = arith.constant 2 : index
    %c0_24 = arith.constant 0 : index
    %c0_25 = arith.constant 0 : index
    %66 = vector.load %arg8[%c2, %c0_24, %c0_25] : memref<3x8x8xf32, #tpu.memory_space<vmem>>, vector<1x8x8xf32>
    %67 = vector.shape_cast %66 : vector<1x8x8xf32> to vector<8x8xf32>
    %c0_26 = arith.constant 0 : index
    %c0_27 = arith.constant 0 : index
    %c0_28 = arith.constant 0 : index
    %68 = vector.load %arg9[%c0_26, %c0_27, %c0_28] : memref<3x8x1xf32, #tpu.memory_space<vmem>>, vector<1x8x1xf32>
    %69 = vector.shape_cast %68 : vector<1x8x1xf32> to vector<8x1xf32>
    %c1_29 = arith.constant 1 : index
    %c0_30 = arith.constant 0 : index
    %c0_31 = arith.constant 0 : index
    %70 = vector.load %arg9[%c1_29, %c0_30, %c0_31] : memref<3x8x1xf32, #tpu.memory_space<vmem>>, vector<1x8x1xf32>
    %71 = vector.shape_cast %70 : vector<1x8x1xf32> to vector<8x1xf32>
    %c2_32 = arith.constant 2 : index
    %c0_33 = arith.constant 0 : index
    %c0_34 = arith.constant 0 : index
    %72 = vector.load %arg9[%c2_32, %c0_33, %c0_34] : memref<3x8x1xf32, #tpu.memory_space<vmem>>, vector<1x8x1xf32>
    %73 = vector.shape_cast %72 : vector<1x8x1xf32> to vector<8x1xf32>
    %cst_35 = arith.constant dense<0.000000e+00> : vector<8x64xf32>
    %74 = tpu.matmul %63, %61, %cst_35 {dimension_numbers = #tpu.dot_dimension_numbers<[1], [0], [0], [1], [0, 0, 1, 1], [], []>} : vector<8x8xf32>, vector<8x64xf32>, vector<8x64xf32> -> vector<8x64xf32>
    %75 = vector.broadcast %69 : vector<8x1xf32> to vector<8x64xf32>
    %76 = arith.addf %74, %75 : vector<8x64xf32>
    %cst_36 = arith.constant 5.000000e-01 : f32
    %77 = vector.broadcast %cst_36 : f32 to vector<8x64xf32>
    %78 = arith.mulf %77, %76 : vector<8x64xf32>
    %cst_37 = arith.constant 0.707106769 : f32
    %79 = vector.broadcast %cst_37 : f32 to vector<8x64xf32>
    %80 = arith.mulf %76, %79 : vector<8x64xf32>
    %81 = math.absf %80 : vector<8x64xf32>
    %cst_38 = arith.constant 0.327591091 : f32
    %82 = vector.broadcast %cst_38 : f32 to vector<8x64xf32>
    %83 = arith.mulf %82, %81 : vector<8x64xf32>
    %cst_39 = arith.constant 1.000000e+00 : f32
    %84 = vector.broadcast %cst_39 : f32 to vector<8x64xf32>
    %85 = arith.addf %84, %83 : vector<8x64xf32>
    %cst_40 = arith.constant 1.000000e+00 : f32
    %86 = vector.broadcast %cst_40 : f32 to vector<8x64xf32>
    %87 = arith.divf %86, %85 : vector<8x64xf32>
    %cst_41 = arith.constant 1.06140542 : f32
    %88 = vector.broadcast %cst_41 : f32 to vector<8x64xf32>
    %89 = arith.mulf %88, %87 : vector<8x64xf32>
    %cst_42 = arith.constant -1.45315206 : f32
    %90 = vector.broadcast %cst_42 : f32 to vector<8x64xf32>
    %91 = arith.addf %89, %90 : vector<8x64xf32>
    %92 = arith.mulf %91, %87 : vector<8x64xf32>
    %cst_43 = arith.constant 1.42141378 : f32
    %93 = vector.broadcast %cst_43 : f32 to vector<8x64xf32>
    %94 = arith.addf %92, %93 : vector<8x64xf32>
    %95 = arith.mulf %94, %87 : vector<8x64xf32>
    %cst_44 = arith.constant -0.284496725 : f32
    %96 = vector.broadcast %cst_44 : f32 to vector<8x64xf32>
    %97 = arith.addf %95, %96 : vector<8x64xf32>
    %98 = arith.mulf %97, %87 : vector<8x64xf32>
    %cst_45 = arith.constant 0.254829586 : f32
    %99 = vector.broadcast %cst_45 : f32 to vector<8x64xf32>
    %100 = arith.addf %98, %99 : vector<8x64xf32>
    %101 = arith.mulf %100, %87 : vector<8x64xf32>
    %cst_46 = arith.constant 0.000000e+00 : f32
    %102 = vector.broadcast %cst_46 : f32 to vector<8x64xf32>
    %103 = arith.subf %102, %81 : vector<8x64xf32>
    %104 = arith.mulf %103, %81 : vector<8x64xf32>
    %105 = math.exp %104 : vector<8x64xf32>
    %106 = arith.mulf %101, %105 : vector<8x64xf32>
    %cst_47 = arith.constant 1.000000e+00 : f32
    %107 = vector.broadcast %cst_47 : f32 to vector<8x64xf32>
    %108 = arith.subf %107, %106 : vector<8x64xf32>
    %cst_48 = arith.constant 0.000000e+00 : f32
    %109 = vector.broadcast %cst_48 : f32 to vector<8x64xf32>
    %110 = arith.cmpf olt, %80, %109 : vector<8x64xf32>
    %cst_49 = arith.constant 0.000000e+00 : f32
    %111 = vector.broadcast %cst_49 : f32 to vector<8x64xf32>
    %112 = arith.subf %111, %108 : vector<8x64xf32>
    %113 = arith.select %110, %112, %108 : vector<8x64xi1>, vector<8x64xf32>
    %cst_50 = arith.constant 1.000000e+00 : f32
    %114 = vector.broadcast %cst_50 : f32 to vector<8x64xf32>
    %115 = arith.addf %114, %113 : vector<8x64xf32>
    %116 = arith.mulf %78, %115 : vector<8x64xf32>
    %c0_51 = arith.constant 0 : index
    %c0_52 = arith.constant 0 : index
    %117 = vector.load %arg11[%c0_51, %c0_52] : memref<8x256xf32, #tpu.memory_space<vmem>>, vector<8x256xf32>
    %c0_53 = arith.constant 0 : index
    %c0_54 = arith.constant 0 : index
    %118 = vector.load %arg7[%c0_53, %c0_54] : memref<64x256xf32, #tpu.memory_space<vmem>>, vector<64x256xf32>
    %cst_55 = arith.constant dense<0.000000e+00> : vector<8x256xf32>
    %119 = tpu.matmul %116, %118, %cst_55 {dimension_numbers = #tpu.dot_dimension_numbers<[1], [0], [0], [1], [0, 0, 1, 1], [], []>} : vector<8x64xf32>, vector<64x256xf32>, vector<8x256xf32> -> vector<8x256xf32>
    %120 = arith.mulf %117, %119 : vector<8x256xf32>
    %c0_56 = arith.constant 0 : index
    %c0_57 = arith.constant 0 : index
    %121 = vector.load %arg10[%c0_56, %c0_57] : memref<256x64xf32, #tpu.memory_space<vmem>>, vector<256x64xf32>
    %cst_58 = arith.constant dense<0.000000e+00> : vector<8x64xf32>
    %122 = tpu.matmul %120, %121, %cst_58 {dimension_numbers = #tpu.dot_dimension_numbers<[1], [0], [0], [1], [0, 0, 1, 1], [], []>} : vector<8x256xf32>, vector<256x64xf32>, vector<8x64xf32> -> vector<8x64xf32>
    %c0_59 = arith.constant 0 : index
    %c0_60 = arith.constant 0 : index
    %123 = vector.load %arg12[%c0_59, %c0_60] : memref<8x64xf32, #tpu.memory_space<vmem>>, vector<8x64xf32>
    %124 = arith.addf %122, %123 : vector<8x64xf32>
    %cst_61 = arith.constant dense<0.000000e+00> : vector<8x64xf32>
    %125 = tpu.matmul %65, %124, %cst_61 {dimension_numbers = #tpu.dot_dimension_numbers<[1], [0], [0], [1], [0, 0, 1, 1], [], []>} : vector<8x8xf32>, vector<8x64xf32>, vector<8x64xf32> -> vector<8x64xf32>
    %126 = vector.broadcast %71 : vector<8x1xf32> to vector<8x64xf32>
    %127 = arith.addf %125, %126 : vector<8x64xf32>
    %128 = arith.mulf %127, %116 : vector<8x64xf32>
    %cst_62 = arith.constant dense<0.000000e+00> : vector<8x64xf32>
    %129 = tpu.matmul %67, %128, %cst_62 {dimension_numbers = #tpu.dot_dimension_numbers<[1], [0], [0], [1], [0, 0, 1, 1], [], []>} : vector<8x8xf32>, vector<8x64xf32>, vector<8x64xf32> -> vector<8x64xf32>
    %130 = vector.broadcast %73 : vector<8x1xf32> to vector<8x64xf32>
    %131 = arith.addf %129, %130 : vector<8x64xf32>
    %132 = arith.addf %131, %61 : vector<8x64xf32>
    %cst_63 = arith.constant dense<0.000000e+00> : vector<8x2304xf32>
    %133 = tpu.matmul %132, %4, %cst_63 {dimension_numbers = #tpu.dot_dimension_numbers<[1], [0], [0], [1], [0, 0, 1, 1], [], []>} : vector<8x64xf32>, vector<64x2304xf32>, vector<8x2304xf32> -> vector<8x2304xf32>
    %134 = arith.mulf %133, %54 : vector<8x2304xf32>
    %135 = vector.extract_strided_slice %134 {offsets = [0, 0], sizes = [8, 256], strides = [1, 1]} : vector<8x2304xf32> to vector<8x256xf32>
    %136 = vector.extract_strided_slice %134 {offsets = [0, 256], sizes = [8, 256], strides = [1, 1]} : vector<8x2304xf32> to vector<8x256xf32>
    %137 = arith.addf %135, %136 : vector<8x256xf32>
    %138 = vector.extract_strided_slice %134 {offsets = [0, 512], sizes = [8, 256], strides = [1, 1]} : vector<8x2304xf32> to vector<8x256xf32>
    %139 = arith.addf %137, %138 : vector<8x256xf32>
    %140 = vector.extract_strided_slice %134 {offsets = [0, 768], sizes = [8, 256], strides = [1, 1]} : vector<8x2304xf32> to vector<8x256xf32>
    %141 = arith.addf %139, %140 : vector<8x256xf32>
    %142 = vector.extract_strided_slice %134 {offsets = [0, 1024], sizes = [8, 256], strides = [1, 1]} : vector<8x2304xf32> to vector<8x256xf32>
    %143 = arith.addf %141, %142 : vector<8x256xf32>
    %144 = vector.extract_strided_slice %134 {offsets = [0, 1280], sizes = [8, 256], strides = [1, 1]} : vector<8x2304xf32> to vector<8x256xf32>
    %145 = arith.addf %143, %144 : vector<8x256xf32>
    %146 = vector.extract_strided_slice %134 {offsets = [0, 1536], sizes = [8, 256], strides = [1, 1]} : vector<8x2304xf32> to vector<8x256xf32>
    %147 = arith.addf %145, %146 : vector<8x256xf32>
    %148 = vector.extract_strided_slice %134 {offsets = [0, 1792], sizes = [8, 256], strides = [1, 1]} : vector<8x2304xf32> to vector<8x256xf32>
    %149 = arith.addf %147, %148 : vector<8x256xf32>
    %150 = vector.extract_strided_slice %134 {offsets = [0, 2048], sizes = [8, 256], strides = [1, 1]} : vector<8x2304xf32> to vector<8x256xf32>
    %151 = arith.addf %149, %150 : vector<8x256xf32>
    %c0_64 = arith.constant 0 : index
    %c0_65 = arith.constant 0 : index
    %152 = vector.load %arg13[%c0_64, %c0_65] : memref<8x256xf32, #tpu.memory_space<vmem>>, vector<8x256xf32>
    tpu.vector_store %arg13[%c0_64, %c0_65], %151 {strides = array<i32>} : memref<8x256xf32, #tpu.memory_space<vmem>>, vector<8x256xf32>,
    return
  }
  func.func @transform_0(%arg0: i32) -> (i32, i32) {
    %c0_i32 = arith.constant 0 : i32
    %c0_i32_0 = arith.constant 0 : i32
    return %arg0, %c0_i32 : i32, i32
  }
  func.func @transform_1(%arg0: i32) -> (i32, i32) {
    %c0_i32 = arith.constant 0 : i32
    %c0_i32_0 = arith.constant 0 : i32
    %c0_i32_1 = arith.constant 0 : i32
    return %c0_i32, %c0_i32_0 : i32, i32
  }
  func.func @transform_2(%arg0: i32) -> (i32, i32) {
    %c0_i32 = arith.constant 0 : i32
    %c0_i32_0 = arith.constant 0 : i32
    %c0_i32_1 = arith.constant 0 : i32
    return %c0_i32, %c0_i32_0 : i32, i32
  }
  func.func @transform_3(%arg0: i32) -> (i32, i32) {
    %c0_i32 = arith.constant 0 : i32
    %c0_i32_0 = arith.constant 0 : i32
    %c0_i32_1 = arith.constant 0 : i32
    return %c0_i32, %c0_i32_0 : i32, i32
  }
  func.func @transform_4(%arg0: i32) -> (i32, i32) {
    %c0_i32 = arith.constant 0 : i32
    %c0_i32_0 = arith.constant 0 : i32
    %c0_i32_1 = arith.constant 0 : i32
    return %c0_i32, %c0_i32_0 : i32, i32
  }
  func.func @transform_5(%arg0: i32) -> (i32, i32) {
    %c0_i32 = arith.constant 0 : i32
    %c0_i32_0 = arith.constant 0 : i32
    %c0_i32_1 = arith.constant 0 : i32
    return %c0_i32, %c0_i32_0 : i32, i32
  }
  func.func @transform_6(%arg0: i32) -> (i32, i32) {
    %c0_i32 = arith.constant 0 : i32
    %c0_i32_0 = arith.constant 0 : i32
    %c0_i32_1 = arith.constant 0 : i32
    return %c0_i32, %c0_i32_0 : i32, i32
  }
  func.func @transform_7(%arg0: i32) -> (i32, i32, i32) {
    %c0_i32 = arith.constant 0 : i32
    %c0_i32_0 = arith.constant 0 : i32
    %c0_i32_1 = arith.constant 0 : i32
    %c0_i32_2 = arith.constant 0 : i32
    return %c0_i32, %c0_i32_0, %c0_i32_1 : i32, i32, i32
  }
  func.func @transform_8(%arg0: i32) -> (i32, i32, i32) {
    %c0_i32 = arith.constant 0 : i32
    %c0_i32_0 = arith.constant 0 : i32
    %c0_i32_1 = arith.constant 0 : i32
    %c0_i32_2 = arith.constant 0 : i32
    return %c0_i32, %c0_i32_0, %c0_i32_1 : i32, i32, i32
  }
  func.func @transform_9(%arg0: i32) -> (i32, i32) {
    %c0_i32 = arith.constant 0 : i32
    %c0_i32_0 = arith.constant 0 : i32
    %c0_i32_1 = arith.constant 0 : i32
    return %c0_i32, %c0_i32_0 : i32, i32
  }
  func.func @transform_10(%arg0: i32) -> (i32, i32) {
    %c0_i32 = arith.constant 0 : i32
    %c0_i32_0 = arith.constant 0 : i32
    %c0_i32_1 = arith.constant 0 : i32
    return %c0_i32, %c0_i32_0 : i32, i32
  }
  func.func @transform_11(%arg0: i32) -> (i32, i32) {
    %c0_i32 = arith.constant 0 : i32
    %c0_i32_0 = arith.constant 0 : i32
    %c0_i32_1 = arith.constant 0 : i32
    return %c0_i32, %c0_i32_0 : i32, i32
  }
  func.func @transform_12(%arg0: i32) -> (i32, i32) {
    %c0_i32 = arith.constant 0 : i32
    %c0_i32_0 = arith.constant 0 : i32
    return %arg0, %c0_i32 : i32, i32
  }
}

</mosaic_0001>

<bundles_post_ra>
// kernel: tpu_custom_call.1
= control target key start
LH: loop header
LB: loop body
LE: loop exit
PB: predicated region body
PF: predicated region fallthrough
CT: control target
= control target key end

     0   :  { %s7273_s0 = inlined_call_operand.vmem [shape: f32[8,256], index: 0, kind: input, shape index: {}]   ;;  %s7274_s1 = inlined_call_operand.vmem [shape: f32[256,64], index: 1, kind: input, shape index: {}]   ;;  %s7275_s2 = inlined_call_operand.vmem [shape: f32[64,2304], index: 2, kind: input, shape index: {}]   ;;  %s7276_s3 = inlined_call_operand.vmem [shape: f32[2304,64], index: 3, kind: input, shape index: {}]   ;;  %s7277_s4 = inlined_call_operand.vmem [shape: f32[2,8], index: 4, kind: input, shape index: {}]   ;;  %s7278_s5 = inlined_call_operand.vmem [shape: f32[8,2], index: 5, kind: input, shape index: {}]   ;;  %s7279_s6 = inlined_call_operand.vmem [shape: f32[64,256], index: 6, kind: input, shape index: {}]   ;;  %s7280_s7 = inlined_call_operand.vmem [shape: f32[3,8,8], index: 7, kind: input, shape index: {}]   ;;  %s7281_s8 = inlined_call_operand.vmem [shape: f32[3,8,1], index: 8, kind: input, shape index: {}]   ;;  %s7282_s9 = inlined_call_operand.vmem [shape: f32[256,64], index: 9, kind: input, shape index: {}]   ;;  %s7283_s10 = inlined_call_operand.vmem [shape: f32[8,256], index: 10, kind: input, shape index: {}]   ;;  %s7284_s11 = inlined_call_operand.vmem [shape: f32[8,64], index: 11, kind: input, shape index: {}]   ;;  %s7285_s12 = inlined_call_operand.hbm [shape: f32[8,256], index: 12, kind: output, shape index: {}]  }
   0x1   :  { %v59_v0 = vld [vmem:[%s7274_s1 + $0x78] sm:$0xff]  ;;  %v58_v2 = vld [vmem:[%s7274_s1 + $0x70] sm:$0xff]  ;;  %v57_v4 = vld [vmem:[%s7274_s1 + $0x68] sm:$0xff] }
   0x2   :  { %v75_v1 = vld [vmem:[%s7274_s1 + $0xf8] sm:$0xff]  ;;  %76 = vmatpush.msra.mxu0 %v59_v0  ;;  %v74_v3 = vld [vmem:[%s7274_s1 + $0xf0] sm:$0xff]  ;;  %v73_v5 = vld [vmem:[%s7274_s1 + $0xe8] sm:$0xff] }
   0x3   :  { %96 = vmatpush.msra.mxu1 %v75_v1  ;;  %v56_v6 = vld [vmem:[%s7274_s1 + $0x60] sm:$0xff]  ;;  %v55_v8 = vld [vmem:[%s7274_s1 + $0x58] sm:$0xff]  ;;  %v54_v10 = vld [vmem:[%s7274_s1 + $0x50] sm:$0xff] }
   0x4   :  { %77 = vmatpush.msra.mxu0 %v58_v2  ;;  %v72_v7 = vld [vmem:[%s7274_s1 + $0xe0] sm:$0xff]  ;;  %v71_v9 = vld [vmem:[%s7274_s1 + $0xd8] sm:$0xff]  ;;  %v70_v11 = vld [vmem:[%s7274_s1 + $0xd0] sm:$0xff] }
   0x5   :  { %97 = vmatpush.msra.mxu1 %v74_v3  ;;  %v53_v12 = vld [vmem:[%s7274_s1 + $0x48] sm:$0xff]  ;;  %v242_v14 = vld [vmem:[%s7275_s2 + $0x3f0] sm:$0xff]  ;;  %v243_v15 = vld [vmem:[%s7275_s2 + $0x3f8] sm:$0xff] }
   0x6   :  { %78 = vmatpush.msra.mxu0 %v57_v4  ;;  %v69_v13 = vld [vmem:[%s7274_s1 + $0xc8] sm:$0xff]  ;;  %v52_v16 = vld [vmem:[%s7274_s1 + $0x40] sm:$0xff]  ;;  %563 = vmatpush.msra.mxu2 %v242_v14  ;;  %v51_v19 = vld [vmem:[%s7274_s1 + $0x38] sm:$0xff] }
   0x7   :  { %98 = vmatpush.msra.mxu1 %v73_v5  ;;  %v68_v17 = vld [vmem:[%s7274_s1 + $0xc0] sm:$0xff]  ;;  %583 = vmatpush.msra.mxu3 %v243_v15  ;;  %v225_v20 = vld [vmem:[%s7275_s2 + $0x368] sm:$0xff]  ;;  %v67_v21 = vld [vmem:[%s7274_s1 + $0xb8] sm:$0xff] }
   0x8   :  { %79 = vmatpush.msra.mxu0 %v56_v6  ;;  %v224_v18 = vld [vmem:[%s7275_s2 + $0x360] sm:$0xff]  ;;  %v206_v22 = vld [vmem:[%s7275_s2 + $0x2d0] sm:$0xff]  ;;  %v207_v23 = vld [vmem:[%s7275_s2 + $0x2d8] sm:$0xff] }
   0x9   :  { %99 = vmatpush.msra.mxu1 %v72_v7  ;;  %564 = vmatpush.msra.mxu2 %v224_v18  ;;  %v188_v24 = vld [vmem:[%s7275_s2 + $0x240] sm:$0xff]  ;;  %v189_v25 = vld [vmem:[%s7275_s2 + $0x248] sm:$0xff]  ;;  %v50_v26 = vld [vmem:[%s7274_s1 + $0x30] sm:$0xff] }
   0xa   :  { %80 = vmatpush.msra.mxu0 %v55_v8  ;;  %584 = vmatpush.msra.mxu3 %v225_v20  ;;  %v66_v27 = vld [vmem:[%s7274_s1 + $0xb0] sm:$0xff]  ;;  %v171_v29 = vld [vmem:[%s7275_s2 + $0x1b8] sm:$0xff]  ;;  %v49_v30 = vld [vmem:[%s7274_s1 + $0x28] sm:$0xff] }
   0xb   :  { %100 = vmatpush.msra.mxu1 %v71_v9  ;;  %565 = vmatpush.msra.mxu2 %v206_v22  ;;  %v170_v28 = vld [vmem:[%s7275_s2 + $0x1b0] sm:$0xff]  ;;  %v65_v31 = vld [vmem:[%s7274_s1 + $0xa8] sm:$0xff]  ;;  %v152_v32 = vld [vmem:[%s7275_s2 + $0x120] sm:$0xff] }
   0xc   :  { %81 = vmatpush.msra.mxu0 %v54_v10  ;;  %585 = vmatpush.msra.mxu3 %v207_v23  ;;  %v153_v33 = vld [vmem:[%s7275_s2 + $0x128] sm:$0xff]  ;;  %v48_v34 = vld [vmem:[%s7274_s1 + $0x20] sm:$0xff]  ;;  %v134_v36 = vld [vmem:[%s7275_s2 + $0x90] sm:$0xff] }
   0xd   :  { %101 = vmatpush.msra.mxu1 %v70_v11  ;;  %566 = vmatpush.msra.mxu2 %v188_v24  ;;  %v64_v35 = vld [vmem:[%s7274_s1 + $0xa0] sm:$0xff]  ;;  %v135_v37 = vld [vmem:[%s7275_s2 + $0x98] sm:$0xff]  ;;  %v117_v41 = vld [vmem:[%s7275_s2 + $0x8] sm:$0xff] }
   0xe   :  { %82 = vmatpush.msra.mxu0 %v53_v12  ;;  %586 = vmatpush.msra.mxu3 %v189_v25  ;;  %v47_v38 = vld [vmem:[%s7274_s1 + $0x18] sm:$0xff]  ;;  %v116_v40 = vld [vmem:[%s7275_s2] sm:$0xff]  ;;  %v46_v42 = vld [vmem:[%s7274_s1 + $0x10] sm:$0xff] }
   0xf   :  { %102 = vmatpush.msra.mxu1 %v69_v13  ;;  %567 = vmatpush.msra.mxu2 %v170_v28  ;;  %v63_v39 = vld [vmem:[%s7274_s1 + $0x98] sm:$0xff]  ;;  %v62_v43 = vld [vmem:[%s7274_s1 + $0x90] sm:$0xff]  ;;  %v244_v44 = vld [vmem:[%s7275_s2 + $0x400] sm:$0xff] }
  0x10   :  { %83 = vmatpush.msra.mxu0 %v52_v16  ;;  %587 = vmatpush.msra.mxu3 %v171_v29  ;;  %v245_v45 = vld [vmem:[%s7275_s2 + $0x408] sm:$0xff]  ;;  %v226_v48 = vld [vmem:[%s7275_s2 + $0x370] sm:$0xff]  ;;  %v227_v49 = vld [vmem:[%s7275_s2 + $0x378] sm:$0xff] }
  0x11   :  { %103 = vmatpush.msra.mxu1 %v68_v17  ;;  %568 = vmatpush.msra.mxu2 %v152_v32  ;;  %v45_v46 = vld [vmem:[%s7274_s1 + $0x8] sm:$0xff]  ;;  %v44_v50 = vld [vmem:[%s7274_s1] sm:$0xff] }
  0x12   :  { %84 = vmatpush.msra.mxu0 %v51_v19  ;;  %588 = vmatpush.msra.mxu3 %v153_v33  ;;  %v61_v47 = vld [vmem:[%s7274_s1 + $0x88] sm:$0xff]  ;;  %v60_v51 = vld [vmem:[%s7274_s1 + $0x80] sm:$0xff] }
  0x13   :  { %104 = vmatpush.msra.mxu1 %v67_v21  ;;  %569 = vmatpush.msra.mxu2 %v134_v36 }
  0x14   :  { %85 = vmatpush.msra.mxu0 %v50_v26  ;;  %589 = vmatpush.msra.mxu3 %v135_v37 }
  0x15   :  { %105 = vmatpush.msra.mxu1 %v66_v27  ;;  %570 = vmatpush.msra.mxu2 %v116_v40 }
  0x16   :  { %86 = vmatpush.msra.mxu0 %v49_v30  ;;  %590 = vmatpush.msra.mxu3 %v117_v41 }
  0x17   :  { %106 = vmatpush.msra.mxu1 %v65_v31  ;;  %603 = vmatpush.msrb.mxu2 %v244_v44 }
  0x18   :  { %87 = vmatpush.msra.mxu0 %v48_v34  ;;  %623 = vmatpush.msrb.mxu3 %v245_v45 }
  0x19   :  { %107 = vmatpush.msra.mxu1 %v64_v35 }
  0x1a   :  { %88 = vmatpush.msra.mxu0 %v47_v38 }
  0x1b   :  { %108 = vmatpush.msra.mxu1 %v63_v39 }
  0x1c   :  { %89 = vmatpush.msra.mxu0 %v46_v42 }
  0x1d   :  { %109 = vmatpush.msra.mxu1 %v62_v43 }
  0x1e   :  { %17 = vsyncpa [#allocation3], 0  ;;  %90 = vmatpush.msra.mxu0 %v45_v46  ;;  %v3963_v52 = vld [vmem:[%s7273_s0] sm:$0xff]  ;;  %v3968_v53 = vld [vmem:[%s7273_s0 + $0x8] sm:$0xff]  ;;  %604 = vmatpush.msrb.mxu2 %v226_v48  ;;  %vm551_vm0 = vcmask 523264   ;;  %vm933_vm1 = vcmask 64512  }
  0x1f   :  { %110 = vmatpush.msra.mxu1 %v61_v47  ;;  %v246_v54 = vld [vmem:[%s7275_s2 + $0x410] sm:$0xff]  ;;  %v247_v55 = vld [vmem:[%s7275_s2 + $0x418] sm:$0xff]  ;;  %624 = vmatpush.msrb.mxu3 %v227_v49  ;;  %v208_v56 = vld [vmem:[%s7275_s2 + $0x2e0] sm:$0xff]  ;;  %vm1407_vm2 = vcmask 1041408   ;;  %vm1403_vm3 = vcmask 15360  }
  0x20   :  { %91 = vmatpush.msra.mxu0 %v44_v50  ;;  %v209_v57 = vld [vmem:[%s7275_s2 + $0x2e8] sm:$0xff]  ;;  %v228_v58 = vld [vmem:[%s7275_s2 + $0x380] sm:$0xff]  ;;  %v190_v60 = vld [vmem:[%s7275_s2 + $0x250] sm:$0xff]  ;;  %605 = vmatpush.msrb.mxu2 %v208_v56 }
  0x21   :  { %111 = vmatpush.msra.mxu1 %v60_v51  ;;  %92 = vmatmul.f32.vlgmr.msra.gmra.mxu0 %v3963_v52  ;;  %v229_v59 = vld [vmem:[%s7275_s2 + $0x388] sm:$0xff]  ;;  %v191_v61 = vld [vmem:[%s7275_s2 + $0x258] sm:$0xff]  ;;  %v210_v62 = vld [vmem:[%s7275_s2 + $0x2f0] sm:$0xff] }
  0x22   :  { %112 = vmatmul.f32.vlgmr.msra.gmra.mxu1 %v3968_v53  ;;  %643 = vmatpush.msrb.mxu0 %v246_v54  ;;  %v211_v63 = vld [vmem:[%s7275_s2 + $0x2f8] sm:$0xff]  ;;  %v172_v0 = vld [vmem:[%s7275_s2 + $0x1c0] sm:$0xff]  ;;  %v173_v1 = vld [vmem:[%s7275_s2 + $0x1c8] sm:$0xff] }
  0x23   :  { %663 = vmatpush.msrb.mxu1 %v247_v55  ;;  %625 = vmatpush.msrb.mxu3 %v209_v57  ;;  %v192_v2 = vld [vmem:[%s7275_s2 + $0x260] sm:$0xff]  ;;  %v193_v3 = vld [vmem:[%s7275_s2 + $0x268] sm:$0xff]  ;;  %v174_v4 = vld [vmem:[%s7275_s2 + $0x1d0] sm:$0xff] }
  0x24   :  { %644 = vmatpush.msrb.mxu0 %v228_v58  ;;  %606 = vmatpush.msrb.mxu2 %v190_v60  ;;  %v175_v5 = vld [vmem:[%s7275_s2 + $0x1d8] sm:$0xff]  ;;  %v156_v6 = vld [vmem:[%s7275_s2 + $0x140] sm:$0xff]  ;;  %v157_v7 = vld [vmem:[%s7275_s2 + $0x148] sm:$0xff] }
  0x25   :  { %664 = vmatpush.msrb.mxu1 %v229_v59  ;;  %626 = vmatpush.msrb.mxu3 %v191_v61  ;;  %v138_v8 = vld [vmem:[%s7275_s2 + $0xb0] sm:$0xff]  ;;  %v139_v9 = vld [vmem:[%s7275_s2 + $0xb8] sm:$0xff]  ;;  %v120_v10 = vld [vmem:[%s7275_s2 + $0x20] sm:$0xff] }
  0x26   :  { %645 = vmatpush.msrb.mxu0 %v210_v62  ;;  %607 = vmatpush.msrb.mxu2 %v172_v0  ;;  %v121_v11 = vld [vmem:[%s7275_s2 + $0x28] sm:$0xff]  ;;  %v250_v12 = vld [vmem:[%s7275_s2 + $0x430] sm:$0xff]  ;;  %v251_v13 = vld [vmem:[%s7275_s2 + $0x438] sm:$0xff] }
  0x27   :  { %665 = vmatpush.msrb.mxu1 %v211_v63  ;;  %627 = vmatpush.msrb.mxu3 %v173_v1  ;;  %v232_v14 = vld [vmem:[%s7275_s2 + $0x3a0] sm:$0xff]  ;;  %v233_v15 = vld [vmem:[%s7275_s2 + $0x3a8] sm:$0xff]  ;;  %v214_v16 = vld [vmem:[%s7275_s2 + $0x310] sm:$0xff] }
  0x28   :  { %646 = vmatpush.msrb.mxu0 %v192_v2  ;;  %v215_v17 = vld [vmem:[%s7275_s2 + $0x318] sm:$0xff]  ;;  %v196_v18 = vld [vmem:[%s7275_s2 + $0x280] sm:$0xff]  ;;  %v197_v19 = vld [vmem:[%s7275_s2 + $0x288] sm:$0xff] }
  0x29   :  { %666 = vmatpush.msrb.mxu1 %v193_v3  ;;  %v178_v20 = vld [vmem:[%s7275_s2 + $0x1f0] sm:$0xff]  ;;  %v179_v21 = vld [vmem:[%s7275_s2 + $0x1f8] sm:$0xff]  ;;  %v160_v24 = vld [vmem:[%s7275_s2 + $0x160] sm:$0xff] }
  0x2a   :  { %647 = vmatpush.msrb.mxu0 %v174_v4  ;;  %v154_v22 = vld [vmem:[%s7275_s2 + $0x130] sm:$0xff]  ;;  %v155_v23 = vld [vmem:[%s7275_s2 + $0x138] sm:$0xff]  ;;  %v161_v25 = vld [vmem:[%s7275_s2 + $0x168] sm:$0xff] }
  0x2b   :  { %667 = vmatpush.msrb.mxu1 %v175_v5  ;;  %608 = vmatpush.msrb.mxu2 %v154_v22  ;;  %v136_v26 = vld [vmem:[%s7275_s2 + $0xa0] sm:$0xff]  ;;  %v137_v27 = vld [vmem:[%s7275_s2 + $0xa8] sm:$0xff]  ;;  %v142_v28 = vld [vmem:[%s7275_s2 + $0xd0] sm:$0xff] }
  0x2c   :  { %648 = vmatpush.msrb.mxu0 %v156_v6  ;;  %628 = vmatpush.msrb.mxu3 %v155_v23  ;;  %v143_v29 = vld [vmem:[%s7275_s2 + $0xd8] sm:$0xff]  ;;  %v118_v30 = vld [vmem:[%s7275_s2 + $0x10] sm:$0xff]  ;;  %v124_v32 = vld [vmem:[%s7275_s2 + $0x40] sm:$0xff] }
  0x2d   :  { %668 = vmatpush.msrb.mxu1 %v157_v7  ;;  %609 = vmatpush.msrb.mxu2 %v136_v26  ;;  %v119_v31 = vld [vmem:[%s7275_s2 + $0x18] sm:$0xff]  ;;  %v125_v33 = vld [vmem:[%s7275_s2 + $0x48] sm:$0xff]  ;;  %v248_v38 = vld [vmem:[%s7275_s2 + $0x420] sm:$0xff] }
  0x2e   :  { %649 = vmatpush.msrb.mxu0 %v138_v8  ;;  %629 = vmatpush.msrb.mxu3 %v137_v27  ;;  %v249_v39 = vld [vmem:[%s7275_s2 + $0x428] sm:$0xff]  ;;  %v254_v40 = vld [vmem:[%s7275_s2 + $0x450] sm:$0xff]  ;;  %v255_v41 = vld [vmem:[%s7275_s2 + $0x458] sm:$0xff] }
  0x2f   :  { %669 = vmatpush.msrb.mxu1 %v139_v9  ;;  %610 = vmatpush.msrb.mxu2 %v118_v30  ;;  %v230_v42 = vld [vmem:[%s7275_s2 + $0x390] sm:$0xff]  ;;  %v231_v43 = vld [vmem:[%s7275_s2 + $0x398] sm:$0xff]  ;;  %v236_v44 = vld [vmem:[%s7275_s2 + $0x3c0] sm:$0xff] }
  0x30   :  { %650 = vmatpush.msrb.mxu0 %v120_v10  ;;  %630 = vmatpush.msrb.mxu3 %v119_v31  ;;  %v237_v45 = vld [vmem:[%s7275_s2 + $0x3c8] sm:$0xff]  ;;  %v212_v46 = vld [vmem:[%s7275_s2 + $0x300] sm:$0xff]  ;;  %v218_v48 = vld [vmem:[%s7275_s2 + $0x330] sm:$0xff] }
  0x31   :  { %670 = vmatpush.msrb.mxu1 %v121_v11  ;;  %v213_v47 = vld [vmem:[%s7275_s2 + $0x308] sm:$0xff]  ;;  %v219_v49 = vld [vmem:[%s7275_s2 + $0x338] sm:$0xff]  ;;  %v194_v50 = vld [vmem:[%s7275_s2 + $0x270] sm:$0xff] }
  0x32   :  { %723 = vmatpush.msra.mxu0 %v250_v12  ;;  %v195_v51 = vld [vmem:[%s7275_s2 + $0x278] sm:$0xff]  ;;  %v200_v54 = vld [vmem:[%s7275_s2 + $0x2a0] sm:$0xff]  ;;  %v201_v55 = vld [vmem:[%s7275_s2 + $0x2a8] sm:$0xff] }
  0x33   :  { %743 = vmatpush.msra.mxu1 %v251_v13  ;;  %v176_v56 = vld [vmem:[%s7275_s2 + $0x1e0] sm:$0xff]  ;;  %v177_v57 = vld [vmem:[%s7275_s2 + $0x1e8] sm:$0xff]  ;;  %v182_v58 = vld [vmem:[%s7275_s2 + $0x210] sm:$0xff] }
  0x34   :  { %724 = vmatpush.msra.mxu0 %v232_v14  ;;  %v183_v59 = vld [vmem:[%s7275_s2 + $0x218] sm:$0xff]  ;;  %v158_v60 = vld [vmem:[%s7275_s2 + $0x150] sm:$0xff]  ;;  %v164_v62 = vld [vmem:[%s7275_s2 + $0x180] sm:$0xff] }
  0x35   :  { %744 = vmatpush.msra.mxu1 %v233_v15  ;;  %v159_v61 = vld [vmem:[%s7275_s2 + $0x158] sm:$0xff]  ;;  %v165_v63 = vld [vmem:[%s7275_s2 + $0x188] sm:$0xff]  ;;  %v140_v0 = vld [vmem:[%s7275_s2 + $0xc0] sm:$0xff] }
  0x36   :  { %725 = vmatpush.msra.mxu0 %v214_v16  ;;  %v141_v1 = vld [vmem:[%s7275_s2 + $0xc8] sm:$0xff]  ;;  %v146_v2 = vld [vmem:[%s7275_s2 + $0xf0] sm:$0xff]  ;;  %v147_v3 = vld [vmem:[%s7275_s2 + $0xf8] sm:$0xff] }
  0x37   :  { %745 = vmatpush.msra.mxu1 %v215_v17  ;;  %v122_v4 = vld [vmem:[%s7275_s2 + $0x30] sm:$0xff]  ;;  %v123_v5 = vld [vmem:[%s7275_s2 + $0x38] sm:$0xff]  ;;  %v128_v6 = vld [vmem:[%s7275_s2 + $0x60] sm:$0xff] }
  0x38   :  { %726 = vmatpush.msra.mxu0 %v196_v18  ;;  %v129_v7 = vld [vmem:[%s7275_s2 + $0x68] sm:$0xff]  ;;  %v252_v8 = vld [vmem:[%s7275_s2 + $0x440] sm:$0xff]  ;;  %v258_v10 = vld [vmem:[%s7275_s2 + $0x470] sm:$0xff] }
  0x39   :  { %746 = vmatpush.msra.mxu1 %v197_v19  ;;  %v253_v9 = vld [vmem:[%s7275_s2 + $0x448] sm:$0xff]  ;;  %v259_v11 = vld [vmem:[%s7275_s2 + $0x478] sm:$0xff]  ;;  %v234_v12 = vld [vmem:[%s7275_s2 + $0x3b0] sm:$0xff] }
  0x3a   :  { %727 = vmatpush.msra.mxu0 %v178_v20  ;;  %v235_v13 = vld [vmem:[%s7275_s2 + $0x3b8] sm:$0xff]  ;;  %v240_v14 = vld [vmem:[%s7275_s2 + $0x3e0] sm:$0xff]  ;;  %v241_v15 = vld [vmem:[%s7275_s2 + $0x3e8] sm:$0xff] }
  0x3b   :  { %747 = vmatpush.msra.mxu1 %v179_v21  ;;  %v216_v16 = vld [vmem:[%s7275_s2 + $0x320] sm:$0xff]  ;;  %v217_v17 = vld [vmem:[%s7275_s2 + $0x328] sm:$0xff]  ;;  %v222_v18 = vld [vmem:[%s7275_s2 + $0x350] sm:$0xff] }
  0x3c   :  { %728 = vmatpush.msra.mxu0 %v160_v24  ;;  %v223_v19 = vld [vmem:[%s7275_s2 + $0x358] sm:$0xff]  ;;  %v198_v20 = vld [vmem:[%s7275_s2 + $0x290] sm:$0xff]  ;;  %v204_v22 = vld [vmem:[%s7275_s2 + $0x2c0] sm:$0xff] }
  0x3d   :  { %748 = vmatpush.msra.mxu1 %v161_v25  ;;  %v199_v21 = vld [vmem:[%s7275_s2 + $0x298] sm:$0xff]  ;;  %v205_v23 = vld [vmem:[%s7275_s2 + $0x2c8] sm:$0xff]  ;;  %v180_v24 = vld [vmem:[%s7275_s2 + $0x200] sm:$0xff] }
  0x3e   :  { %729 = vmatpush.msra.mxu0 %v142_v28  ;;  %v181_v25 = vld [vmem:[%s7275_s2 + $0x208] sm:$0xff]  ;;  %v186_v26 = vld [vmem:[%s7275_s2 + $0x230] sm:$0xff]  ;;  %v187_v27 = vld [vmem:[%s7275_s2 + $0x238] sm:$0xff] }
  0x3f   :  { %749 = vmatpush.msra.mxu1 %v143_v29  ;;  %v162_v28 = vld [vmem:[%s7275_s2 + $0x170] sm:$0xff]  ;;  %v163_v29 = vld [vmem:[%s7275_s2 + $0x178] sm:$0xff]  ;;  %v168_v30 = vld [vmem:[%s7275_s2 + $0x1a0] sm:$0xff] }
  0x40   :  { %730 = vmatpush.msra.mxu0 %v124_v32  ;;  %v169_v31 = vld [vmem:[%s7275_s2 + $0x1a8] sm:$0xff]  ;;  %v144_v32 = vld [vmem:[%s7275_s2 + $0xe0] sm:$0xff] }
  0x41   :  { %750 = vmatpush.msra.mxu1 %v125_v33  ;;  %v145_v33 = vld [vmem:[%s7275_s2 + $0xe8] sm:$0xff] }
  0x9e   :  { %v93_v34 = vpop.f32.mrf.mxu0 }
  0x9f   :  { %v113_v35 = vpop.f32.mrf.mxu1 }
  0xa0   :  { %v114_v36 = vadd.f32 %v113_v35, %v93_v34  ;;  %v150_v34 = vld [vmem:[%s7275_s2 + $0x110] sm:$0xff]  ;;  %v151_v35 = vld [vmem:[%s7275_s2 + $0x118] sm:$0xff] }
  0xa2   :  { %v4104_v37 = vmul.f32 0.5, %v114_v36  ;;  %v126_v36 = vld [vmem:[%s7275_s2 + $0x50] sm:$0xff] }
  0xa4   :  { %3272 = vmatmul.msk.f32.vlgmr.msra.gmra.mxu2 %vm551_vm0, %v4104_v37  ;;  %3273 = vmatmul.msk.f32.vlgmr.msra.gmra.mxu3 %vm551_vm0, %v4104_v37 }
  0xa5   :  { %3276 = vmatmul.msk.f32.vlgmr.msrb.gmra.mxu0 %vm551_vm0, %v4104_v37  ;;  %3277 = vmatmul.msk.f32.vlgmr.msrb.gmra.mxu1 %vm551_vm0, %v4104_v37 }
  0xa6   :  { %683 = vmatpush.msra.mxu2 %v248_v38  ;;  %703 = vmatpush.msra.mxu3 %v249_v39  ;;  %v127_v38 = vld [vmem:[%s7275_s2 + $0x58] sm:$0xff]  ;;  %v132_v39 = vld [vmem:[%s7275_s2 + $0x80] sm:$0xff] }
  0xa7   :  { %803 = vmatpush.msrb.mxu0 %v254_v40  ;;  %823 = vmatpush.msrb.mxu1 %v255_v41  ;;  %v133_v40 = vld [vmem:[%s7275_s2 + $0x88] sm:$0xff]  ;;  %v256_v41 = vld [vmem:[%s7275_s2 + $0x460] sm:$0xff] }
  0xa8   :  { %684 = vmatpush.msra.mxu2 %v230_v42  ;;  %704 = vmatpush.msra.mxu3 %v231_v43  ;;  %v257_v42 = vld [vmem:[%s7275_s2 + $0x468] sm:$0xff]  ;;  %v238_v43 = vld [vmem:[%s7275_s2 + $0x3d0] sm:$0xff] }
  0xa9   :  { %804 = vmatpush.msrb.mxu0 %v236_v44  ;;  %824 = vmatpush.msrb.mxu1 %v237_v45  ;;  %v239_v44 = vld [vmem:[%s7275_s2 + $0x3d8] sm:$0xff]  ;;  %v220_v45 = vld [vmem:[%s7275_s2 + $0x340] sm:$0xff] }
  0xaa   :  { %685 = vmatpush.msra.mxu2 %v212_v46  ;;  %705 = vmatpush.msra.mxu3 %v213_v47  ;;  %v221_v46 = vld [vmem:[%s7275_s2 + $0x348] sm:$0xff]  ;;  %v202_v47 = vld [vmem:[%s7275_s2 + $0x2b0] sm:$0xff] }
  0xab   :  { %805 = vmatpush.msrb.mxu0 %v218_v48  ;;  %825 = vmatpush.msrb.mxu1 %v219_v49  ;;  %v203_v48 = vld [vmem:[%s7275_s2 + $0x2b8] sm:$0xff]  ;;  %v184_v49 = vld [vmem:[%s7275_s2 + $0x220] sm:$0xff] }
  0xac   :  { %686 = vmatpush.msra.mxu2 %v194_v50  ;;  %706 = vmatpush.msra.mxu3 %v195_v51  ;;  %v185_v50 = vld [vmem:[%s7275_s2 + $0x228] sm:$0xff]  ;;  %v166_v51 = vld [vmem:[%s7275_s2 + $0x190] sm:$0xff] }
  0xad   :  { %806 = vmatpush.msrb.mxu0 %v200_v54  ;;  %826 = vmatpush.msrb.mxu1 %v201_v55  ;;  %v167_v54 = vld [vmem:[%s7275_s2 + $0x198] sm:$0xff]  ;;  %v148_v55 = vld [vmem:[%s7275_s2 + $0x100] sm:$0xff] }
  0xae   :  { %3274 = vmatmul.msk.f32.vlgmr.msrb.gmra.mxu2 %vm551_vm0, %v4104_v37  ;;  %3275 = vmatmul.msk.f32.vlgmr.msrb.gmra.mxu3 %vm551_vm0, %v4104_v37 }
  0xaf   :  { %687 = vmatpush.msra.mxu2 %v176_v56  ;;  %707 = vmatpush.msra.mxu3 %v177_v57  ;;  %v149_v56 = vld [vmem:[%s7275_s2 + $0x108] sm:$0xff]  ;;  %v130_v57 = vld [vmem:[%s7275_s2 + $0x70] sm:$0xff] }
  0xb0   :  { %3280 = vmatmul.msk.f32.vlgmr.msra.gmra.mxu0 %vm551_vm0, %v4104_v37  ;;  %3281 = vmatmul.msk.f32.vlgmr.msra.gmra.mxu1 %vm551_vm0, %v4104_v37 }
  0xb1   :  { %807 = vmatpush.msrb.mxu0 %v182_v58  ;;  %827 = vmatpush.msrb.mxu1 %v183_v59  ;;  %v131_v58 = vld [vmem:[%s7275_s2 + $0x78] sm:$0xff] }
  0xb2   :  { %688 = vmatpush.msra.mxu2 %v158_v60  ;;  %708 = vmatpush.msra.mxu3 %v159_v61 }
  0xb3   :  { %808 = vmatpush.msrb.mxu0 %v164_v62  ;;  %828 = vmatpush.msrb.mxu1 %v165_v63  ;;  %v4387_v63 = vld [vmem:[%s7277_s4] sm:$0x3] }
  0xb4   :  { %689 = vmatpush.msra.mxu2 %v140_v0  ;;  %709 = vmatpush.msra.mxu3 %v141_v1 }
  0xb5   :  { %809 = vmatpush.msrb.mxu0 %v146_v2  ;;  %829 = vmatpush.msrb.mxu1 %v147_v3 }
  0xb6   :  { %690 = vmatpush.msra.mxu2 %v122_v4  ;;  %710 = vmatpush.msra.mxu3 %v123_v5 }
  0xb7   :  { %810 = vmatpush.msrb.mxu0 %v128_v6  ;;  %830 = vmatpush.msrb.mxu1 %v129_v7 }
  0xb8   :  { %763 = vmatpush.msrb.mxu2 %v252_v8  ;;  %783 = vmatpush.msrb.mxu3 %v253_v9 }
  0xb9   :  { %883 = vmatpush.msra.mxu0 %v258_v10  ;;  %903 = vmatpush.msra.mxu1 %v259_v11 }
  0xba   :  { %3278 = vmatmul.msk.f32.vlgmr.msra.gmra.mxu2 %vm551_vm0, %v4104_v37  ;;  %3279 = vmatmul.msk.f32.vlgmr.msra.gmra.mxu3 %vm551_vm0, %v4104_v37 }
  0xbb   :  { %3284 = vmatmul.msk.f32.vlgmr.msrb.gmra.mxu0 %vm551_vm0, %v4104_v37  ;;  %3285 = vmatmul.msk.f32.vlgmr.msrb.gmra.mxu1 %vm551_vm0, %v4104_v37 }
  0xbc   :  { %764 = vmatpush.msrb.mxu2 %v234_v12  ;;  %784 = vmatpush.msrb.mxu3 %v235_v13 }
  0xbd   :  { %884 = vmatpush.msra.mxu0 %v240_v14  ;;  %904 = vmatpush.msra.mxu1 %v241_v15 }
  0xbe   :  { %765 = vmatpush.msrb.mxu2 %v216_v16  ;;  %785 = vmatpush.msrb.mxu3 %v217_v17 }
  0xbf   :  { %885 = vmatpush.msra.mxu0 %v222_v18  ;;  %905 = vmatpush.msra.mxu1 %v223_v19 }
  0xc0   :  { %766 = vmatpush.msrb.mxu2 %v198_v20  ;;  %786 = vmatpush.msrb.mxu3 %v199_v21 }
  0xc1   :  { %886 = vmatpush.msra.mxu0 %v204_v22  ;;  %906 = vmatpush.msra.mxu1 %v205_v23 }
  0xc2   :  { %767 = vmatpush.msrb.mxu2 %v180_v24  ;;  %787 = vmatpush.msrb.mxu3 %v181_v25 }
  0xc3   :  { %887 = vmatpush.msra.mxu0 %v186_v26  ;;  %907 = vmatpush.msra.mxu1 %v187_v27 }
  0xc4   :  { %768 = vmatpush.msrb.mxu2 %v162_v28  ;;  %788 = vmatpush.msrb.mxu3 %v163_v29 }
  0xc5   :  { %888 = vmatpush.msra.mxu0 %v168_v30  ;;  %908 = vmatpush.msra.mxu1 %v169_v31 }
  0xc6   :  { %769 = vmatpush.msrb.mxu2 %v144_v32  ;;  %789 = vmatpush.msrb.mxu3 %v145_v33 }
  0xc7   :  { %889 = vmatpush.msra.mxu0 %v150_v34  ;;  %909 = vmatpush.msra.mxu1 %v151_v35 }
  0xc8   :  { %770 = vmatpush.msrb.mxu2 %v126_v36  ;;  %790 = vmatpush.msrb.mxu3 %v127_v38 }
  0xc9   :  { %890 = vmatpush.msra.mxu0 %v132_v39  ;;  %910 = vmatpush.msra.mxu1 %v133_v40 }
  0xca   :  { %3282 = vmatmul.msk.f32.vlgmr.msrb.gmra.mxu2 %vm551_vm0, %v4104_v37  ;;  %3283 = vmatmul.msk.f32.vlgmr.msrb.gmra.mxu3 %vm551_vm0, %v4104_v37 }
  0xcb   :  { %843 = vmatpush.msra.mxu2 %v256_v41  ;;  %863 = vmatpush.msra.mxu3 %v257_v42 }
  0xcc   :  { %3288 = vmatmul.msk.f32.vlgmr.msra.gmra.mxu0 %vm551_vm0, %v4104_v37  ;;  %3289 = vmatmul.msk.f32.vlgmr.msra.gmra.mxu1 %vm551_vm0, %v4104_v37 }
  0xcd   :  { %844 = vmatpush.msra.mxu2 %v238_v43  ;;  %864 = vmatpush.msra.mxu3 %v239_v44 }
  0xcf   :  { %845 = vmatpush.msra.mxu2 %v220_v45  ;;  %865 = vmatpush.msra.mxu3 %v221_v46 }
  0xd1   :  { %846 = vmatpush.msra.mxu2 %v202_v47  ;;  %866 = vmatpush.msra.mxu3 %v203_v48 }
  0xd3   :  { %847 = vmatpush.msra.mxu2 %v184_v49  ;;  %867 = vmatpush.msra.mxu3 %v185_v50 }
  0xd5   :  { %848 = vmatpush.msra.mxu2 %v166_v51  ;;  %868 = vmatpush.msra.mxu3 %v167_v54 }
  0xd7   :  { %849 = vmatpush.msra.mxu2 %v148_v55  ;;  %869 = vmatpush.msra.mxu3 %v149_v56 }
  0xd9   :  { %850 = vmatpush.msra.mxu2 %v130_v57  ;;  %870 = vmatpush.msra.mxu3 %v131_v58 }
  0xda   :  { %3286 = vmatmul.msk.f32.vlgmr.msra.gmra.mxu2 %vm551_vm0, %v4104_v37  ;;  %3287 = vmatmul.msk.f32.vlgmr.msra.gmra.mxu3 %vm551_vm0, %v4104_v37 }
 0x122   :  { %v652_v59 = vpop.f32.mrf.mxu0  ;;  %v672_v60 = vpop.f32.mrf.mxu1 }
 0x123   :  { %v919_v61 = vmul.f32 %v652_v59, %v3963_v52  ;;  %v920_v62 = vmul.f32 %v672_v60, %v3968_v53 }
 0x125   :  { %1032 = vmatpush.msrb.mxu0 %v919_v61  ;;  %1052 = vmatpush.msrb.mxu1 %v920_v62 }
 0x126   :  { %3294 = vmatmul.msk.f32.vlgmr.msrb.gmra.mxu0 %vm933_vm1, %v4387_v63  ;;  %3295 = vmatmul.msk.f32.vlgmr.msrb.gmra.mxu1 %vm933_vm1, %v4387_v63 }
 0x127   :  { %v572_v37 = vpop.f32.mrf.mxu2  ;;  %v592_v0 = vpop.f32.mrf.mxu3 }
 0x128   :  { %v915_v1 = vmul.f32 %v572_v37, %v3963_v52  ;;  %v916_v2 = vmul.f32 %v592_v0, %v3968_v53 }
 0x12a   :  { %952 = vmatpush.msrb.mxu2 %v915_v1  ;;  %972 = vmatpush.msrb.mxu3 %v916_v2 }
 0x12b   :  { %3290 = vmatmul.msk.f32.vlgmr.msrb.gmra.mxu2 %vm933_vm1, %v4387_v63  ;;  %3291 = vmatmul.msk.f32.vlgmr.msrb.gmra.mxu3 %vm933_vm1, %v4387_v63 }
 0x12d   :  { %v732_v3 = vpop.f32.mrf.mxu0  ;;  %v752_v4 = vpop.f32.mrf.mxu1 }
 0x12e   :  { %v923_v5 = vmul.f32 %v732_v3, %v3963_v52  ;;  %v924_v6 = vmul.f32 %v752_v4, %v3968_v53 }
 0x130   :  { %1112 = vmatpush.msra.mxu0 %v923_v5  ;;  %1132 = vmatpush.msra.mxu1 %v924_v6 }
 0x131   :  { %v612_v7 = vpop.f32.mrf.mxu2  ;;  %v632_v8 = vpop.f32.mrf.mxu3  ;;  %3298 = vmatmul.msk.f32.vlgmr.msra.gmra.mxu0 %vm933_vm1, %v4387_v63  ;;  %3299 = vmatmul.msk.f32.vlgmr.msra.gmra.mxu1 %vm933_vm1, %v4387_v63 }
 0x132   :  { %v917_v9 = vmul.f32 %v612_v7, %v3963_v52  ;;  %v918_v10 = vmul.f32 %v632_v8, %v3968_v53 }
 0x134   :  { %992 = vmatpush.msra.mxu2 %v917_v9  ;;  %1012 = vmatpush.msra.mxu3 %v918_v10 }
 0x135   :  { %3292 = vmatmul.msk.f32.vlgmr.msra.gmra.mxu2 %vm933_vm1, %v4387_v63  ;;  %3293 = vmatmul.msk.f32.vlgmr.msra.gmra.mxu3 %vm933_vm1, %v4387_v63 }
 0x138   :  { %v812_v11 = vpop.f32.mrf.mxu0  ;;  %v832_v12 = vpop.f32.mrf.mxu1 }
 0x139   :  { %v927_v13 = vmul.f32 %v812_v11, %v3963_v52  ;;  %v928_v14 = vmul.f32 %v832_v12, %v3968_v53 }
 0x13b   :  { %1192 = vmatpush.msrb.mxu0 %v927_v13  ;;  %1212 = vmatpush.msrb.mxu1 %v928_v14 }
 0x13c   :  { %3302 = vmatmul.msk.f32.vlgmr.msrb.gmra.mxu0 %vm933_vm1, %v4387_v63  ;;  %3303 = vmatmul.msk.f32.vlgmr.msrb.gmra.mxu1 %vm933_vm1, %v4387_v63 }
 0x13d   :  { %v692_v15 = vpop.f32.mrf.mxu2  ;;  %v712_v16 = vpop.f32.mrf.mxu3 }
 0x13e   :  { %v921_v17 = vmul.f32 %v692_v15, %v3963_v52  ;;  %v922_v18 = vmul.f32 %v712_v16, %v3968_v53 }
 0x140   :  { %1072 = vmatpush.msrb.mxu2 %v921_v17  ;;  %1092 = vmatpush.msrb.mxu3 %v922_v18 }
 0x141   :  { %3296 = vmatmul.msk.f32.vlgmr.msrb.gmra.mxu2 %vm933_vm1, %v4387_v63  ;;  %3297 = vmatmul.msk.f32.vlgmr.msrb.gmra.mxu3 %vm933_vm1, %v4387_v63 }
 0x149   :  { %v892_v19 = vpop.f32.mrf.mxu0  ;;  %v912_v20 = vpop.f32.mrf.mxu1 }
 0x14a   :  { %v931_v21 = vmul.f32 %v892_v19, %v3963_v52  ;;  %v932_v22 = vmul.f32 %v912_v20, %v3968_v53 }
 0x14c   :  { %1272 = vmatpush.msra.mxu0 %v931_v21  ;;  %1292 = vmatpush.msra.mxu1 %v932_v22 }
 0x14d   :  { %v772_v23 = vpop.f32.mrf.mxu2  ;;  %v792_v24 = vpop.f32.mrf.mxu3  ;;  %3306 = vmatmul.msk.f32.vlgmr.msra.gmra.mxu0 %vm933_vm1, %v4387_v63  ;;  %3307 = vmatmul.msk.f32.vlgmr.msra.gmra.mxu1 %vm933_vm1, %v4387_v63 }
 0x14e   :  { %v925_v25 = vmul.f32 %v772_v23, %v3963_v52  ;;  %v926_v26 = vmul.f32 %v792_v24, %v3968_v53 }
 0x150   :  { %1152 = vmatpush.msra.mxu2 %v925_v25  ;;  %1172 = vmatpush.msra.mxu3 %v926_v26 }
 0x151   :  { %3300 = vmatmul.msk.f32.vlgmr.msra.gmra.mxu2 %vm933_vm1, %v4387_v63  ;;  %3301 = vmatmul.msk.f32.vlgmr.msra.gmra.mxu3 %vm933_vm1, %v4387_v63 }
 0x15d   :  { %v852_v27 = vpop.f32.mrf.mxu2  ;;  %v872_v28 = vpop.f32.mrf.mxu3 }
 0x15e   :  { %v929_v29 = vmul.f32 %v852_v27, %v3963_v52  ;;  %v930_v30 = vmul.f32 %v872_v28, %v3968_v53 }
 0x160   :  { %1232 = vmatpush.msrb.mxu2 %v929_v29  ;;  %1252 = vmatpush.msrb.mxu3 %v930_v30 }
 0x161   :  { %3304 = vmatmul.msk.f32.vlgmr.msrb.gmra.mxu2 %vm933_vm1, %v4387_v63  ;;  %3305 = vmatmul.msk.f32.vlgmr.msrb.gmra.mxu3 %vm933_vm1, %v4387_v63 }
 0x1a3   :  { %v1034_v33 = vpop.f32.mrf.mxu0  ;;  %v1054_v36 = vpop.f32.mrf.mxu1 }
 0x1ae   :  { %v954_v31 = vpop.f32.mrf.mxu2  ;;  %v974_v32 = vpop.f32.mrf.mxu3 }
 0x1af   :  { %v1114_v40 = vpop.f32.mrf.mxu0  ;;  %v4443_v43 = vpop.f32.mrf.mxu1 }
 0x1b8   :  { %v994_v34 = vpop.f32.mrf.mxu2  ;;  %v1014_v35 = vpop.f32.mrf.mxu3 }
 0x1b9   :  { %v1297_v38 = vmax.f32 %v954_v31, %v994_v34  ;;  %v1298_v39 = vmax.f32 %v974_v32, %v1014_v35  ;;  %v1194_v46 = vpop.f32.mrf.mxu0  ;;  %v4449_v54 = vpop.f32.mrf.mxu1 }
 0x1bb   :  { %v1299_v53 = vmax.f32 %v1297_v38, %v1034_v33  ;;  %v1300_v42 = vmax.f32 %v1298_v39, %v1054_v36 }
 0x1c4   :  { %v1074_v52 = vpop.f32.mrf.mxu2  ;;  %v4441_v41 = vpop.f32.mrf.mxu3 }
 0x1c5   :  { %v1301_v44 = vmax.f32 %v1299_v53, %v1074_v52  ;;  %v1302_v45 = vmax.f32 %v1300_v42, %v4441_v41 }
 0x1c7   :  { %v1303_v49 = vmax.f32 %v1301_v44, %v1114_v40  ;;  %v1304_v50 = vmax.f32 %v1302_v45, %v4443_v43 }
 0x1ca   :  { %v1274_v57 = vpop.f32.mrf.mxu0  ;;  %v4456_v37 = vpop.f32.mrf.mxu1 }
 0x1d4   :  { %v1154_v47 = vpop.f32.mrf.mxu2  ;;  %v4446_v48 = vpop.f32.mrf.mxu3 }
 0x1d5   :  { %v1305_v51 = vmax.f32 %v1303_v49, %v1154_v47  ;;  %v1306_v55 = vmax.f32 %v1304_v50, %v4446_v48 }
 0x1d7   :  { %v1307_v56 = vmax.f32 %v1305_v51, %v1194_v46  ;;  %v1308_v58 = vmax.f32 %v1306_v55, %v4449_v54 }
 0x1e4   :  { %v1234_v59 = vpop.f32.mrf.mxu2  ;;  %v4453_v60 = vpop.f32.mrf.mxu3 }
 0x1e5   :  { %v1309_v61 = vmax.f32 %v1307_v56, %v1234_v59  ;;  %v1310_v62 = vmax.f32 %v1308_v58, %v4453_v60 }
 0x1e7   :  { %v1311_v63 = vmax.f32 %v1309_v61, %v1274_v57  ;;  %v4459_v4 = vmax.f32 %v1310_v62, %v4456_v37 }
 0x1e9   :  { %v1313_v0 = vsub.f32 %v954_v31, %v1311_v63  ;;  %v1315_v1 = vsub.f32 %v994_v34, %v1311_v63  ;;  %v1317_v2 = vsub.f32 %v1034_v33, %v1311_v63  ;;  %v1319_v3 = vsub.f32 %v1074_v52, %v1311_v63 }
 0x1ea   :  { %v1321_v7 = vsub.f32 %v1114_v40, %v1311_v63  ;;  %v1323_v9 = vsub.f32 %v1154_v47, %v1311_v63  ;;  %v1314_v11 = vsub.f32 %v974_v32, %v4459_v4  ;;  %v1316_v12 = vsub.f32 %v1014_v35, %v4459_v4 }
 0x1eb   :  { %v1331_v5 = vmul.f32 1.442695, %v1313_v0  ;;  %v1335_v6 = vmul.f32 1.442695, %v1315_v1  ;;  %v1339_v8 = vmul.f32 1.442695, %v1317_v2  ;;  %v1325_v13 = vsub.f32 %v1194_v46, %v1311_v63 }
 0x1ec   :  { %v1343_v10 = vmul.f32 1.442695, %v1319_v3  ;;  %v1347_v14 = vmul.f32 1.442695, %v1321_v7  ;;  %v1351_v15 = vmul.f32 1.442695, %v1323_v9  ;;  %v1318_v16 = vsub.f32 %v1054_v36, %v4459_v4 }
 0x1ed   :  { %3377 = vpow2.f32 %v1331_v5  ;;  %v1327_v17 = vsub.f32 %v1234_v59, %v1311_v63  ;;  %v1333_v18 = vmul.f32 1.442695, %v1314_v11  ;;  %v1320_v20 = vsub.f32 %v4441_v41, %v4459_v4 }
 0x1ee   :  { %3379 = vpow2.f32 %v1335_v6  ;;  %v1337_v21 = vmul.f32 1.442695, %v1316_v12  ;;  %v1329_v23 = vsub.f32 %v1274_v57, %v1311_v63  ;;  %v1355_v24 = vmul.f32 1.442695, %v1325_v13 }
 0x1ef   :  { %3381 = vpow2.f32 %v1339_v8  ;;  %v1322_v26 = vsub.f32 %v4443_v43, %v4459_v4  ;;  %v1341_v27 = vmul.f32 1.442695, %v1318_v16  ;;  %v1359_v29 = vmul.f32 1.442695, %v1327_v17 }
 0x1f0   :  { %3383 = vpow2.f32 %v1343_v10  ;;  %v1324_v31 = vsub.f32 %v4446_v48, %v4459_v4  ;;  %v1345_v32 = vmul.f32 1.442695, %v1320_v20  ;;  %v1363_v34 = vmul.f32 1.442695, %v1329_v23  ;;  %v4494_v10 = vld [vmem:[%s7278_s5] sm:$0xff] }
 0x1f1   :  { %3385 = vpow2.f32 %v1347_v14  ;;  %v1326_v36 = vsub.f32 %v4449_v54, %v4459_v4  ;;  %v1349_v38 = vmul.f32 1.442695, %v1322_v26  ;;  %v1328_v41 = vsub.f32 %v4453_v60, %v4459_v4  ;;  %v275_v26 = vld [vmem:[%s7276_s3 + $0x78] sm:$0xff] }
 0x1f2   :  { %3387 = vpow2.f32 %v1351_v15  ;;  %v1353_v53 = vmul.f32 1.442695, %v1324_v31  ;;  %v1330_v43 = vsub.f32 %v4456_v37, %v4459_v4  ;;  %v273_v31 = vld [vmem:[%s7276_s3 + $0x68] sm:$0xff] }
 0x1f3   :  { %v4464_v19 = vpop.eup %3377  ;;  %3389 = vpow2.f32 %v1333_v18  ;;  %v1357_v46 = vmul.f32 1.442695, %v1326_v36  ;;  %v1361_v51 = vmul.f32 1.442695, %v1328_v41  ;;  %v289_v36 = vld [vmem:[%s7276_s3 + $0xe8] sm:$0xff]  ;;  %v270_v41 = vld [vmem:[%s7276_s3 + $0x50] sm:$0xff] }
 0x1f4   :  { %v4468_v22 = vpop.eup %3379  ;;  %3391 = vpow2.f32 %v1337_v21  ;;  %v1365_v55 = vmul.f32 1.442695, %v1330_v43  ;;  %v287_v43 = vld [vmem:[%s7276_s3 + $0xd8] sm:$0xff] }
 0x1f5   :  { %v1367_v25 = vadd.f32 %v4468_v22, %v4464_v19  ;;  %v3382_v28 = vpop.eup %3381  ;;  %3393 = vpow2.f32 %v1355_v24 }
 0x1f6   :  { %v3384_v33 = vpop.eup %3383  ;;  %3395 = vpow2.f32 %v1341_v27 }
 0x1f7   :  { %v1369_v30 = vadd.f32 %v3382_v28, %v1367_v25  ;;  %v3386_v39 = vpop.eup %3385  ;;  %3397 = vpow2.f32 %v1359_v29  ;;  %v291_v29 = vld [vmem:[%s7276_s3 + $0xf8] sm:$0xff] }
 0x1f8   :  { %v3388_v40 = vpop.eup %3387  ;;  %3399 = vpow2.f32 %v1345_v32  ;;  %v307_v32 = vld [vmem:[%s7276_s3 + $0x178] sm:$0xff] }
 0x1f9   :  { %v1371_v35 = vadd.f32 %v3384_v33, %v1369_v30  ;;  %v3390_v42 = vpop.eup %3389  ;;  %3401 = vpow2.f32 %v1363_v34  ;;  %v272_v34 = vld [vmem:[%s7276_s3 + $0x60] sm:$0xff] }
 0x1fa   :  { %v3392_v44 = vpop.eup %3391  ;;  %3403 = vpow2.f32 %v1349_v38  ;;  %v271_v38 = vld [vmem:[%s7276_s3 + $0x58] sm:$0xff] }
 0x1fb   :  { %v1373_v52 = vadd.f32 %v3386_v39, %v1371_v35  ;;  %v3394_v47 = vpop.eup %3393  ;;  %v1368_v48 = vadd.f32 %v3392_v44, %v3390_v42  ;;  %3405 = vpow2.f32 %v1353_v53  ;;  %v306_v35 = vld [vmem:[%s7276_s3 + $0x170] sm:$0xff] }
 0x1fc   :  { %v3396_v49 = vpop.eup %3395  ;;  %3407 = vpow2.f32 %v1357_v46  ;;  %v322_v53 = vld [vmem:[%s7276_s3 + $0x1f0] sm:$0xff]  ;;  %v303_v46 = vld [vmem:[%s7276_s3 + $0x158] sm:$0xff] }
 0x1fd   :  { %v1375_v45 = vadd.f32 %v3388_v40, %v1373_v52  ;;  %v3398_v54 = vpop.eup %3397  ;;  %v1370_v56 = vadd.f32 %v3396_v49, %v1368_v48  ;;  %3409 = vpow2.f32 %v1361_v51  ;;  %v288_v52 = vld [vmem:[%s7276_s3 + $0xe0] sm:$0xff]  ;;  %v285_v51 = vld [vmem:[%s7276_s3 + $0xc8] sm:$0xff] }
 0x1fe   :  { %v3400_v57 = vpop.eup %3399  ;;  %3411 = vpow2.f32 %v1365_v55  ;;  %v268_v48 = vld [vmem:[%s7276_s3 + $0x40] sm:$0xff]  ;;  %v319_v55 = vld [vmem:[%s7276_s3 + $0x1d8] sm:$0xff] }
 0x1ff   :  { %v1377_v50 = vadd.f32 %v3394_v47, %v1375_v45  ;;  %v4482_v59 = vpop.eup %3401  ;;  %v1372_v60 = vadd.f32 %v3400_v57, %v1370_v56  ;;  %v321_v45 = vld [vmem:[%s7276_s3 + $0x1e8] sm:$0xff] }
 0x200   :  { %v3404_v61 = vpop.eup %3403  ;;  %v301_v56 = vld [vmem:[%s7276_s3 + $0x148] sm:$0xff] }
 0x201   :  { %v1379_v58 = vadd.f32 %v3398_v54, %v1377_v50  ;;  %v1374_v63 = vadd.f32 %v3404_v61, %v1372_v60  ;;  %v3406_v37 = vpop.eup %3405  ;;  %v302_v50 = vld [vmem:[%s7276_s3 + $0x150] sm:$0xff]  ;;  %v300_v60 = vld [vmem:[%s7276_s3 + $0x140] sm:$0xff] }
 0x202   :  { %v3408_v1 = vpop.eup %3407 }
 0x203   :  { %v1381_v62 = vadd.f32 %v4482_v59, %v1379_v58  ;;  %v1376_v0 = vadd.f32 %v3406_v37, %v1374_v63  ;;  %v3410_v3 = vpop.eup %3409  ;;  %v266_v58 = vld [vmem:[%s7276_s3 + $0x30] sm:$0xff]  ;;  %v317_v63 = vld [vmem:[%s7276_s3 + $0x1c8] sm:$0xff] }
 0x204   :  { %v3412_v4 = vpop.eup %3411 }
 0x205   :  { %3413 = vrcp.f32 %v1381_v62  ;;  %v1378_v2 = vadd.f32 %v3408_v1, %v1376_v0  ;;  %v265_v62 = vld [vmem:[%s7276_s3 + $0x28] sm:$0xff]  ;;  %v282_v0 = vld [vmem:[%s7276_s3 + $0xb0] sm:$0xff] }
 0x207   :  { %v1380_v5 = vadd.f32 %v3410_v3, %v1378_v2  ;;  %v298_v2 = vld [vmem:[%s7276_s3 + $0x130] sm:$0xff] }
 0x209   :  { %v1382_v7 = vadd.f32 %v3412_v4, %v1380_v5  ;;  %v315_v5 = vld [vmem:[%s7276_s3 + $0x1b8] sm:$0xff] }
 0x20b   :  { %v3414_v6 = vpop.eup %3413  ;;  %3415 = vrcp.f32 %v1382_v7  ;;  %v280_v7 = vld [vmem:[%s7276_s3 + $0xa0] sm:$0xff] }
 0x20c   :  { %v4486_v8 = vmul.f32 %v3414_v6, %v4464_v19  ;;  %v4489_v9 = vmul.f32 %v3414_v6, %v4468_v22  ;;  %v4496_v11 = vmul.f32 %v3414_v6, %v3382_v28  ;;  %v4498_v12 = vmul.f32 %v3414_v6, %v3384_v33  ;;  %v274_v28 = vld [vmem:[%s7276_s3 + $0x70] sm:$0xff] }
 0x20d   :  { %v4508_v13 = vmul.f32 %v3414_v6, %v3386_v39  ;;  %v4510_v14 = vmul.f32 %v3414_v6, %v3388_v40  ;;  %v4548_v22 = vmul.f32 %v3414_v6, %v3394_v47  ;;  %v4550_v23 = vmul.f32 %v3414_v6, %v3398_v54  ;;  %v290_v33 = vld [vmem:[%s7276_s3 + $0xf0] sm:$0xff]  ;;  %v323_v39 = vld [vmem:[%s7276_s3 + $0x1f8] sm:$0xff]  ;;  %v305_v40 = vld [vmem:[%s7276_s3 + $0x168] sm:$0xff] }
 0x20e   :  { %7409 = vst [vmem:[#allocation5_spill] sm:$0xff] %v4498_v12  ;;  %3308 = vmatpush.msk.msra.mxu2 %vm1407_vm2, %v4486_v8  ;;  %3312 = vmatpush.msk.msrb.mxu0 %vm1407_vm2, %v4489_v9  ;;  %v4576_v27 = vmul.f32 %v3414_v6, %v4482_v59  ;;  %v286_v47 = vld [vmem:[%s7276_s3 + $0xd0] sm:$0xff]  ;;  %v267_v54 = vld [vmem:[%s7276_s3 + $0x38] sm:$0xff]  ;;  %v297_v6 = vld [vmem:[%s7276_s3 + $0x128] sm:$0xff] }
 0x20f   :  { %3309 = vmatmul.msk.f32.vlgmr.msra.gmra.mxu2 %vm1403_vm3, %v4494_v10  ;;  %3313 = vmatmul.msk.f32.vlgmr.msrb.gmra.mxu0 %vm1403_vm3, %v4494_v10  ;;  %7410 = vst [vmem:[#allocation6_spill] sm:$0xff] %v4508_v13  ;;  %v318_v59 = vld [vmem:[%s7276_s3 + $0x1d0] sm:$0xff] }
 0x210   :  { %7411 = vst [vmem:[#allocation7_spill] sm:$0xff] %v4510_v14  ;;  %3316 = vmatpush.msk.msrb.mxu2 %vm1407_vm2, %v4496_v11  ;;  %3320 = vmatpush.msk.msra.mxu0 %vm1407_vm2, %v4498_v12  ;;  %v5366_v12 = vld [vmem:[%s7276_s3 + $0x7f8] sm:$0xff] }
 0x211   :  { %v3416_v15 = vpop.eup %3415  ;;  %7415 = vst [vmem:[#allocation11_spill] sm:$0xff] %v4548_v22 }
 0x212   :  { %3324 = vmatpush.msk.msra.mxu2 %vm1407_vm2, %v4508_v13  ;;  %3328 = vmatpush.msk.msrb.mxu0 %vm1407_vm2, %v4510_v14  ;;  %v4520_v16 = vmul.f32 %v3416_v15, %v3390_v42  ;;  %v4522_v17 = vmul.f32 %v3416_v15, %v3392_v44  ;;  %v4524_v18 = vmul.f32 %v3416_v15, %v3396_v49  ;;  %v304_v42 = vld [vmem:[%s7276_s3 + $0x160] sm:$0xff]  ;;  %v269_v44 = vld [vmem:[%s7276_s3 + $0x48] sm:$0xff] }
 0x213   :  { %v4526_v19 = vmul.f32 %v3416_v15, %v3400_v57  ;;  %v4536_v20 = vmul.f32 %v3416_v15, %v3404_v61  ;;  %v4538_v21 = vmul.f32 %v3416_v15, %v3406_v37  ;;  %7416 = vst [vmem:[#allocation12_spill] sm:$0xff] %v4550_v23  ;;  %v4560_v24 = vmul.f32 %v3416_v15, %v3408_v1  ;;  %v320_v49 = vld [vmem:[%s7276_s3 + $0x1e0] sm:$0xff]  ;;  %v283_v61 = vld [vmem:[%s7276_s3 + $0xb8] sm:$0xff] }
 0x214   :  { %3310 = vmatpush.msk.msra.mxu3 %vm1407_vm2, %v4520_v16  ;;  %3314 = vmatpush.msk.msrb.mxu1 %vm1407_vm2, %v4522_v17  ;;  %v4562_v25 = vmul.f32 %v3416_v15, %v3410_v3  ;;  %7419 = vst [vmem:[#allocation15_spill] sm:$0xff] %v4576_v27  ;;  %v4590_v30 = vmul.f32 %v3416_v15, %v3412_v4  ;;  %v284_v57 = vld [vmem:[%s7276_s3 + $0xc0] sm:$0xff]  ;;  %v299_v37 = vld [vmem:[%s7276_s3 + $0x138] sm:$0xff]  ;;  %v281_v3 = vld [vmem:[%s7276_s3 + $0xa8] sm:$0xff] }
 0x215   :  { %7412 = vst [vmem:[#allocation8_spill] sm:$0xff] %v4526_v19  ;;  %3311 = vmatmul.msk.f32.vlgmr.msra.gmra.mxu3 %vm1403_vm3, %v4494_v10  ;;  %3315 = vmatmul.msk.f32.vlgmr.msrb.gmra.mxu1 %vm1403_vm3, %v4494_v10  ;;  %v316_v1 = vld [vmem:[%s7276_s3 + $0x1c0] sm:$0xff]  ;;  %v314_v15 = vld [vmem:[%s7276_s3 + $0x1b0] sm:$0xff] }
 0x216   :  { %7413 = vst [vmem:[#allocation9_spill] sm:$0xff] %v4536_v20  ;;  %3318 = vmatpush.msk.msrb.mxu3 %vm1407_vm2, %v4524_v18  ;;  %3322 = vmatpush.msk.msra.mxu1 %vm1407_vm2, %v4526_v19  ;;  %v264_v4 = vld [vmem:[%s7276_s3 + $0x20] sm:$0xff] }
 0x217   :  { %7414 = vst [vmem:[#allocation10_spill] sm:$0xff] %v4538_v21  ;;  %3317 = vmatmul.msk.f32.vlgmr.msrb.gmra.mxu2 %vm1403_vm3, %v4494_v10  ;;  %3321 = vmatmul.msk.f32.vlgmr.msra.gmra.mxu0 %vm1403_vm3, %v4494_v10  ;;  %v5329_v14 = vld [vmem:[%s7276_s3 + $0x4a0] sm:$0xff] }
 0x218   :  { %3326 = vmatpush.msk.msra.mxu3 %vm1407_vm2, %v4536_v20  ;;  %3330 = vmatpush.msk.msrb.mxu1 %vm1407_vm2, %v4538_v21  ;;  %7417 = vst [vmem:[#allocation13_spill] sm:$0xff] %v4560_v24  ;;  %v5324_v21 = vld [vmem:[%s7276_s3 + $0x410] sm:$0xff]  ;;  %v5379_v20 = vld [vmem:[%s7276_s3 + $0x768] sm:$0xff]  ;;  %v5393_v13 = vld [vmem:[%s7276_s3 + $0x400] sm:$0xff] }
 0x219   :  { %3332 = vmatpush.msk.msrb.mxu2 %vm1407_vm2, %v4548_v22  ;;  %3336 = vmatpush.msk.msra.mxu0 %vm1407_vm2, %v4550_v23  ;;  %7418 = vst [vmem:[#allocation14_spill] sm:$0xff] %v4562_v25  ;;  %v420_v23 = vld [vmem:[%s7276_s3 + $0x500] sm:$0xff]  ;;  %v5344_v22 = vld [vmem:[%s7276_s3 + $0x408] sm:$0xff] }
 0x21a   :  { %7420 = vst [vmem:[#allocation16_spill] sm:$0xff] %v4590_v30 }
 0x21b   :  { %7431 = vst [vmem:[#allocation27_spill] sm:$0xff] %v5324_v21 }
 0x21c   :  { %7433 = vst [vmem:[#allocation29_spill] sm:$0xff] %v5344_v22 }
 0x21d   :  { %3319 = vmatmul.msk.f32.vlgmr.msrb.gmra.mxu3 %vm1403_vm3, %v4494_v10  ;;  %3323 = vmatmul.msk.f32.vlgmr.msra.gmra.mxu1 %vm1403_vm3, %v4494_v10  ;;  %7436 = vst [vmem:[#allocation32_spill] sm:$0xff] %v5366_v12 }
 0x21e   :  { %3334 = vmatpush.msk.msrb.mxu3 %vm1407_vm2, %v4560_v24  ;;  %3338 = vmatpush.msk.msra.mxu1 %vm1407_vm2, %v4562_v25  ;;  %v5288_v25 = vld [vmem:[%s7276_s3 + $0x4b0] sm:$0xff]  ;;  %7438 = vst [vmem:[#allocation34_spill] sm:$0xff] %v5379_v20 }
 0x21f   :  { %3325 = vmatmul.msk.f32.vlgmr.msra.gmra.mxu2 %vm1403_vm3, %v4494_v10  ;;  %3329 = vmatmul.msk.f32.vlgmr.msrb.gmra.mxu0 %vm1403_vm3, %v4494_v10  ;;  %v498_v24 = vld [vmem:[%s7276_s3 + $0x770] sm:$0xff]  ;;  %7440 = vst [vmem:[#allocation36_spill] sm:$0xff] %v5393_v13 }
 0x220   :  { %3340 = vmatpush.msk.msra.mxu2 %vm1407_vm2, %v4576_v27  ;;  %1840 = vmatpush.msrb.mxu0 %v275_v26  ;;  %v296_v26 = vld [vmem:[%s7276_s3 + $0x120] sm:$0xff] }
 0x222   :  { %1841 = vmatpush.msrb.mxu0 %v274_v28  ;;  %v263_v28 = vld [vmem:[%s7276_s3 + $0x18] sm:$0xff] }
 0x224   :  { %1842 = vmatpush.msrb.mxu0 %v273_v31  ;;  %v313_v31 = vld [vmem:[%s7276_s3 + $0x1a8] sm:$0xff] }
 0x225   :  { %3327 = vmatmul.msk.f32.vlgmr.msra.gmra.mxu3 %vm1403_vm3, %v4494_v10  ;;  %3331 = vmatmul.msk.f32.vlgmr.msrb.gmra.mxu1 %vm1403_vm3, %v4494_v10 }
 0x226   :  { %3342 = vmatpush.msk.msra.mxu3 %vm1407_vm2, %v4590_v30  ;;  %1860 = vmatpush.msrb.mxu1 %v291_v29  ;;  %v279_v29 = vld [vmem:[%s7276_s3 + $0x98] sm:$0xff]  ;;  %v5308_v30 = vld [vmem:[%s7276_s3 + $0x4a8] sm:$0xff] }
 0x227   :  { %3333 = vmatmul.msk.f32.vlgmr.msrb.gmra.mxu2 %vm1403_vm3, %v4494_v10  ;;  %3337 = vmatmul.msk.f32.vlgmr.msra.gmra.mxu0 %vm1403_vm3, %v4494_v10 }
 0x228   :  { %1880 = vmatpush.msrb.mxu2 %v307_v32  ;;  %1861 = vmatpush.msrb.mxu1 %v290_v33  ;;  %v295_v32 = vld [vmem:[%s7276_s3 + $0x118] sm:$0xff]  ;;  %v262_v33 = vld [vmem:[%s7276_s3 + $0x10] sm:$0xff] }
 0x229   :  { %1843 = vmatpush.msrb.mxu0 %v272_v34  ;;  %v278_v34 = vld [vmem:[%s7276_s3 + $0x90] sm:$0xff] }
 0x22a   :  { %1881 = vmatpush.msrb.mxu2 %v306_v35  ;;  %1862 = vmatpush.msrb.mxu1 %v289_v36  ;;  %v312_v35 = vld [vmem:[%s7276_s3 + $0x1a0] sm:$0xff]  ;;  %v294_v36 = vld [vmem:[%s7276_s3 + $0x110] sm:$0xff] }
 0x22b   :  { %1844 = vmatpush.msrb.mxu0 %v271_v38  ;;  %v277_v38 = vld [vmem:[%s7276_s3 + $0x88] sm:$0xff] }
 0x22c   :  { %1882 = vmatpush.msrb.mxu2 %v305_v40  ;;  %1863 = vmatpush.msrb.mxu1 %v288_v52  ;;  %v293_v40 = vld [vmem:[%s7276_s3 + $0x108] sm:$0xff]  ;;  %v260_v52 = vld [vmem:[%s7276_s3] sm:$0xff] }
 0x22d   :  { %3335 = vmatmul.msk.f32.vlgmr.msrb.gmra.mxu3 %vm1403_vm3, %v4494_v10  ;;  %3339 = vmatmul.msk.f32.vlgmr.msra.gmra.mxu1 %vm1403_vm3, %v4494_v10 }
 0x22e   :  { %1900 = vmatpush.msrb.mxu3 %v323_v39  ;;  %1845 = vmatpush.msrb.mxu0 %v270_v41  ;;  %v311_v39 = vld [vmem:[%s7276_s3 + $0x198] sm:$0xff]  ;;  %v276_v41 = vld [vmem:[%s7276_s3 + $0x80] sm:$0xff] }
 0x22f   :  { %1883 = vmatpush.msrb.mxu2 %v304_v42  ;;  %1864 = vmatpush.msrb.mxu1 %v287_v43  ;;  %v292_v42 = vld [vmem:[%s7276_s3 + $0x100] sm:$0xff]  ;;  %v371_v43 = vld [vmem:[%s7276_s3 + $0x378] sm:$0xff] }
 0x230   :  { %1901 = vmatpush.msrb.mxu3 %v322_v53  ;;  %1846 = vmatpush.msrb.mxu0 %v269_v44  ;;  %v310_v53 = vld [vmem:[%s7276_s3 + $0x190] sm:$0xff]  ;;  %v339_v44 = vld [vmem:[%s7276_s3 + $0x278] sm:$0xff] }
 0x231   :  { %1884 = vmatpush.msrb.mxu2 %v303_v46  ;;  %1865 = vmatpush.msrb.mxu1 %v286_v47  ;;  %v355_v46 = vld [vmem:[%s7276_s3 + $0x2f8] sm:$0xff]  ;;  %v370_v47 = vld [vmem:[%s7276_s3 + $0x370] sm:$0xff] }
 0x232   :  { %1902 = vmatpush.msrb.mxu3 %v321_v45  ;;  %1847 = vmatpush.msrb.mxu0 %v268_v48  ;;  %v309_v45 = vld [vmem:[%s7276_s3 + $0x188] sm:$0xff]  ;;  %v338_v48 = vld [vmem:[%s7276_s3 + $0x270] sm:$0xff] }
 0x233   :  { %1885 = vmatpush.msrb.mxu2 %v302_v50  ;;  %1866 = vmatpush.msrb.mxu1 %v285_v51  ;;  %v354_v50 = vld [vmem:[%s7276_s3 + $0x2f0] sm:$0xff]  ;;  %v387_v51 = vld [vmem:[%s7276_s3 + $0x3f8] sm:$0xff] }
 0x234   :  { %1903 = vmatpush.msrb.mxu3 %v320_v49  ;;  %1848 = vmatpush.msrb.mxu0 %v267_v54  ;;  %v308_v49 = vld [vmem:[%s7276_s3 + $0x180] sm:$0xff]  ;;  %v369_v54 = vld [vmem:[%s7276_s3 + $0x368] sm:$0xff] }
 0x235   :  { %1886 = vmatpush.msrb.mxu2 %v301_v56  ;;  %1867 = vmatpush.msrb.mxu1 %v284_v57  ;;  %v353_v56 = vld [vmem:[%s7276_s3 + $0x2e8] sm:$0xff]  ;;  %v386_v57 = vld [vmem:[%s7276_s3 + $0x3f0] sm:$0xff] }
 0x236   :  { %1904 = vmatpush.msrb.mxu3 %v319_v55  ;;  %1849 = vmatpush.msrb.mxu0 %v266_v58  ;;  %v337_v55 = vld [vmem:[%s7276_s3 + $0x268] sm:$0xff]  ;;  %v368_v58 = vld [vmem:[%s7276_s3 + $0x360] sm:$0xff] }
 0x237   :  { %1887 = vmatpush.msrb.mxu2 %v300_v60  ;;  %1868 = vmatpush.msrb.mxu1 %v283_v61  ;;  %v352_v60 = vld [vmem:[%s7276_s3 + $0x2e0] sm:$0xff]  ;;  %v385_v61 = vld [vmem:[%s7276_s3 + $0x3e8] sm:$0xff] }
 0x238   :  { %1905 = vmatpush.msrb.mxu3 %v318_v59  ;;  %1850 = vmatpush.msrb.mxu0 %v265_v62  ;;  %v336_v59 = vld [vmem:[%s7276_s3 + $0x260] sm:$0xff]  ;;  %v367_v62 = vld [vmem:[%s7276_s3 + $0x358] sm:$0xff] }
 0x239   :  { %1888 = vmatpush.msrb.mxu2 %v299_v37  ;;  %1869 = vmatpush.msrb.mxu1 %v282_v0  ;;  %v351_v37 = vld [vmem:[%s7276_s3 + $0x2d8] sm:$0xff]  ;;  %v384_v0 = vld [vmem:[%s7276_s3 + $0x3e0] sm:$0xff] }
 0x23a   :  { %1906 = vmatpush.msrb.mxu3 %v317_v63  ;;  %3341 = vmatmul.msk.f32.vlgmr.msra.gmra.mxu2 %vm1403_vm3, %v4494_v10  ;;  %v335_v63 = vld [vmem:[%s7276_s3 + $0x258] sm:$0xff] }
 0x23b   :  { %1889 = vmatpush.msrb.mxu2 %v298_v2  ;;  %1870 = vmatpush.msrb.mxu1 %v281_v3  ;;  %v334_v2 = vld [vmem:[%s7276_s3 + $0x250] sm:$0xff] }
 0x23c   :  { %1907 = vmatpush.msrb.mxu3 %v316_v1  ;;  %1851 = vmatpush.msrb.mxu0 %v264_v4  ;;  %v366_v1 = vld [vmem:[%s7276_s3 + $0x350] sm:$0xff]  ;;  %v383_v4 = vld [vmem:[%s7276_s3 + $0x3d8] sm:$0xff] }
 0x23d   :  { %1890 = vmatpush.msrb.mxu2 %v297_v6  ;;  %1871 = vmatpush.msrb.mxu1 %v280_v7  ;;  %v350_v3 = vld [vmem:[%s7276_s3 + $0x2d0] sm:$0xff]  ;;  %v333_v6 = vld [vmem:[%s7276_s3 + $0x248] sm:$0xff] }
 0x23e   :  { %1908 = vmatpush.msrb.mxu3 %v315_v5  ;;  %1852 = vmatpush.msrb.mxu0 %v263_v28  ;;  %v365_v5 = vld [vmem:[%s7276_s3 + $0x348] sm:$0xff]  ;;  %v4880_v28 = vld [vmem:[%s7276_s3 + $0x240] sm:$0xff] }
 0x23f   :  { %3343 = vmatmul.msk.f32.vlgmr.msra.gmra.mxu3 %vm1403_vm3, %v4494_v10  ;;  %1891 = vmatpush.msrb.mxu2 %v296_v26  ;;  %v261_v10 = vld [vmem:[%s7276_s3 + $0x8] sm:$0xff]  ;;  %v364_v26 = vld [vmem:[%s7276_s3 + $0x340] sm:$0xff] }
 0x240   :  { %1909 = vmatpush.msrb.mxu3 %v314_v15  ;;  %1872 = vmatpush.msrb.mxu1 %v279_v29  ;;  %v349_v7 = vld [vmem:[%s7276_s3 + $0x2c8] sm:$0xff]  ;;  %v382_v15 = vld [vmem:[%s7276_s3 + $0x3d0] sm:$0xff]  ;;  %v4885_v29 = vld [vmem:[%s7276_s3 + $0x2c0] sm:$0xff] }
 0x241   :  { %1892 = vmatpush.msrb.mxu2 %v295_v32  ;;  %1853 = vmatpush.msrb.mxu0 %v262_v33  ;;  %v363_v32 = vld [vmem:[%s7276_s3 + $0x338] sm:$0xff] }
 0x242   :  { %1910 = vmatpush.msrb.mxu3 %v313_v31  ;;  %1873 = vmatpush.msrb.mxu1 %v278_v34  ;;  %v381_v31 = vld [vmem:[%s7276_s3 + $0x3c8] sm:$0xff]  ;;  %v4896_v33 = vld [vmem:[%s7276_s3 + $0x238] sm:$0xff] }
 0x243   :  { %1893 = vmatpush.msrb.mxu2 %v294_v36  ;;  %1854 = vmatpush.msrb.mxu0 %v261_v10  ;;  %v4901_v34 = vld [vmem:[%s7276_s3 + $0x2b8] sm:$0xff]  ;;  %v362_v36 = vld [vmem:[%s7276_s3 + $0x330] sm:$0xff] }
 0x244   :  { %1911 = vmatpush.msrb.mxu3 %v312_v35  ;;  %1874 = vmatpush.msrb.mxu1 %v277_v38  ;;  %v380_v35 = vld [vmem:[%s7276_s3 + $0x3c0] sm:$0xff]  ;;  %v4914_v10 = vld [vmem:[%s7276_s3 + $0x230] sm:$0xff] }
 0x245   :  { %1894 = vmatpush.msrb.mxu2 %v293_v40  ;;  %1855 = vmatpush.msrb.mxu0 %v260_v52  ;;  %v4919_v38 = vld [vmem:[%s7276_s3 + $0x2b0] sm:$0xff]  ;;  %v361_v40 = vld [vmem:[%s7276_s3 + $0x328] sm:$0xff] }
 0x246   :  { %1912 = vmatpush.msrb.mxu3 %v311_v39  ;;  %1875 = vmatpush.msrb.mxu1 %v276_v41  ;;  %v379_v39 = vld [vmem:[%s7276_s3 + $0x3b8] sm:$0xff]  ;;  %v4932_v52 = vld [vmem:[%s7276_s3 + $0x228] sm:$0xff] }
 0x247   :  { %1895 = vmatpush.msrb.mxu2 %v292_v42  ;;  %1920 = vmatpush.msra.mxu0 %v339_v44  ;;  %v4937_v41 = vld [vmem:[%s7276_s3 + $0x2a8] sm:$0xff]  ;;  %v360_v42 = vld [vmem:[%s7276_s3 + $0x320] sm:$0xff]  ;;  %v359_v44 = vld [vmem:[%s7276_s3 + $0x318] sm:$0xff] }
 0x248   :  { %1913 = vmatpush.msrb.mxu3 %v310_v53  ;;  %1940 = vmatpush.msra.mxu1 %v355_v46  ;;  %v378_v53 = vld [vmem:[%s7276_s3 + $0x3b0] sm:$0xff] }
 0x249   :  { %1960 = vmatpush.msra.mxu2 %v371_v43  ;;  %1921 = vmatpush.msra.mxu0 %v338_v48  ;;  %v377_v43 = vld [vmem:[%s7276_s3 + $0x3a8] sm:$0xff]  ;;  %v358_v46 = vld [vmem:[%s7276_s3 + $0x310] sm:$0xff] }
 0x24a   :  { %1914 = vmatpush.msrb.mxu3 %v309_v45  ;;  %1941 = vmatpush.msra.mxu1 %v354_v50  ;;  %v376_v45 = vld [vmem:[%s7276_s3 + $0x3a0] sm:$0xff]  ;;  %v374_v48 = vld [vmem:[%s7276_s3 + $0x390] sm:$0xff] }
 0x24b   :  { %1961 = vmatpush.msra.mxu2 %v370_v47  ;;  %1922 = vmatpush.msra.mxu0 %v337_v55  ;;  %v375_v47 = vld [vmem:[%s7276_s3 + $0x398] sm:$0xff]  ;;  %v4975_v50 = vld [vmem:[%s7276_s3 + $0x2a0] sm:$0xff] }
 0x24c   :  { %1915 = vmatpush.msrb.mxu3 %v308_v49  ;;  %1942 = vmatpush.msra.mxu1 %v353_v56  ;;  %v4970_v49 = vld [vmem:[%s7276_s3 + $0x220] sm:$0xff]  ;;  %v4988_v55 = vld [vmem:[%s7276_s3 + $0x218] sm:$0xff] }
 0x24d   :  { %1962 = vmatpush.msra.mxu2 %v369_v54  ;;  %1923 = vmatpush.msra.mxu0 %v336_v59  ;;  %v373_v54 = vld [vmem:[%s7276_s3 + $0x388] sm:$0xff]  ;;  %v4993_v56 = vld [vmem:[%s7276_s3 + $0x298] sm:$0xff]  ;;  %v5006_v59 = vld [vmem:[%s7276_s3 + $0x210] sm:$0xff] }
 0x24e   :  { %1980 = vmatpush.msra.mxu3 %v387_v51  ;;  %1943 = vmatpush.msra.mxu1 %v352_v60  ;;  %v357_v51 = vld [vmem:[%s7276_s3 + $0x308] sm:$0xff]  ;;  %v5011_v60 = vld [vmem:[%s7276_s3 + $0x290] sm:$0xff] }
 0x24f   :  { %1963 = vmatpush.msra.mxu2 %v368_v58  ;;  %1924 = vmatpush.msra.mxu0 %v335_v63  ;;  %v372_v58 = vld [vmem:[%s7276_s3 + $0x380] sm:$0xff] }
 0x250   :  { %1981 = vmatpush.msra.mxu3 %v386_v57  ;;  %1944 = vmatpush.msra.mxu1 %v351_v37  ;;  %v356_v57 = vld [vmem:[%s7276_s3 + $0x300] sm:$0xff] }
 0x251   :  { %1964 = vmatpush.msra.mxu2 %v367_v62  ;;  %1925 = vmatpush.msra.mxu0 %v334_v2  ;;  %v5023_v62 = vld [vmem:[%s7276_s3 + $0x288] sm:$0xff]  ;;  %v5030_v63 = vld [vmem:[%s7276_s3 + $0x200] sm:$0xff] }
 0x252   :  { %1982 = vmatpush.msra.mxu3 %v385_v61  ;;  %1945 = vmatpush.msra.mxu1 %v350_v3  ;;  %v5018_v61 = vld [vmem:[%s7276_s3 + $0x208] sm:$0xff]  ;;  %v5035_v37 = vld [vmem:[%s7276_s3 + $0x280] sm:$0xff]  ;;  %v435_v3 = vld [vmem:[%s7276_s3 + $0x578] sm:$0xff] }
 0x253   :  { %1965 = vmatpush.msra.mxu2 %v366_v1  ;;  %1926 = vmatpush.msra.mxu0 %v333_v6  ;;  %v5044_v1 = vld [vmem:[%s7273_s0] sm:$0xff] }
 0x254   :  { %1983 = vmatpush.msra.mxu3 %v384_v0  ;;  %1946 = vmatpush.msra.mxu1 %v349_v7 }
 0x255   :  { %1966 = vmatpush.msra.mxu2 %v365_v5  ;;  %1927 = vmatpush.msra.mxu0 %v4880_v28  ;;  %v433_v5 = vld [vmem:[%s7276_s3 + $0x568] sm:$0xff] }
 0x256   :  { %1984 = vmatpush.msra.mxu3 %v383_v4  ;;  %1947 = vmatpush.msra.mxu1 %v4885_v29  ;;  %v434_v4 = vld [vmem:[%s7276_s3 + $0x570] sm:$0xff] }
 0x257   :  { %1967 = vmatpush.msra.mxu2 %v364_v26  ;;  %1928 = vmatpush.msra.mxu0 %v4896_v33  ;;  %v432_v26 = vld [vmem:[%s7276_s3 + $0x560] sm:$0xff] }
 0x258   :  { %1985 = vmatpush.msra.mxu3 %v382_v15  ;;  %1948 = vmatpush.msra.mxu1 %v4901_v34  ;;  %v5064_v15 = vld [vmem:[%s7276_s3 + $0x478] sm:$0xff] }
 0x259   :  { %1968 = vmatpush.msra.mxu2 %v363_v32  ;;  %1929 = vmatpush.msra.mxu0 %v4914_v10  ;;  %v5074_v32 = vld [vmem:[%s7276_s3 + $0x470] sm:$0xff] }
 0x25a   :  { %1986 = vmatpush.msra.mxu3 %v381_v31  ;;  %1949 = vmatpush.msra.mxu1 %v4919_v38 }
 0x25b   :  { %1969 = vmatpush.msra.mxu2 %v362_v36  ;;  %1930 = vmatpush.msra.mxu0 %v4932_v52 }
 0x25c   :  { %1987 = vmatpush.msra.mxu3 %v380_v35  ;;  %1950 = vmatpush.msra.mxu1 %v4937_v41  ;;  %v5079_v35 = vld [vmem:[%s7273_s0 + $0x8] sm:$0xff]  ;;  %s3263_s0 = sshll.u32 %s7285_s12, 4  ;;  %s3264_s0 = int_to_ptr.hbm [resolvable:$true] %s3263_s0 }
 0x25d   :  { %1970 = vmatpush.msra.mxu2 %v361_v40  ;;  %1931 = vmatpush.msra.mxu0 %v4970_v49  ;;  %v431_v40 = vld [vmem:[%s7276_s3 + $0x558] sm:$0xff] }
 0x25e   :  { %1988 = vmatpush.msra.mxu3 %v379_v39  ;;  %1951 = vmatpush.msra.mxu1 %v4975_v50  ;;  %v451_v39 = vld [vmem:[%s7276_s3 + $0x5f8] sm:$0xff] }
 0x25f   :  { %1971 = vmatpush.msra.mxu2 %v360_v42  ;;  %1932 = vmatpush.msra.mxu0 %v4988_v55  ;;  %v450_v42 = vld [vmem:[%s7276_s3 + $0x5f0] sm:$0xff] }
 0x260   :  { %1989 = vmatpush.msra.mxu3 %v378_v53  ;;  %1952 = vmatpush.msra.mxu1 %v4993_v56  ;;  %v5093_v53 = vld [vmem:[%s7276_s3 + $0x468] sm:$0xff] }
 0x261   :  { %1972 = vmatpush.msra.mxu2 %v359_v44  ;;  %1933 = vmatpush.msra.mxu0 %v5006_v59  ;;  %v430_v44 = vld [vmem:[%s7276_s3 + $0x550] sm:$0xff] }
 0x262   :  { %1990 = vmatpush.msra.mxu3 %v377_v43  ;;  %1953 = vmatpush.msra.mxu1 %v5011_v60 }
 0x263   :  { %1973 = vmatpush.msra.mxu2 %v358_v46  ;;  %1934 = vmatpush.msra.mxu0 %v5018_v61  ;;  %v5109_v46 = vld [vmem:[%s7276_s3 + $0x460] sm:$0xff] }
 0x264   :  { %1991 = vmatpush.msra.mxu3 %v376_v45  ;;  %1954 = vmatpush.msra.mxu1 %v5023_v62 }
 0x265   :  { %1974 = vmatpush.msra.mxu2 %v357_v51  ;;  %1935 = vmatpush.msra.mxu0 %v5030_v63 }
 0x266   :  { %1992 = vmatpush.msra.mxu3 %v375_v47  ;;  %1955 = vmatpush.msra.mxu1 %v5035_v37  ;;  %v449_v47 = vld [vmem:[%s7276_s3 + $0x5e8] sm:$0xff] }
 0x267   :  { %1975 = vmatpush.msra.mxu2 %v356_v57 }
 0x268   :  { %1993 = vmatpush.msra.mxu3 %v374_v48  ;;  %v429_v48 = vld [vmem:[%s7276_s3 + $0x548] sm:$0xff] }
 0x26a   :  { %1994 = vmatpush.msra.mxu3 %v373_v54  ;;  %v5123_v54 = vld [vmem:[%s7276_s3 + $0x458] sm:$0xff] }
 0x26c   :  { %1995 = vmatpush.msra.mxu3 %v372_v58  ;;  %v5130_v58 = vld [vmem:[%s7276_s3 + $0x4f8] sm:$0xff] }
 0x28c   :  { %v5039_v0 = vpop.f32.mrf.mxu0 }
 0x28d   :  { %7421 = vst [vmem:[#allocation17_spill] sm:$0xff] %v5039_v0  ;;  %v1824_v2 = vmul.f32 %v5044_v1, %v5039_v0  ;;  %v422_v0 = vld [vmem:[%s7276_s3 + $0x510] sm:$0xff] }
 0x28f   :  { %1896 = vmatmul.f32.vlgmr.msrb.gmra.mxu2 %v1824_v2  ;;  %v448_v2 = vld [vmem:[%s7276_s3 + $0x5e0] sm:$0xff] }
 0x290   :  { %2040 = vmatpush.msrb.mxu2 %v435_v3 }
 0x292   :  { %2041 = vmatpush.msrb.mxu2 %v434_v4  ;;  %v5057_v6 = vpop.f32.mrf.mxu2  ;;  %v5069_v31 = vpop.f32.mrf.mxu1  ;;  %v428_v4 = vld [vmem:[%s7276_s3 + $0x540] sm:$0xff] }
 0x293   :  { %7422 = vst [vmem:[#allocation18_spill] sm:$0xff] %v5057_v6  ;;  %v1822_v7 = vmul.f32 %v5044_v1, %v5057_v6  ;;  %v1825_v36 = vmul.f32 %v5079_v35, %v5069_v31  ;;  %v421_v6 = vld [vmem:[%s7276_s3 + $0x508] sm:$0xff] }
 0x294   :  { %2042 = vmatpush.msrb.mxu2 %v433_v5  ;;  %7423 = vst [vmem:[#allocation19_spill] sm:$0xff] %v5069_v31  ;;  %v5099_v43 = vpop.f32.mrf.mxu0  ;;  %v5144_v5 = vld [vmem:[%s7276_s3 + $0x4f0] sm:$0xff]  ;;  %v5252_v31 = vld [vmem:[%s7276_s3 + $0x4c0] sm:$0xff] }
 0x295   :  { %1856 = vmatmul.f32.vlgmr.msrb.gmra.mxu0 %v1822_v7  ;;  %1916 = vmatmul.f32.vlgmr.msrb.gmra.mxu3 %v1825_v36  ;;  %7424 = vst [vmem:[#allocation20_spill] sm:$0xff] %v5099_v43  ;;  %v1828_v45 = vmul.f32 %v5044_v1, %v5099_v43  ;;  %v447_v7 = vld [vmem:[%s7276_s3 + $0x5d8] sm:$0xff]  ;;  %v5234_v43 = vld [vmem:[%s7276_s3 + $0x4c8] sm:$0xff] }
 0x296   :  { %2000 = vmatpush.msrb.mxu0 %v5064_v15  ;;  %2043 = vmatpush.msrb.mxu2 %v432_v26 }
 0x297   :  { %2060 = vmatpush.msrb.mxu3 %v451_v39  ;;  %1976 = vmatmul.f32.vlgmr.msra.gmra.mxu2 %v1828_v45  ;;  %v5172_v45 = vld [vmem:[%s7276_s3 + $0x450] sm:$0xff] }
 0x298   :  { %2001 = vmatpush.msrb.mxu0 %v5074_v32  ;;  %2044 = vmatpush.msrb.mxu2 %v431_v40  ;;  %v5118_v51 = vpop.f32.mrf.mxu3  ;;  %v427_v40 = vld [vmem:[%s7276_s3 + $0x538] sm:$0xff] }
 0x299   :  { %2061 = vmatpush.msrb.mxu3 %v450_v42  ;;  %7425 = vst [vmem:[#allocation21_spill] sm:$0xff] %v5118_v51  ;;  %v1823_v57 = vmul.f32 %v5079_v35, %v5118_v51  ;;  %v5163_v42 = vld [vmem:[%s7276_s3 + $0x4e8] sm:$0xff]  ;;  %v5270_v51 = vld [vmem:[%s7276_s3 + $0x4b8] sm:$0xff] }
 0x29a   :  { %2002 = vmatpush.msrb.mxu0 %v5093_v53  ;;  %2045 = vmatpush.msrb.mxu2 %v430_v44  ;;  %v5136_v3 = vpop.f32.mrf.mxu1  ;;  %v5149_v26 = vpop.f32.mrf.mxu2  ;;  %v446_v44 = vld [vmem:[%s7276_s3 + $0x5d0] sm:$0xff] }
 0x29b   :  { %2062 = vmatpush.msrb.mxu3 %v449_v47  ;;  %7426 = vst [vmem:[#allocation22_spill] sm:$0xff] %v5136_v3  ;;  %1876 = vmatmul.f32.vlgmr.msrb.gmra.mxu1 %v1823_v57  ;;  %v1829_v36 = vmul.f32 %v5079_v35, %v5136_v3  ;;  %v1826_v39 = vmul.f32 %v5044_v1, %v5149_v26  ;;  %v426_v47 = vld [vmem:[%s7276_s3 + $0x530] sm:$0xff]  ;;  %v445_v57 = vld [vmem:[%s7276_s3 + $0x5c8] sm:$0xff] }
 0x29c   :  { %2003 = vmatpush.msrb.mxu0 %v5109_v46  ;;  %2046 = vmatpush.msrb.mxu2 %v429_v48  ;;  %7427 = vst [vmem:[#allocation23_spill] sm:$0xff] %v5149_v26  ;;  %v5180_v48 = vld [vmem:[%s7276_s3 + $0x4e0] sm:$0xff]  ;;  %v5216_v3 = vld [vmem:[%s7276_s3 + $0x4d0] sm:$0xff]  ;;  %v423_v26 = vld [vmem:[%s7276_s3 + $0x518] sm:$0xff]  ;;  %v5319_v27 = vpop.f32.mrf.mxu0 }
 0x29d   :  { %2020 = vmatpush.msrb.mxu1 %v5130_v58  ;;  %2063 = vmatpush.msrb.mxu3 %v448_v2  ;;  %7430 = vst [vmem:[#allocation26_spill] sm:$0xff] %v5319_v27 }
 0x29e   :  { %2004 = vmatpush.msrb.mxu0 %v5123_v54  ;;  %1996 = vmatmul.f32.vlgmr.msra.gmra.mxu3 %v1829_v36  ;;  %v5198_v36 = vld [vmem:[%s7276_s3 + $0x4d8] sm:$0xff] }
 0x29f   :  { %2047 = vmatpush.msrb.mxu2 %v428_v4  ;;  %2021 = vmatpush.msrb.mxu1 %v5144_v5  ;;  %v5191_v4 = vld [vmem:[%s7276_s3 + $0x448] sm:$0xff] }
 0x2a0   :  { %2064 = vmatpush.msrb.mxu3 %v447_v7  ;;  %1936 = vmatmul.f32.vlgmr.msra.gmra.mxu0 %v1826_v39  ;;  %v5186_v2 = vpop.f32.mrf.mxu3  ;;  %v444_v39 = vld [vmem:[%s7276_s3 + $0x5c0] sm:$0xff] }
 0x2a1   :  { %2048 = vmatpush.msrb.mxu2 %v427_v40  ;;  %2022 = vmatpush.msrb.mxu1 %v5163_v42  ;;  %7428 = vst [vmem:[#allocation24_spill] sm:$0xff] %v5186_v2  ;;  %v1827_v7 = vmul.f32 %v5079_v35, %v5186_v2  ;;  %v5208_v40 = vld [vmem:[%s7276_s3 + $0x440] sm:$0xff]  ;;  %v442_v2 = vld [vmem:[%s7276_s3 + $0x5b0] sm:$0xff] }
 0x2a2   :  { %2065 = vmatpush.msrb.mxu3 %v446_v44  ;;  %2005 = vmatpush.msrb.mxu0 %v5172_v45  ;;  %v425_v44 = vld [vmem:[%s7276_s3 + $0x528] sm:$0xff]  ;;  %v5359_v19 = vpop.f32.mrf.mxu2 }
 0x2a3   :  { %2049 = vmatpush.msrb.mxu2 %v426_v47  ;;  %2023 = vmatpush.msrb.mxu1 %v5180_v48  ;;  %v443_v47 = vld [vmem:[%s7276_s3 + $0x5b8] sm:$0xff]  ;;  %7435 = vst [vmem:[#allocation31_spill] sm:$0xff] %v5359_v19 }
 0x2a4   :  { %2066 = vmatpush.msrb.mxu3 %v445_v57  ;;  %1956 = vmatmul.f32.vlgmr.msra.gmra.mxu1 %v1827_v7  ;;  %v5226_v57 = vld [vmem:[%s7276_s3 + $0x438] sm:$0xff]  ;;  %v424_v7 = vld [vmem:[%s7276_s3 + $0x520] sm:$0xff] }
 0x2a5   :  { %2006 = vmatpush.msrb.mxu0 %v5191_v4  ;;  %2024 = vmatpush.msrb.mxu1 %v5198_v36 }
 0x2a6   :  { %2067 = vmatpush.msrb.mxu3 %v444_v39  ;;  %2050 = vmatpush.msrb.mxu2 %v425_v44  ;;  %v5244_v39 = vld [vmem:[%s7276_s3 + $0x430] sm:$0xff]  ;;  %v441_v44 = vld [vmem:[%s7276_s3 + $0x5a8] sm:$0xff] }
 0x2a7   :  { %2007 = vmatpush.msrb.mxu0 %v5208_v40  ;;  %2025 = vmatpush.msrb.mxu1 %v5216_v3 }
 0x2a8   :  { %2068 = vmatpush.msrb.mxu3 %v443_v47  ;;  %2051 = vmatpush.msrb.mxu2 %v424_v7  ;;  %v5262_v47 = vld [vmem:[%s7276_s3 + $0x428] sm:$0xff]  ;;  %v440_v7 = vld [vmem:[%s7276_s3 + $0x5a0] sm:$0xff] }
 0x2a9   :  { %2008 = vmatpush.msrb.mxu0 %v5226_v57  ;;  %2026 = vmatpush.msrb.mxu1 %v5234_v43 }
 0x2aa   :  { %2069 = vmatpush.msrb.mxu3 %v442_v2  ;;  %2052 = vmatpush.msrb.mxu2 %v423_v26  ;;  %v5280_v2 = vld [vmem:[%s7276_s3 + $0x420] sm:$0xff]  ;;  %v5293_v26 = vld [vmem:[%s7276_s3 + $0x598] sm:$0xff] }
 0x2ab   :  { %2009 = vmatpush.msrb.mxu0 %v5244_v39  ;;  %2027 = vmatpush.msrb.mxu1 %v5252_v31  ;;  %7429 = vst [vmem:[#allocation25_spill] sm:$0xff] %v5293_v26 }
 0x2ac   :  { %2070 = vmatpush.msrb.mxu3 %v441_v44  ;;  %2053 = vmatpush.msrb.mxu2 %v422_v0  ;;  %v5300_v44 = vld [vmem:[%s7276_s3 + $0x418] sm:$0xff]  ;;  %v438_v0 = vld [vmem:[%s7276_s3 + $0x590] sm:$0xff] }
 0x2ad   :  { %2010 = vmatpush.msrb.mxu0 %v5262_v47  ;;  %2028 = vmatpush.msrb.mxu1 %v5270_v51 }
 0x2ae   :  { %2071 = vmatpush.msrb.mxu3 %v440_v7  ;;  %2054 = vmatpush.msrb.mxu2 %v421_v6  ;;  %v499_v7 = vld [vmem:[%s7276_s3 + $0x778] sm:$0xff]  ;;  %v5334_v6 = vld [vmem:[%s7276_s3 + $0x588] sm:$0xff] }
 0x2af   :  { %2011 = vmatpush.msrb.mxu0 %v5280_v2  ;;  %2029 = vmatpush.msrb.mxu1 %v5288_v25  ;;  %7432 = vst [vmem:[#allocation28_spill] sm:$0xff] %v5334_v6 }
 0x2b0   :  { %2072 = vmatpush.msrb.mxu3 %v5293_v26  ;;  %2055 = vmatpush.msrb.mxu2 %v420_v23  ;;  %v5349_v26 = vld [vmem:[%s7276_s3 + $0x498] sm:$0xff]  ;;  %v5354_v23 = vld [vmem:[%s7276_s3 + $0x580] sm:$0xff] }
 0x2b1   :  { %2012 = vmatpush.msrb.mxu0 %v5300_v44  ;;  %2030 = vmatpush.msrb.mxu1 %v5308_v30  ;;  %7434 = vst [vmem:[#allocation30_spill] sm:$0xff] %v5354_v23 }
 0x2b2   :  { %2073 = vmatpush.msrb.mxu3 %v438_v0  ;;  %2120 = vmatpush.msra.mxu2 %v499_v7  ;;  %v1832_v0 = vmul.f32 %v5044_v1, %v5319_v27  ;;  %v5371_v7 = vld [vmem:[%s7276_s3 + $0x490] sm:$0xff]  ;;  %v5373_v27 = vpop.f32.mrf.mxu1 }
 0x2b3   :  { %2013 = vmatpush.msrb.mxu0 %v5324_v21  ;;  %2031 = vmatpush.msrb.mxu1 %v5329_v14  ;;  %7437 = vst [vmem:[#allocation33_spill] sm:$0xff] %v5373_v27  ;;  %v5410_v21 = vld [vmem:[%s7276_s3 + $0x7e8] sm:$0xff] }
 0x2b4   :  { %2074 = vmatpush.msrb.mxu3 %v5334_v6  ;;  %2121 = vmatpush.msra.mxu2 %v498_v24  ;;  %v5386_v6 = vld [vmem:[%s7276_s3 + $0x7f0] sm:$0xff]  ;;  %v1830_v24 = vmul.f32 %v5044_v1, %v5359_v19  ;;  %v1833_v19 = vmul.f32 %v5079_v35, %v5373_v27  ;;  %7443 = vst [vmem:[#allocation39_spill] sm:$0xff] %v5410_v21 }
 0x2b5   :  { %2014 = vmatpush.msrb.mxu0 %v5344_v22  ;;  %2032 = vmatpush.msrb.mxu1 %v5349_v26  ;;  %7439 = vst [vmem:[#allocation35_spill] sm:$0xff] %v5386_v6  ;;  %v5399_v22 = vld [vmem:[%s7276_s3 + $0x488] sm:$0xff] }
 0x2b6   :  { %2075 = vmatpush.msrb.mxu3 %v5354_v23  ;;  %7441 = vst [vmem:[#allocation37_spill] sm:$0xff] %v5399_v22  ;;  %2056 = vmatmul.f32.vlgmr.msrb.gmra.mxu2 %v1832_v0  ;;  %v5401_v23 = vpop.f32.mrf.mxu3  ;;  %v5422_v0 = vld [vmem:[%s7276_s3 + $0x480] sm:$0xff] }
 0x2b7   :  { %7442 = vst [vmem:[#allocation38_spill] sm:$0xff] %v5401_v23  ;;  %2033 = vmatpush.msrb.mxu1 %v5371_v7  ;;  %2122 = vmatpush.msra.mxu2 %v5379_v20  ;;  %v1831_v27 = vmul.f32 %v5079_v35, %v5401_v23  ;;  %v5430_v20 = vld [vmem:[%s7276_s3 + $0x6f8] sm:$0xff]  ;;  %v5453_v23 = vld [vmem:[%s7276_s3 + $0x6f0] sm:$0xff] }
 0x2b8   :  { %2140 = vmatpush.msra.mxu3 %v5366_v12  ;;  %v5415_v12 = vld [vmem:[%s7276_s3 + $0x678] sm:$0xff]  ;;  %2015 = vmatpush.msrb.mxu0 %v5393_v13  ;;  %7445 = vst [vmem:[#allocation41_spill] sm:$0xff] %v5422_v0  ;;  %v5442_v13 = vld [vmem:[%s7276_s3 + $0x7e0] sm:$0xff] }
 0x2b9   :  { %7444 = vst [vmem:[#allocation40_spill] sm:$0xff] %v5415_v12  ;;  %2034 = vmatpush.msrb.mxu1 %v5399_v22  ;;  %2016 = vmatmul.f32.vlgmr.msrb.gmra.mxu0 %v1830_v24  ;;  %v5448_v24 = vld [vmem:[%s7276_s3 + $0x670] sm:$0xff] }
 0x2ba   :  { %2141 = vmatpush.msra.mxu3 %v5386_v6  ;;  %7446 = vst [vmem:[#allocation42_spill] sm:$0xff] %v5430_v20  ;;  %v5435_v6 = vld [vmem:[%s7276_s3 + $0x760] sm:$0xff]  ;;  %2080 = vmatpush.msra.mxu0 %v5415_v12  ;;  %v5471_v12 = vld [vmem:[%s7276_s3 + $0x668] sm:$0xff] }
 0x2bb   :  { %7447 = vst [vmem:[#allocation43_spill] sm:$0xff] %v5435_v6  ;;  %2035 = vmatpush.msrb.mxu1 %v5422_v0  ;;  %2076 = vmatmul.f32.vlgmr.msrb.gmra.mxu3 %v1833_v19  ;;  %v5465_v19 = vld [vmem:[%s7276_s3 + $0x7d8] sm:$0xff]  ;;  %v5758_v0 = vpop.f32.mrf.mxu1 }
 0x2bc   :  { %2142 = vmatpush.msra.mxu3 %v5410_v21  ;;  %7448 = vst [vmem:[#allocation44_spill] sm:$0xff] %v5442_v13  ;;  %2123 = vmatpush.msra.mxu2 %v5435_v6  ;;  %v5460_v21 = vld [vmem:[%s7276_s3 + $0x758] sm:$0xff]  ;;  %v5476_v6 = vld [vmem:[%s7276_s3 + $0x6e8] sm:$0xff] }
 0x2bd   :  { %7449 = vst [vmem:[#allocation45_spill] sm:$0xff] %v5448_v24  ;;  %2100 = vmatpush.msra.mxu1 %v5430_v20  ;;  %2081 = vmatpush.msra.mxu0 %v5448_v24  ;;  %v5483_v20 = vld [vmem:[%s7276_s3 + $0x750] sm:$0xff]  ;;  %v5732_v24 = vpop.f32.mrf.mxu0 }
 0x2be   :  { %7450 = vst [vmem:[#allocation46_spill] sm:$0xff] %v5453_v23  ;;  %2143 = vmatpush.msra.mxu3 %v5442_v13  ;;  %2036 = vmatmul.f32.vlgmr.msrb.gmra.mxu1 %v1831_v27  ;;  %v5488_v27 = vld [vmem:[%s7276_s3 + $0x7d0] sm:$0xff]  ;;  %v5495_v13 = vld [vmem:[%s7276_s3 + $0x660] sm:$0xff]  ;;  %v5780_v22 = vpop.f32.mrf.mxu3 }
 0x2bf   :  { %7451 = vst [vmem:[#allocation47_spill] sm:$0xff] %v5460_v21  ;;  %2101 = vmatpush.msra.mxu1 %v5453_v23  ;;  %2124 = vmatpush.msra.mxu2 %v5460_v21  ;;  %v5500_v23 = vld [vmem:[%s7276_s3 + $0x6e0] sm:$0xff]  ;;  %v5507_v21 = vld [vmem:[%s7276_s3 + $0x748] sm:$0xff] }
 0x2c0   :  { %7452 = vst [vmem:[#allocation48_spill] sm:$0xff] %v5465_v19  ;;  %2144 = vmatpush.msra.mxu3 %v5465_v19  ;;  %2082 = vmatpush.msra.mxu0 %v5471_v12  ;;  %v5512_v19 = vld [vmem:[%s7276_s3 + $0x7c8] sm:$0xff] }
 0x2c1   :  { %7453 = vst [vmem:[#allocation49_spill] sm:$0xff] %v5471_v12  ;;  %2102 = vmatpush.msra.mxu1 %v5476_v6  ;;  %2125 = vmatpush.msra.mxu2 %v5483_v20  ;;  %v5519_v12 = vld [vmem:[%s7276_s3 + $0x658] sm:$0xff] }
 0x2c2   :  { %7454 = vst [vmem:[#allocation50_spill] sm:$0xff] %v5476_v6  ;;  %2145 = vmatpush.msra.mxu3 %v5488_v27  ;;  %v5524_v6 = vld [vmem:[%s7276_s3 + $0x6d8] sm:$0xff]  ;;  %2083 = vmatpush.msra.mxu0 %v5495_v13 }
 0x2c3   :  { %7455 = vst [vmem:[#allocation51_spill] sm:$0xff] %v5483_v20  ;;  %2103 = vmatpush.msra.mxu1 %v5500_v23  ;;  %v5531_v20 = vld [vmem:[%s7276_s3 + $0x740] sm:$0xff]  ;;  %2126 = vmatpush.msra.mxu2 %v5507_v21 }
 0x2c4   :  { %7456 = vst [vmem:[#allocation52_spill] sm:$0xff] %v5488_v27  ;;  %v5536_v27 = vld [vmem:[%s7276_s3 + $0x7c0] sm:$0xff]  ;;  %2146 = vmatpush.msra.mxu3 %v5512_v19  ;;  %2084 = vmatpush.msra.mxu0 %v5519_v12 }
 0x2c5   :  { %7457 = vst [vmem:[#allocation53_spill] sm:$0xff] %v5495_v13  ;;  %v5543_v13 = vld [vmem:[%s7276_s3 + $0x650] sm:$0xff]  ;;  %2104 = vmatpush.msra.mxu1 %v5524_v6  ;;  %2127 = vmatpush.msra.mxu2 %v5531_v20 }
 0x2c6   :  { %7458 = vst [vmem:[#allocation54_spill] sm:$0xff] %v5500_v23  ;;  %v5548_v23 = vld [vmem:[%s7276_s3 + $0x6d0] sm:$0xff]  ;;  %2147 = vmatpush.msra.mxu3 %v5536_v27  ;;  %2085 = vmatpush.msra.mxu0 %v5543_v13 }
 0x2c7   :  { %7459 = vst [vmem:[#allocation55_spill] sm:$0xff] %v5507_v21  ;;  %v5555_v21 = vld [vmem:[%s7276_s3 + $0x738] sm:$0xff]  ;;  %2105 = vmatpush.msra.mxu1 %v5548_v23 }
 0x2c8   :  { %7460 = vst [vmem:[#allocation56_spill] sm:$0xff] %v5512_v19  ;;  %v5560_v19 = vld [vmem:[%s7276_s3 + $0x7b8] sm:$0xff]  ;;  %2128 = vmatpush.msra.mxu2 %v5555_v21 }
 0x2c9   :  { %7461 = vst [vmem:[#allocation57_spill] sm:$0xff] %v5519_v12  ;;  %v5567_v12 = vld [vmem:[%s7276_s3 + $0x648] sm:$0xff]  ;;  %2148 = vmatpush.msra.mxu3 %v5560_v19 }
 0x2ca   :  { %7462 = vst [vmem:[#allocation58_spill] sm:$0xff] %v5524_v6  ;;  %v5572_v6 = vld [vmem:[%s7276_s3 + $0x6c8] sm:$0xff]  ;;  %2086 = vmatpush.msra.mxu0 %v5567_v12 }
 0x2cb   :  { %7463 = vst [vmem:[#allocation59_spill] sm:$0xff] %v5531_v20  ;;  %v5579_v20 = vld [vmem:[%s7276_s3 + $0x730] sm:$0xff]  ;;  %2106 = vmatpush.msra.mxu1 %v5572_v6 }
 0x2cc   :  { %7464 = vst [vmem:[#allocation60_spill] sm:$0xff] %v5536_v27  ;;  %v5584_v27 = vld [vmem:[%s7276_s3 + $0x7b0] sm:$0xff]  ;;  %2129 = vmatpush.msra.mxu2 %v5579_v20 }
 0x2cd   :  { %7465 = vst [vmem:[#allocation61_spill] sm:$0xff] %v5543_v13  ;;  %v5591_v13 = vld [vmem:[%s7276_s3 + $0x640] sm:$0xff]  ;;  %2149 = vmatpush.msra.mxu3 %v5584_v27 }
 0x2ce   :  { %7466 = vst [vmem:[#allocation62_spill] sm:$0xff] %v5548_v23  ;;  %v5596_v23 = vld [vmem:[%s7276_s3 + $0x6c0] sm:$0xff]  ;;  %2087 = vmatpush.msra.mxu0 %v5591_v13 }
 0x2cf   :  { %7467 = vst [vmem:[#allocation63_spill] sm:$0xff] %v5555_v21  ;;  %v5603_v21 = vld [vmem:[%s7276_s3 + $0x728] sm:$0xff]  ;;  %2107 = vmatpush.msra.mxu1 %v5596_v23 }
 0x2d0   :  { %7468 = vst [vmem:[#allocation64_spill] sm:$0xff] %v5560_v19  ;;  %v5608_v19 = vld [vmem:[%s7276_s3 + $0x7a8] sm:$0xff]  ;;  %2130 = vmatpush.msra.mxu2 %v5603_v21 }
 0x2d1   :  { %7469 = vst [vmem:[#allocation65_spill] sm:$0xff] %v5567_v12  ;;  %v5615_v12 = vld [vmem:[%s7276_s3 + $0x638] sm:$0xff]  ;;  %2150 = vmatpush.msra.mxu3 %v5608_v19 }
 0x2d2   :  { %7470 = vst [vmem:[#allocation66_spill] sm:$0xff] %v5572_v6  ;;  %v5620_v6 = vld [vmem:[%s7276_s3 + $0x6b8] sm:$0xff]  ;;  %2088 = vmatpush.msra.mxu0 %v5615_v12 }
 0x2d3   :  { %7471 = vst [vmem:[#allocation67_spill] sm:$0xff] %v5579_v20  ;;  %v5627_v20 = vld [vmem:[%s7276_s3 + $0x720] sm:$0xff]  ;;  %2108 = vmatpush.msra.mxu1 %v5620_v6 }
 0x2d4   :  { %7472 = vst [vmem:[#allocation68_spill] sm:$0xff] %v5584_v27  ;;  %v5632_v27 = vld [vmem:[%s7276_s3 + $0x7a0] sm:$0xff]  ;;  %2131 = vmatpush.msra.mxu2 %v5627_v20 }
 0x2d5   :  { %7473 = vst [vmem:[#allocation69_spill] sm:$0xff] %v5591_v13  ;;  %v5639_v13 = vld [vmem:[%s7276_s3 + $0x630] sm:$0xff]  ;;  %2151 = vmatpush.msra.mxu3 %v5632_v27 }
 0x2d6   :  { %7474 = vst [vmem:[#allocation70_spill] sm:$0xff] %v5596_v23  ;;  %v5644_v23 = vld [vmem:[%s7276_s3 + $0x6b0] sm:$0xff]  ;;  %2089 = vmatpush.msra.mxu0 %v5639_v13 }
 0x2d7   :  { %7475 = vst [vmem:[#allocation71_spill] sm:$0xff] %v5603_v21  ;;  %v5651_v21 = vld [vmem:[%s7276_s3 + $0x718] sm:$0xff]  ;;  %2109 = vmatpush.msra.mxu1 %v5644_v23 }
 0x2d8   :  { %7476 = vst [vmem:[#allocation72_spill] sm:$0xff] %v5608_v19  ;;  %v5656_v19 = vld [vmem:[%s7276_s3 + $0x798] sm:$0xff]  ;;  %2132 = vmatpush.msra.mxu2 %v5651_v21 }
 0x2d9   :  { %7477 = vst [vmem:[#allocation73_spill] sm:$0xff] %v5615_v12  ;;  %v5663_v12 = vld [vmem:[%s7276_s3 + $0x628] sm:$0xff]  ;;  %2152 = vmatpush.msra.mxu3 %v5656_v19 }
 0x2da   :  { %7478 = vst [vmem:[#allocation74_spill] sm:$0xff] %v5620_v6  ;;  %v5668_v6 = vld [vmem:[%s7276_s3 + $0x6a8] sm:$0xff]  ;;  %2090 = vmatpush.msra.mxu0 %v5663_v12 }
 0x2db   :  { %7479 = vst [vmem:[#allocation75_spill] sm:$0xff] %v5627_v20  ;;  %v5675_v20 = vld [vmem:[%s7276_s3 + $0x710] sm:$0xff]  ;;  %2110 = vmatpush.msra.mxu1 %v5668_v6 }
 0x2dc   :  { %7480 = vst [vmem:[#allocation76_spill] sm:$0xff] %v5632_v27  ;;  %v5680_v27 = vld [vmem:[%s7276_s3 + $0x790] sm:$0xff]  ;;  %2133 = vmatpush.msra.mxu2 %v5675_v20 }
 0x2dd   :  { %7481 = vst [vmem:[#allocation77_spill] sm:$0xff] %v5639_v13  ;;  %v5687_v13 = vld [vmem:[%s7276_s3 + $0x620] sm:$0xff]  ;;  %2153 = vmatpush.msra.mxu3 %v5680_v27 }
 0x2de   :  { %7482 = vst [vmem:[#allocation78_spill] sm:$0xff] %v5644_v23  ;;  %v5692_v23 = vld [vmem:[%s7276_s3 + $0x6a0] sm:$0xff]  ;;  %2091 = vmatpush.msra.mxu0 %v5687_v13 }
 0x2df   :  { %7483 = vst [vmem:[#allocation79_spill] sm:$0xff] %v5651_v21  ;;  %v5699_v21 = vld [vmem:[%s7276_s3 + $0x708] sm:$0xff]  ;;  %2111 = vmatpush.msra.mxu1 %v5692_v23 }
 0x2e0   :  { %7484 = vst [vmem:[#allocation80_spill] sm:$0xff] %v5656_v19  ;;  %v5704_v19 = vld [vmem:[%s7276_s3 + $0x788] sm:$0xff]  ;;  %2134 = vmatpush.msra.mxu2 %v5699_v21 }
 0x2e1   :  { %7485 = vst [vmem:[#allocation81_spill] sm:$0xff] %v5663_v12  ;;  %v5711_v12 = vld [vmem:[%s7276_s3 + $0x618] sm:$0xff]  ;;  %2154 = vmatpush.msra.mxu3 %v5704_v19 }
 0x2e2   :  { %7486 = vst [vmem:[#allocation82_spill] sm:$0xff] %v5668_v6  ;;  %v5716_v6 = vld [vmem:[%s7276_s3 + $0x698] sm:$0xff]  ;;  %2092 = vmatpush.msra.mxu0 %v5711_v12 }
 0x2e3   :  { %7487 = vst [vmem:[#allocation83_spill] sm:$0xff] %v5675_v20  ;;  %v5723_v20 = vld [vmem:[%s7276_s3 + $0x700] sm:$0xff]  ;;  %2112 = vmatpush.msra.mxu1 %v5716_v6 }
 0x2e4   :  { %7488 = vst [vmem:[#allocation84_spill] sm:$0xff] %v5680_v27  ;;  %v5728_v27 = vld [vmem:[%s7276_s3 + $0x780] sm:$0xff]  ;;  %2135 = vmatpush.msra.mxu2 %v5723_v20 }
 0x2e5   :  { %7489 = vst [vmem:[#allocation85_spill] sm:$0xff] %v5687_v13  ;;  %v5744_v13 = vld [vmem:[%s7276_s3 + $0x690] sm:$0xff]  ;;  %2155 = vmatpush.msra.mxu3 %v5728_v27 }
 0x2e6   :  { %7490 = vst [vmem:[#allocation86_spill] sm:$0xff] %v5692_v23  ;;  %v5739_v23 = vld [vmem:[%s7276_s3 + $0x610] sm:$0xff]  ;;  %2113 = vmatpush.msra.mxu1 %v5744_v13 }
 0x2e7   :  { %7491 = vst [vmem:[#allocation87_spill] sm:$0xff] %v5699_v21  ;;  %v3425_v21 = vld [vmem:[%s7276_s3 + $0x78] sm:$0xff]  ;;  %2093 = vmatpush.msra.mxu0 %v5739_v23 }
 0x2e8   :  { %7492 = vst [vmem:[#allocation88_spill] sm:$0xff] %v5704_v19  ;;  %v5748_v19 = vpop.f32.mrf.mxu2  ;;  %2200 = vmatpush.msrb.mxu2 %v3425_v21  ;;  %v3427_v21 = vld [vmem:[%s7276_s3 + $0x70] sm:$0xff] }
 0x2e9   :  { %7493 = vst [vmem:[#allocation89_spill] sm:$0xff] %v5711_v12  ;;  %v1836_v12 = vmul.f32 %v5044_v1, %v5732_v24 }
 0x2ea   :  { %7494 = vst [vmem:[#allocation90_spill] sm:$0xff] %v5716_v6  ;;  %v3426_v6 = vld [vmem:[%s7276_s3 + $0xf8] sm:$0xff]  ;;  %2201 = vmatpush.msrb.mxu2 %v3427_v21  ;;  %v5794_v21 = vld [vmem:[%s7276_s3 + $0x680] sm:$0xff] }
 0x2eb   :  { %7495 = vst [vmem:[#allocation91_spill] sm:$0xff] %v5723_v20  ;;  %2220 = vmatpush.msrb.mxu3 %v3426_v6  ;;  %v5768_v20 = vld [vmem:[%s7276_s3 + $0x688] sm:$0xff]  ;;  %v3428_v6 = vld [vmem:[%s7276_s3 + $0xf0] sm:$0xff]  ;;  %2136 = vmatmul.f32.vlgmr.msra.gmra.mxu2 %v1836_v12  ;;  %v5813_v12 = vld [vmem:[%s7276_s3 + $0x8f8] sm:$0xff] }
 0x2ec   :  { %7496 = vst [vmem:[#allocation92_spill] sm:$0xff] %v5728_v27  ;;  %v5763_v27 = vld [vmem:[%s7276_s3 + $0x608] sm:$0xff]  ;;  %2114 = vmatpush.msra.mxu1 %v5768_v20 }
 0x2ed   :  { %7497 = vst [vmem:[#allocation93_spill] sm:$0xff] %v5732_v24  ;;  %2221 = vmatpush.msrb.mxu3 %v3428_v6  ;;  %v1834_v24 = vmul.f32 %v5044_v1, %v5748_v19  ;;  %2094 = vmatpush.msra.mxu0 %v5763_v27  ;;  %v3429_v6 = vld [vmem:[%s7276_s3 + $0xe8] sm:$0xff] }
 0x2ee   :  { %7498 = vst [vmem:[#allocation94_spill] sm:$0xff] %v5739_v23  ;;  %v5785_v23 = vld [vmem:[%s7276_s3 + $0x600] sm:$0xff]  ;;  %2115 = vmatpush.msra.mxu1 %v5794_v21 }
 0x2ef   :  { %7499 = vst [vmem:[#allocation95_spill] sm:$0xff] %v5744_v13  ;;  %v1837_v13 = vmul.f32 %v5079_v35, %v5758_v0  ;;  %2222 = vmatpush.msrb.mxu3 %v3429_v6  ;;  %2095 = vmatpush.msra.mxu0 %v5785_v23  ;;  %v5825_v6 = vld [vmem:[%s7276_s3 + $0x8f0] sm:$0xff] }
 0x2f0   :  { %7500 = vst [vmem:[#allocation96_spill] sm:$0xff] %v5748_v19  ;;  %v5802_v19 = vld [vmem:[%s7276_s3 + $0x878] sm:$0xff]  ;;  %2096 = vmatmul.f32.vlgmr.msra.gmra.mxu0 %v1834_v24  ;;  %2180 = vmatpush.msrb.mxu1 %v5813_v12  ;;  %v5837_v24 = vld [vmem:[%s7276_s3 + $0x868] sm:$0xff] }
 0x2f1   :  { %7501 = vst [vmem:[#allocation97_spill] sm:$0xff] %v5758_v0  ;;  %v3430_v0 = vld [vmem:[%s7276_s3 + $0x68] sm:$0xff]  ;;  %2156 = vmatmul.f32.vlgmr.msra.gmra.mxu3 %v1837_v13  ;;  %2160 = vmatpush.msrb.mxu0 %v5802_v19  ;;  %v3432_v13 = vld [vmem:[%s7276_s3 + $0xe0] sm:$0xff] }
 0x2f2   :  { %7502 = vst [vmem:[#allocation98_spill] sm:$0xff] %v5768_v20  ;;  %2202 = vmatpush.msrb.mxu2 %v3430_v0  ;;  %v1835_v20 = vmul.f32 %v5079_v35, %v5780_v22  ;;  %v5820_v0 = vld [vmem:[%s7276_s3 + $0x870] sm:$0xff]  ;;  %2223 = vmatpush.msrb.mxu3 %v3432_v13  ;;  %v5855_v13 = vld [vmem:[%s7276_s3 + $0x860] sm:$0xff] }
 0x2f3   :  { %7503 = vst [vmem:[#allocation99_spill] sm:$0xff] %v5780_v22  ;;  %v3431_v22 = vld [vmem:[%s7276_s3 + $0x60] sm:$0xff]  ;;  %2161 = vmatpush.msrb.mxu0 %v5820_v0  ;;  %2181 = vmatpush.msrb.mxu1 %v5825_v6 }
 0x2f4   :  { %7504 = vst [vmem:[#allocation100_spill] sm:$0xff] %v5813_v12  ;;  %2203 = vmatpush.msrb.mxu2 %v3431_v22  ;;  %2116 = vmatmul.f32.vlgmr.msra.gmra.mxu1 %v1835_v20  ;;  %v5842_v12 = vld [vmem:[%s7276_s3 + $0x8e8] sm:$0xff]  ;;  %v3433_v22 = vld [vmem:[%s7276_s3 + $0x58] sm:$0xff] }
 0x2f5   :  { %7505 = vst [vmem:[#allocation101_spill] sm:$0xff] %v5820_v0  ;;  %v3434_v20 = vld [vmem:[%s7276_s3 + $0xd8] sm:$0xff]  ;;  %v5860_v0 = vld [vmem:[%s7276_s3 + $0x8e0] sm:$0xff]  ;;  %2162 = vmatpush.msrb.mxu0 %v5837_v24  ;;  %2182 = vmatpush.msrb.mxu1 %v5842_v12 }
 0x2f6   :  { %7506 = vst [vmem:[#allocation102_spill] sm:$0xff] %v5825_v6  ;;  %2204 = vmatpush.msrb.mxu2 %v3433_v22  ;;  %2224 = vmatpush.msrb.mxu3 %v3434_v20  ;;  %v3435_v22 = vld [vmem:[%s7276_s3 + $0x50] sm:$0xff]  ;;  %v5873_v6 = vld [vmem:[%s7276_s3 + $0x858] sm:$0xff] }
 0x2f7   :  { %7507 = vst [vmem:[#allocation103_spill] sm:$0xff] %v5837_v24  ;;  %v3436_v20 = vld [vmem:[%s7276_s3 + $0xd0] sm:$0xff]  ;;  %v5878_v24 = vld [vmem:[%s7276_s3 + $0x8d8] sm:$0xff]  ;;  %2163 = vmatpush.msrb.mxu0 %v5855_v13  ;;  %2183 = vmatpush.msrb.mxu1 %v5860_v0 }
 0x2f8   :  { %7508 = vst [vmem:[#allocation104_spill] sm:$0xff] %v5842_v12  ;;  %2205 = vmatpush.msrb.mxu2 %v3435_v22  ;;  %2225 = vmatpush.msrb.mxu3 %v3436_v20  ;;  %v3437_v22 = vld [vmem:[%s7276_s3 + $0x48] sm:$0xff]  ;;  %v5891_v12 = vld [vmem:[%s7276_s3 + $0x850] sm:$0xff] }
 0x2f9   :  { %7509 = vst [vmem:[#allocation105_spill] sm:$0xff] %v5855_v13  ;;  %v3438_v20 = vld [vmem:[%s7276_s3 + $0xc8] sm:$0xff]  ;;  %v5896_v13 = vld [vmem:[%s7276_s3 + $0x8d0] sm:$0xff]  ;;  %2164 = vmatpush.msrb.mxu0 %v5873_v6  ;;  %2184 = vmatpush.msrb.mxu1 %v5878_v24 }
 0x2fa   :  { %7510 = vst [vmem:[#allocation106_spill] sm:$0xff] %v5860_v0  ;;  %2206 = vmatpush.msrb.mxu2 %v3437_v22  ;;  %2226 = vmatpush.msrb.mxu3 %v3438_v20  ;;  %v3439_v22 = vld [vmem:[%s7276_s3 + $0x40] sm:$0xff]  ;;  %v5909_v0 = vld [vmem:[%s7276_s3 + $0x848] sm:$0xff] }
 0x2fb   :  { %7511 = vst [vmem:[#allocation107_spill] sm:$0xff] %v5873_v6  ;;  %v3440_v20 = vld [vmem:[%s7276_s3 + $0xc0] sm:$0xff]  ;;  %v5914_v6 = vld [vmem:[%s7276_s3 + $0x8c8] sm:$0xff]  ;;  %2165 = vmatpush.msrb.mxu0 %v5891_v12  ;;  %2185 = vmatpush.msrb.mxu1 %v5896_v13 }
 0x2fc   :  { %7512 = vst [vmem:[#allocation108_spill] sm:$0xff] %v5878_v24  ;;  %2207 = vmatpush.msrb.mxu2 %v3439_v22  ;;  %2227 = vmatpush.msrb.mxu3 %v3440_v20  ;;  %v3441_v22 = vld [vmem:[%s7276_s3 + $0x38] sm:$0xff]  ;;  %v5927_v24 = vld [vmem:[%s7276_s3 + $0x840] sm:$0xff] }
 0x2fd   :  { %7513 = vst [vmem:[#allocation109_spill] sm:$0xff] %v5891_v12  ;;  %v3442_v20 = vld [vmem:[%s7276_s3 + $0xb8] sm:$0xff]  ;;  %v5932_v12 = vld [vmem:[%s7276_s3 + $0x8c0] sm:$0xff]  ;;  %2166 = vmatpush.msrb.mxu0 %v5909_v0  ;;  %2186 = vmatpush.msrb.mxu1 %v5914_v6 }
 0x2fe   :  { %7514 = vst [vmem:[#allocation110_spill] sm:$0xff] %v5896_v13  ;;  %2208 = vmatpush.msrb.mxu2 %v3441_v22  ;;  %2228 = vmatpush.msrb.mxu3 %v3442_v20  ;;  %v3443_v22 = vld [vmem:[%s7276_s3 + $0x30] sm:$0xff]  ;;  %v5945_v13 = vld [vmem:[%s7276_s3 + $0x838] sm:$0xff] }
 0x2ff   :  { %7515 = vst [vmem:[#allocation111_spill] sm:$0xff] %v5909_v0  ;;  %v3444_v20 = vld [vmem:[%s7276_s3 + $0xb0] sm:$0xff]  ;;  %v5950_v0 = vld [vmem:[%s7276_s3 + $0x8b8] sm:$0xff]  ;;  %2167 = vmatpush.msrb.mxu0 %v5927_v24  ;;  %2187 = vmatpush.msrb.mxu1 %v5932_v12 }
 0x300   :  { %7516 = vst [vmem:[#allocation112_spill] sm:$0xff] %v5914_v6  ;;  %2209 = vmatpush.msrb.mxu2 %v3443_v22  ;;  %2229 = vmatpush.msrb.mxu3 %v3444_v20  ;;  %v3445_v22 = vld [vmem:[%s7276_s3 + $0x28] sm:$0xff]  ;;  %v5963_v6 = vld [vmem:[%s7276_s3 + $0x830] sm:$0xff] }
 0x301   :  { %7517 = vst [vmem:[#allocation113_spill] sm:$0xff] %v5927_v24  ;;  %v3446_v20 = vld [vmem:[%s7276_s3 + $0xa8] sm:$0xff]  ;;  %v5968_v24 = vld [vmem:[%s7276_s3 + $0x8b0] sm:$0xff]  ;;  %2168 = vmatpush.msrb.mxu0 %v5945_v13  ;;  %2188 = vmatpush.msrb.mxu1 %v5950_v0 }
 0x302   :  { %7518 = vst [vmem:[#allocation114_spill] sm:$0xff] %v5932_v12  ;;  %2210 = vmatpush.msrb.mxu2 %v3445_v22  ;;  %2230 = vmatpush.msrb.mxu3 %v3446_v20  ;;  %v3447_v22 = vld [vmem:[%s7276_s3 + $0x20] sm:$0xff]  ;;  %v5981_v12 = vld [vmem:[%s7276_s3 + $0x828] sm:$0xff] }
 0x303   :  { %7519 = vst [vmem:[#allocation115_spill] sm:$0xff] %v5945_v13  ;;  %v3448_v20 = vld [vmem:[%s7276_s3 + $0xa0] sm:$0xff]  ;;  %v5986_v13 = vld [vmem:[%s7276_s3 + $0x8a8] sm:$0xff]  ;;  %2169 = vmatpush.msrb.mxu0 %v5963_v6  ;;  %2189 = vmatpush.msrb.mxu1 %v5968_v24 }
 0x304   :  { %7520 = vst [vmem:[#allocation116_spill] sm:$0xff] %v5950_v0  ;;  %2211 = vmatpush.msrb.mxu2 %v3447_v22  ;;  %2231 = vmatpush.msrb.mxu3 %v3448_v20  ;;  %v3449_v22 = vld [vmem:[%s7276_s3 + $0x18] sm:$0xff]  ;;  %v5999_v0 = vld [vmem:[%s7276_s3 + $0x820] sm:$0xff] }
 0x305   :  { %7521 = vst [vmem:[#allocation117_spill] sm:$0xff] %v5963_v6  ;;  %v3450_v20 = vld [vmem:[%s7276_s3 + $0x98] sm:$0xff]  ;;  %v6004_v6 = vld [vmem:[%s7276_s3 + $0x8a0] sm:$0xff]  ;;  %2170 = vmatpush.msrb.mxu0 %v5981_v12  ;;  %2190 = vmatpush.msrb.mxu1 %v5986_v13 }
 0x306   :  { %7522 = vst [vmem:[#allocation118_spill] sm:$0xff] %v5968_v24  ;;  %2212 = vmatpush.msrb.mxu2 %v3449_v22  ;;  %2232 = vmatpush.msrb.mxu3 %v3450_v20  ;;  %v3451_v22 = vld [vmem:[%s7276_s3 + $0x10] sm:$0xff]  ;;  %v6017_v24 = vld [vmem:[%s7276_s3 + $0x818] sm:$0xff] }
 0x307   :  { %7523 = vst [vmem:[#allocation119_spill] sm:$0xff] %v5981_v12  ;;  %v3452_v20 = vld [vmem:[%s7276_s3 + $0x90] sm:$0xff]  ;;  %v6022_v12 = vld [vmem:[%s7276_s3 + $0x898] sm:$0xff]  ;;  %2171 = vmatpush.msrb.mxu0 %v5999_v0  ;;  %2191 = vmatpush.msrb.mxu1 %v6004_v6 }
 0x308   :  { %7524 = vst [vmem:[#allocation120_spill] sm:$0xff] %v5986_v13  ;;  %2213 = vmatpush.msrb.mxu2 %v3451_v22  ;;  %2233 = vmatpush.msrb.mxu3 %v3452_v20  ;;  %v3453_v22 = vld [vmem:[%s7276_s3 + $0x8] sm:$0xff] }
 0x309   :  { %7525 = vst [vmem:[#allocation121_spill] sm:$0xff] %v5999_v0  ;;  %v3454_v20 = vld [vmem:[%s7276_s3 + $0x88] sm:$0xff]  ;;  %2172 = vmatpush.msrb.mxu0 %v6017_v24  ;;  %2192 = vmatpush.msrb.mxu1 %v6022_v12  ;;  %v3455_v0 = vld [vmem:[%s7276_s3] sm:$0xff] }
 0x30a   :  { %7526 = vst [vmem:[#allocation122_spill] sm:$0xff] %v6004_v6  ;;  %2214 = vmatpush.msrb.mxu2 %v3453_v22  ;;  %2234 = vmatpush.msrb.mxu3 %v3454_v20  ;;  %v3456_v6 = vld [vmem:[%s7276_s3 + $0x80] sm:$0xff]  ;;  %v6043_v22 = vld [vmem:[%s7276_s3 + $0x810] sm:$0xff] }
 0x30b   :  { %7527 = vst [vmem:[#allocation123_spill] sm:$0xff] %v6017_v24  ;;  %v6048_v20 = vld [vmem:[%s7276_s3 + $0x890] sm:$0xff]  ;;  %v6063_v24 = vld [vmem:[%s7276_s3 + $0x808] sm:$0xff]  ;;  %2173 = vmatpush.msrb.mxu0 %v6043_v22 }
 0x30c   :  { %7528 = vst [vmem:[#allocation124_spill] sm:$0xff] %v6022_v12  ;;  %2215 = vmatpush.msrb.mxu2 %v3455_v0  ;;  %2235 = vmatpush.msrb.mxu3 %v3456_v6  ;;  %v6052_v0 = vpop.f32.mrf.mxu2  ;;  %v3457_v6 = vld [vmem:[%s7276_s3 + $0x278] sm:$0xff] }
 0x30d   :  { %7529 = vst [vmem:[#allocation125_spill] sm:$0xff] %v6043_v22  ;;  %2216 = vmatmul.f32.vlgmr.msrb.gmra.mxu2 %v4486_v8  ;;  %2236 = vmatmul.f32.vlgmr.msrb.gmra.mxu3 %v4520_v16  ;;  %v3458_v12 = vld [vmem:[%s7276_s3 + $0x2f8] sm:$0xff]  ;;  %v6068_v8 = vld [vmem:[%s7276_s3 + $0x888] sm:$0xff]  ;;  %v6072_v16 = vpop.f32.mrf.mxu3  ;;  %v1838_v13 = vmul.f32 %v5044_v1, %v6052_v0  ;;  %v6085_v22 = vld [vmem:[%s7276_s3 + $0x800] sm:$0xff] }
 0x30e   :  { %7530 = vst [vmem:[#allocation126_spill] sm:$0xff] %v6048_v20  ;;  %2280 = vmatpush.msra.mxu2 %v3457_v6  ;;  %2300 = vmatpush.msra.mxu3 %v3458_v12  ;;  %v3459_v12 = vld [vmem:[%s7276_s3 + $0x270] sm:$0xff]  ;;  %v3462_v1 = vld [vmem:[%s7276_s3 + $0x2e8] sm:$0xff] }
 0x30f   :  { %7531 = vst [vmem:[#allocation127_spill] sm:$0xff] %v6052_v0  ;;  %2193 = vmatpush.msrb.mxu1 %v6048_v20  ;;  %v3460_v6 = vld [vmem:[%s7276_s3 + $0x2f0] sm:$0xff]  ;;  %v6090_v20 = vld [vmem:[%s7276_s3 + $0x880] sm:$0xff]  ;;  %2174 = vmatpush.msrb.mxu0 %v6063_v24  ;;  %v3463_v0 = vld [vmem:[%s7276_s3 + $0x1f8] sm:$0xff] }
 0x310   :  { %2281 = vmatpush.msra.mxu2 %v3459_v12  ;;  %2301 = vmatpush.msra.mxu3 %v3460_v6  ;;  %v3461_v12 = vld [vmem:[%s7276_s3 + $0x268] sm:$0xff]  ;;  %v1839_v6 = vmul.f32 %v5079_v35, %v6072_v16  ;;  %v3466_v35 = vld [vmem:[%s7276_s3 + $0x2e0] sm:$0xff] }
 0x311   :  { %2194 = vmatpush.msrb.mxu1 %v6068_v8  ;;  %2175 = vmatpush.msrb.mxu0 %v6085_v22 }
 0x312   :  { %2282 = vmatpush.msra.mxu2 %v3461_v12  ;;  %2302 = vmatpush.msra.mxu3 %v3462_v1  ;;  %v3464_v12 = vld [vmem:[%s7276_s3 + $0x178] sm:$0xff]  ;;  %v3465_v1 = vld [vmem:[%s7276_s3 + $0x260] sm:$0xff] }
 0x313   :  { %2195 = vmatpush.msrb.mxu1 %v6090_v20  ;;  %2176 = vmatmul.f32.vlgmr.msrb.gmra.mxu0 %v1838_v13  ;;  %v3467_v13 = vld [vmem:[%s7276_s3 + $0x170] sm:$0xff] }
 0x314   :  { %2240 = vmatpush.msra.mxu0 %v3464_v12  ;;  %2283 = vmatpush.msra.mxu2 %v3465_v1  ;;  %v3469_v12 = vld [vmem:[%s7276_s3 + $0x258] sm:$0xff] }
 0x315   :  { %2260 = vmatpush.msra.mxu1 %v3463_v0  ;;  %2303 = vmatpush.msra.mxu3 %v3466_v35  ;;  %v3468_v0 = vld [vmem:[%s7276_s3 + $0x1f0] sm:$0xff]  ;;  %v3470_v1 = vld [vmem:[%s7276_s3 + $0x2d8] sm:$0xff]  ;;  %v3472_v35 = vld [vmem:[%s7276_s3 + $0x1e8] sm:$0xff] }
 0x316   :  { %2196 = vmatmul.f32.vlgmr.msrb.gmra.mxu1 %v1839_v6  ;;  %2241 = vmatpush.msra.mxu0 %v3467_v13  ;;  %v3471_v6 = vld [vmem:[%s7276_s3 + $0x168] sm:$0xff]  ;;  %v3473_v13 = vld [vmem:[%s7276_s3 + $0x250] sm:$0xff] }
 0x317   :  { %2261 = vmatpush.msra.mxu1 %v3468_v0  ;;  %2284 = vmatpush.msra.mxu2 %v3469_v12  ;;  %v3474_v0 = vld [vmem:[%s7276_s3 + $0x2d0] sm:$0xff]  ;;  %v3475_v12 = vld [vmem:[%s7276_s3 + $0x160] sm:$0xff] }
 0x318   :  { %2304 = vmatpush.msra.mxu3 %v3470_v1  ;;  %2242 = vmatpush.msra.mxu0 %v3471_v6  ;;  %v3476_v1 = vld [vmem:[%s7276_s3 + $0x1e0] sm:$0xff]  ;;  %v3477_v6 = vld [vmem:[%s7276_s3 + $0x248] sm:$0xff] }
 0x319   :  { %2262 = vmatpush.msra.mxu1 %v3472_v35  ;;  %2285 = vmatpush.msra.mxu2 %v3473_v13  ;;  %v3478_v35 = vld [vmem:[%s7276_s3 + $0x2c8] sm:$0xff]  ;;  %v3479_v13 = vld [vmem:[%s7276_s3 + $0x158] sm:$0xff] }
 0x31a   :  { %2305 = vmatpush.msra.mxu3 %v3474_v0  ;;  %2243 = vmatpush.msra.mxu0 %v3475_v12  ;;  %v3480_v0 = vld [vmem:[%s7276_s3 + $0x1d8] sm:$0xff]  ;;  %v3481_v12 = vld [vmem:[%s7276_s3 + $0x150] sm:$0xff] }
 0x31b   :  { %2263 = vmatpush.msra.mxu1 %v3476_v1  ;;  %2286 = vmatpush.msra.mxu2 %v3477_v6  ;;  %v3482_v1 = vld [vmem:[%s7276_s3 + $0x1d0] sm:$0xff]  ;;  %v1857_v6 = vpop.f32.mrf.mxu0 }
 0x31c   :  { %2306 = vmatpush.msra.mxu3 %v3478_v35  ;;  %2244 = vmatpush.msra.mxu0 %v3479_v13  ;;  %v1877_v35 = vpop.f32.mrf.mxu1  ;;  %v1897_v13 = vpop.f32.mrf.mxu2 }
 0x31d   :  { %2264 = vmatpush.msra.mxu1 %v3480_v0  ;;  %2287 = vmatpush.msra.mxu2 %v4880_v28  ;;  %v3483_v28 = vld [vmem:[%s7276_s3 + $0x148] sm:$0xff]  ;;  %v3497_v0 = vld [vmem:[%s7276_s3 + $0x110] sm:$0xff] }
 0x31e   :  { %2307 = vmatpush.msra.mxu3 %v4885_v29  ;;  %2245 = vmatpush.msra.mxu0 %v3481_v12  ;;  %v3484_v29 = vld [vmem:[%s7276_s3 + $0x1c8] sm:$0xff] }
 0x31f   :  { %2265 = vmatpush.msra.mxu1 %v3482_v1  ;;  %2288 = vmatpush.msra.mxu2 %v4896_v33  ;;  %v3485_v33 = vld [vmem:[%s7276_s3 + $0x140] sm:$0xff] }
 0x320   :  { %2308 = vmatpush.msra.mxu3 %v4901_v34  ;;  %2246 = vmatpush.msra.mxu0 %v3483_v28  ;;  %v3486_v34 = vld [vmem:[%s7276_s3 + $0x1c0] sm:$0xff] }
 0x321   :  { %2266 = vmatpush.msra.mxu1 %v3484_v29  ;;  %2289 = vmatpush.msra.mxu2 %v4914_v10  ;;  %v3487_v10 = vld [vmem:[%s7276_s3 + $0x138] sm:$0xff] }
 0x322   :  { %2309 = vmatpush.msra.mxu3 %v4919_v38  ;;  %2247 = vmatpush.msra.mxu0 %v3485_v33  ;;  %v3488_v38 = vld [vmem:[%s7276_s3 + $0x1b8] sm:$0xff]  ;;  %v3506_v33 = vld [vmem:[%s7276_s3 + $0x3f0] sm:$0xff] }
 0x323   :  { %2267 = vmatpush.msra.mxu1 %v3486_v34  ;;  %2290 = vmatpush.msra.mxu2 %v4932_v52  ;;  %v3489_v52 = vld [vmem:[%s7276_s3 + $0x130] sm:$0xff] }
 0x324   :  { %2310 = vmatpush.msra.mxu3 %v4937_v41  ;;  %2248 = vmatpush.msra.mxu0 %v3487_v10  ;;  %v3490_v41 = vld [vmem:[%s7276_s3 + $0x1b0] sm:$0xff]  ;;  %v1957_v1 = vpop.f32.mrf.mxu1  ;;  %v1977_v28 = vpop.f32.mrf.mxu2 }
 0x325   :  { %2268 = vmatpush.msra.mxu1 %v3488_v38  ;;  %2291 = vmatpush.msra.mxu2 %v4970_v49  ;;  %v3491_v49 = vld [vmem:[%s7276_s3 + $0x128] sm:$0xff] }
 0x326   :  { %2311 = vmatpush.msra.mxu3 %v4975_v50  ;;  %2249 = vmatpush.msra.mxu0 %v3489_v52  ;;  %v3492_v50 = vld [vmem:[%s7276_s3 + $0x1a8] sm:$0xff]  ;;  %v7532_v52 = vld [vmem:[#allocation27_spill] sm:$0xff] }
 0x327   :  { %2269 = vmatpush.msra.mxu1 %v3490_v41  ;;  %2292 = vmatpush.msra.mxu2 %v4988_v55  ;;  %v3493_v55 = vld [vmem:[%s7276_s3 + $0x120] sm:$0xff] }
 0x328   :  { %2312 = vmatpush.msra.mxu3 %v4993_v56  ;;  %2250 = vmatpush.msra.mxu0 %v3491_v49  ;;  %v3494_v56 = vld [vmem:[%s7276_s3 + $0x1a0] sm:$0xff]  ;;  %v7534_v49 = vld [vmem:[#allocation37_spill] sm:$0xff] }
 0x329   :  { %2270 = vmatpush.msra.mxu1 %v3492_v50  ;;  %2293 = vmatpush.msra.mxu2 %v5006_v59  ;;  %v3495_v59 = vld [vmem:[%s7276_s3 + $0x118] sm:$0xff] }
 0x32a   :  { %2313 = vmatpush.msra.mxu3 %v5011_v60  ;;  %2251 = vmatpush.msra.mxu0 %v3493_v55  ;;  %v3496_v60 = vld [vmem:[%s7276_s3 + $0x198] sm:$0xff] }
 0x32b   :  { %2271 = vmatpush.msra.mxu1 %v3494_v56  ;;  %2294 = vmatpush.msra.mxu2 %v5018_v61  ;;  %v1878_v61 = vadd.f32 %v1877_v35, %v1857_v6  ;;  %v7533_v6 = vld [vmem:[#allocation29_spill] sm:$0xff]  ;;  %v3527_v50 = vld [vmem:[%s7276_s3 + $0x318] sm:$0xff] }
 0x32c   :  { %2314 = vmatpush.msra.mxu3 %v5023_v62  ;;  %2252 = vmatpush.msra.mxu0 %v3495_v59  ;;  %v1917_v62 = vpop.f32.mrf.mxu3  ;;  %v7535_v59 = vld [vmem:[#allocation36_spill] sm:$0xff] }
 0x32d   :  { %2272 = vmatpush.msra.mxu1 %v3496_v60  ;;  %2295 = vmatpush.msra.mxu2 %v5030_v63  ;;  %v3498_v63 = vld [vmem:[%s7276_s3 + $0x190] sm:$0xff] }
 0x32e   :  { %2315 = vmatpush.msra.mxu3 %v5035_v37  ;;  %2296 = vmatmul.f32.vlgmr.msra.gmra.mxu2 %v4496_v11  ;;  %v1898_v37 = vadd.f32 %v1897_v13, %v1878_v61  ;;  %v1937_v11 = vpop.f32.mrf.mxu0  ;;  %v7536_v60 = vld [vmem:[#allocation41_spill] sm:$0xff]  ;;  %v7537_v13 = vld [vmem:[#allocation6_spill] sm:$0xff] }
 0x32f   :  { %2316 = vmatmul.f32.vlgmr.msra.gmra.mxu3 %v4524_v18  ;;  %2360 = vmatpush.msrb.mxu2 %v5064_v15  ;;  %v3499_v18 = vld [vmem:[%s7276_s3 + $0x108] sm:$0xff]  ;;  %v7538_v61 = vld [vmem:[#allocation9_spill] sm:$0xff] }
 0x330   :  { %2380 = vmatpush.msrb.mxu3 %v5130_v58  ;;  %2253 = vmatpush.msra.mxu0 %v3497_v0  ;;  %v3500_v15 = vld [vmem:[%s7276_s3 + $0x188] sm:$0xff]  ;;  %v1918_v58 = vadd.f32 %v1917_v62, %v1898_v37  ;;  %v7540_v0 = vld [vmem:[#allocation42_spill] sm:$0xff]  ;;  %v3529_v37 = vld [vmem:[%s7276_s3 + $0x310] sm:$0xff] }
 0x331   :  { %2273 = vmatpush.msra.mxu1 %v3498_v63  ;;  %2361 = vmatpush.msrb.mxu2 %v5074_v32  ;;  %v3501_v32 = vld [vmem:[%s7276_s3 + $0x100] sm:$0xff]  ;;  %v7539_v62 = vld [vmem:[#allocation40_spill] sm:$0xff] }
 0x332   :  { %2381 = vmatpush.msrb.mxu3 %v5144_v5  ;;  %2254 = vmatpush.msra.mxu0 %v3499_v18  ;;  %v3502_v5 = vld [vmem:[%s7276_s3 + $0x180] sm:$0xff]  ;;  %v1938_v12 = vadd.f32 %v1937_v11, %v1918_v58  ;;  %v3530_v11 = vld [vmem:[%s7276_s3 + $0x390] sm:$0xff]  ;;  %v7542_v58 = vld [vmem:[#allocation46_spill] sm:$0xff] }
 0x333   :  { %2274 = vmatpush.msra.mxu1 %v3500_v15  ;;  %2362 = vmatpush.msrb.mxu2 %v5093_v53  ;;  %v3503_v53 = vld [vmem:[%s7276_s3 + $0x378] sm:$0xff]  ;;  %v7541_v15 = vld [vmem:[#allocation45_spill] sm:$0xff] }
 0x334   :  { %2382 = vmatpush.msrb.mxu3 %v5163_v42  ;;  %2255 = vmatpush.msra.mxu0 %v3501_v32  ;;  %v3504_v42 = vld [vmem:[%s7276_s3 + $0x3f8] sm:$0xff]  ;;  %v1958_v29 = vadd.f32 %v1957_v1, %v1938_v12  ;;  %v3532_v12 = vld [vmem:[%s7276_s3 + $0x388] sm:$0xff]  ;;  %v7543_v1 = vld [vmem:[#allocation49_spill] sm:$0xff] }
 0x335   :  { %2275 = vmatpush.msra.mxu1 %v3502_v5  ;;  %2256 = vmatmul.f32.vlgmr.msra.gmra.mxu0 %v4489_v9  ;;  %v1997_v9 = vpop.f32.mrf.mxu3  ;;  %v3531_v5 = vld [vmem:[%s7276_s3 + $0x308] sm:$0xff] }
 0x336   :  { %2276 = vmatmul.f32.vlgmr.msra.gmra.mxu1 %v4522_v17  ;;  %2320 = vmatpush.msrb.mxu0 %v3503_v53  ;;  %v3505_v17 = vld [vmem:[%s7276_s3 + $0x370] sm:$0xff]  ;;  %v1978_v34 = vadd.f32 %v1977_v28, %v1958_v29  ;;  %v2017_v38 = vpop.f32.mrf.mxu0  ;;  %v7544_v28 = vld [vmem:[#allocation50_spill] sm:$0xff]  ;;  %v3533_v53 = vld [vmem:[%s7276_s3 + $0x300] sm:$0xff] }
 0x337   :  { %2340 = vmatpush.msrb.mxu1 %v3504_v42  ;;  %2363 = vmatpush.msrb.mxu2 %v5109_v46  ;;  %v3507_v46 = vld [vmem:[%s7276_s3 + $0x368] sm:$0xff]  ;;  %v3534_v42 = vld [vmem:[%s7276_s3 + $0x380] sm:$0xff]  ;;  %v7545_v29 = vld [vmem:[#allocation5_spill] sm:$0xff] }
 0x338   :  { %2383 = vmatpush.msrb.mxu3 %v5180_v48  ;;  %2321 = vmatpush.msrb.mxu0 %v3505_v17  ;;  %v3508_v48 = vld [vmem:[%s7276_s3 + $0x3e8] sm:$0xff]  ;;  %v1998_v10 = vadd.f32 %v1997_v9, %v1978_v34  ;;  %v3535_v17 = vld [vmem:[%s7276_s3 + $0x578] sm:$0xff]  ;;  %v7547_v34 = vld [vmem:[#allocation53_spill] sm:$0xff] }
 0x339   :  { %2341 = vmatpush.msrb.mxu1 %v3506_v33  ;;  %2364 = vmatpush.msrb.mxu2 %v5123_v54  ;;  %v3509_v54 = vld [vmem:[%s7276_s3 + $0x360] sm:$0xff]  ;;  %v2057_v56 = vpop.f32.mrf.mxu2  ;;  %v7546_v9 = vld [vmem:[#allocation8_spill] sm:$0xff]  ;;  %v3536_v33 = vld [vmem:[%s7276_s3 + $0x5f8] sm:$0xff] }
 0x33a   :  { %2384 = vmatpush.msrb.mxu3 %v5198_v36  ;;  %2322 = vmatpush.msrb.mxu0 %v3507_v46  ;;  %v3510_v36 = vld [vmem:[%s7276_s3 + $0x3e0] sm:$0xff]  ;;  %v2018_v41 = vadd.f32 %v2017_v38, %v1998_v10  ;;  %v7548_v46 = vld [vmem:[#allocation54_spill] sm:$0xff]  ;;  %v3538_v10 = vld [vmem:[%s7276_s3 + $0x5f0] sm:$0xff] }
 0x33b   :  { %2342 = vmatpush.msrb.mxu1 %v3508_v48  ;;  %2365 = vmatpush.msrb.mxu2 %v5172_v45  ;;  %v3511_v45 = vld [vmem:[%s7276_s3 + $0x358] sm:$0xff]  ;;  %v2037_v55 = vpop.f32.mrf.mxu1  ;;  %v3537_v48 = vld [vmem:[%s7276_s3 + $0x570] sm:$0xff] }
 0x33c   :  { %2385 = vmatpush.msrb.mxu3 %v5216_v3  ;;  %2323 = vmatpush.msrb.mxu0 %v3509_v54  ;;  %v3512_v3 = vld [vmem:[%s7276_s3 + $0x3d8] sm:$0xff]  ;;  %v2038_v35 = vadd.f32 %v2037_v55, %v2018_v41  ;;  %v7549_v54 = vld [vmem:[#allocation57_spill] sm:$0xff]  ;;  %v3547_v41 = vld [vmem:[%s7276_s3 + $0x548] sm:$0xff] }
 0x33d   :  { %2343 = vmatpush.msrb.mxu1 %v3510_v36  ;;  %2366 = vmatpush.msrb.mxu2 %v5191_v4  ;;  %v3513_v4 = vld [vmem:[%s7276_s3 + $0x350] sm:$0xff]  ;;  %v7550_v36 = vld [vmem:[#allocation58_spill] sm:$0xff] }
 0x33e   :  { %2386 = vmatpush.msrb.mxu3 %v5234_v43  ;;  %2324 = vmatpush.msrb.mxu0 %v3511_v45  ;;  %v3514_v43 = vld [vmem:[%s7276_s3 + $0x3d0] sm:$0xff]  ;;  %v2058_v63 = vadd.f32 %v2057_v56, %v2038_v35  ;;  %v2077_v18 = vpop.f32.mrf.mxu3  ;;  %v3539_v45 = vld [vmem:[%s7276_s3 + $0x568] sm:$0xff]  ;;  %v7562_v55 = vld [vmem:[#allocation82_spill] sm:$0xff] }
 0x33f   :  { %2344 = vmatpush.msrb.mxu1 %v3512_v3  ;;  %2367 = vmatpush.msrb.mxu2 %v5208_v40  ;;  %v3515_v40 = vld [vmem:[%s7276_s3 + $0x348] sm:$0xff]  ;;  %v7557_v38 = vld [vmem:[#allocation73_spill] sm:$0xff]  ;;  %v3551_v56 = vld [vmem:[%s7276_s3 + $0x538] sm:$0xff] }
 0x340   :  { %2387 = vmatpush.msrb.mxu3 %v5252_v31  ;;  %2325 = vmatpush.msrb.mxu0 %v3513_v4  ;;  %v3516_v31 = vld [vmem:[%s7276_s3 + $0x3c8] sm:$0xff]  ;;  %v6368_v32 = vadd.f32 %v2077_v18, %v2058_v63  ;;  %v7551_v4 = vld [vmem:[#allocation61_spill] sm:$0xff]  ;;  %v7564_v35 = vld [vmem:[#allocation86_spill] sm:$0xff] }
 0x341   :  { %2345 = vmatpush.msrb.mxu1 %v3514_v43  ;;  %2368 = vmatpush.msrb.mxu2 %v5226_v57  ;;  %v3517_v57 = vld [vmem:[%s7276_s3 + $0x340] sm:$0xff]  ;;  %v3540_v3 = vld [vmem:[%s7276_s3 + $0x5e8] sm:$0xff]  ;;  %v7552_v43 = vld [vmem:[#allocation62_spill] sm:$0xff] }
 0x342   :  { %2388 = vmatpush.msrb.mxu3 %v5270_v51  ;;  %2326 = vmatpush.msrb.mxu0 %v3515_v40  ;;  %v3518_v51 = vld [vmem:[%s7276_s3 + $0x3c0] sm:$0xff]  ;;  %v3555_v63 = vld [vmem:[%s7276_s3 + $0x528] sm:$0xff] }
 0x343   :  { %2346 = vmatpush.msrb.mxu1 %v3516_v31  ;;  %2369 = vmatpush.msrb.mxu2 %v5244_v39  ;;  %v3519_v39 = vld [vmem:[%s7276_s3 + $0x338] sm:$0xff]  ;;  %v3541_v40 = vld [vmem:[%s7276_s3 + $0x560] sm:$0xff] }
 0x344   :  { %2389 = vmatpush.msrb.mxu3 %v5288_v25  ;;  %2327 = vmatpush.msrb.mxu0 %v3517_v57  ;;  %v3520_v25 = vld [vmem:[%s7276_s3 + $0x3b8] sm:$0xff]  ;;  %v3542_v31 = vld [vmem:[%s7276_s3 + $0x5e0] sm:$0xff]  ;;  %v7553_v57 = vld [vmem:[#allocation65_spill] sm:$0xff] }
 0x345   :  { %2347 = vmatpush.msrb.mxu1 %v3518_v51  ;;  %2370 = vmatpush.msrb.mxu2 %v5262_v47  ;;  %v3521_v47 = vld [vmem:[%s7276_s3 + $0x330] sm:$0xff]  ;;  %v7554_v51 = vld [vmem:[#allocation66_spill] sm:$0xff]  ;;  %v7568_v18 = vld [vmem:[#allocation95_spill] sm:$0xff] }
 0x346   :  { %2390 = vmatpush.msrb.mxu3 %v5308_v30  ;;  %2328 = vmatpush.msrb.mxu0 %v3519_v39  ;;  %v3522_v30 = vld [vmem:[%s7276_s3 + $0x3b0] sm:$0xff]  ;;  %v3543_v39 = vld [vmem:[%s7276_s3 + $0x558] sm:$0xff] }
 0x347   :  { %2348 = vmatpush.msrb.mxu1 %v3520_v25  ;;  %2371 = vmatpush.msrb.mxu2 %v5280_v2  ;;  %v3523_v2 = vld [vmem:[%s7276_s3 + $0x328] sm:$0xff]  ;;  %v3544_v25 = vld [vmem:[%s7276_s3 + $0x5d8] sm:$0xff] }
 0x348   :  { %2391 = vmatpush.msrb.mxu3 %v5329_v14  ;;  %2329 = vmatpush.msrb.mxu0 %v3521_v47  ;;  %v3524_v14 = vld [vmem:[%s7276_s3 + $0x3a8] sm:$0xff]  ;;  %v7555_v47 = vld [vmem:[#allocation69_spill] sm:$0xff] }
 0x349   :  { %2349 = vmatpush.msrb.mxu1 %v3522_v30  ;;  %2372 = vmatpush.msrb.mxu2 %v5300_v44  ;;  %v3526_v44 = vld [vmem:[%s7276_s3 + $0x3a0] sm:$0xff]  ;;  %v7556_v30 = vld [vmem:[#allocation70_spill] sm:$0xff] }
 0x34a   :  { %2392 = vmatpush.msrb.mxu3 %v5349_v26  ;;  %2330 = vmatpush.msrb.mxu0 %v3523_v2  ;;  %v3525_v26 = vld [vmem:[%s7276_s3 + $0x320] sm:$0xff]  ;;  %v3545_v2 = vld [vmem:[%s7276_s3 + $0x550] sm:$0xff] }
 0x34b   :  { %2350 = vmatpush.msrb.mxu1 %v3524_v14  ;;  %2373 = vmatpush.msrb.mxu2 %v7532_v52  ;;  %v3546_v14 = vld [vmem:[%s7276_s3 + $0x5d0] sm:$0xff]  ;;  %v7558_v52 = vld [vmem:[#allocation74_spill] sm:$0xff] }
 0x34c   :  { %2393 = vmatpush.msrb.mxu3 %v5371_v7  ;;  %2331 = vmatpush.msrb.mxu0 %v3525_v26  ;;  %v3528_v7 = vld [vmem:[%s7276_s3 + $0x398] sm:$0xff]  ;;  %v3548_v26 = vld [vmem:[%s7276_s3 + $0x5c8] sm:$0xff] }
 0x34d   :  { %2351 = vmatpush.msrb.mxu1 %v3526_v44  ;;  %2374 = vmatpush.msrb.mxu2 %v7533_v6  ;;  %v7559_v44 = vld [vmem:[#allocation77_spill] sm:$0xff]  ;;  %v7560_v6 = vld [vmem:[#allocation78_spill] sm:$0xff] }
 0x34e   :  { %2394 = vmatpush.msrb.mxu3 %v7534_v49  ;;  %2332 = vmatpush.msrb.mxu0 %v3527_v50  ;;  %v3549_v49 = vld [vmem:[%s7276_s3 + $0x540] sm:$0xff] }
 0x34f   :  { %2352 = vmatpush.msrb.mxu1 %v3528_v7  ;;  %2375 = vmatpush.msrb.mxu2 %v7535_v59  ;;  %v3550_v50 = vld [vmem:[%s7276_s3 + $0x5c0] sm:$0xff]  ;;  %v7561_v7 = vld [vmem:[#allocation81_spill] sm:$0xff]  ;;  %v3552_v59 = vld [vmem:[%s7276_s3 + $0x5b8] sm:$0xff] }
 0x350   :  { %2395 = vmatpush.msrb.mxu3 %v7536_v60  ;;  %2376 = vmatmul.f32.vlgmr.msrb.gmra.mxu2 %v7537_v13  ;;  %v7563_v60 = vld [vmem:[#allocation85_spill] sm:$0xff] }
 0x351   :  { %2396 = vmatmul.f32.vlgmr.msrb.gmra.mxu3 %v7538_v61  ;;  %2440 = vmatpush.msra.mxu2 %v7539_v62  ;;  %v3553_v13 = vld [vmem:[%s7276_s3 + $0x530] sm:$0xff] }
 0x352   :  { %2460 = vmatpush.msra.mxu3 %v7540_v0  ;;  %2333 = vmatpush.msrb.mxu0 %v3529_v37  ;;  %v3554_v61 = vld [vmem:[%s7276_s3 + $0x5b0] sm:$0xff]  ;;  %v7566_v0 = vld [vmem:[#allocation90_spill] sm:$0xff]  ;;  %v3556_v37 = vld [vmem:[%s7276_s3 + $0x5a8] sm:$0xff] }
 0x353   :  { %2353 = vmatpush.msrb.mxu1 %v3530_v11  ;;  %2441 = vmatpush.msra.mxu2 %v7541_v15  ;;  %v7565_v62 = vld [vmem:[#allocation89_spill] sm:$0xff]  ;;  %v7567_v11 = vld [vmem:[#allocation94_spill] sm:$0xff] }
 0x354   :  { %2461 = vmatpush.msra.mxu3 %v7542_v58  ;;  %2334 = vmatpush.msrb.mxu0 %v3531_v5  ;;  %v3557_v58 = vld [vmem:[%s7276_s3 + $0x520] sm:$0xff] }
 0x355   :  { %2354 = vmatpush.msrb.mxu1 %v3532_v12  ;;  %2442 = vmatpush.msra.mxu2 %v7543_v1  ;;  %v3558_v5 = vld [vmem:[%s7276_s3 + $0x5a0] sm:$0xff]  ;;  %v7569_v1 = vld [vmem:[#allocation98_spill] sm:$0xff] }
 0x356   :  { %2462 = vmatpush.msra.mxu3 %v7544_v28  ;;  %2335 = vmatpush.msrb.mxu0 %v3533_v53  ;;  %v3559_v28 = vld [vmem:[%s7276_s3 + $0x518] sm:$0xff]  ;;  %v7570_v53 = vld [vmem:[#allocation25_spill] sm:$0xff] }
 0x357   :  { %2355 = vmatpush.msrb.mxu1 %v3534_v42  ;;  %2336 = vmatmul.f32.vlgmr.msrb.gmra.mxu0 %v7545_v29 }
 0x358   :  { %2356 = vmatmul.f32.vlgmr.msrb.gmra.mxu1 %v7546_v9  ;;  %2400 = vmatpush.msra.mxu0 %v3535_v17  ;;  %v7571_v17 = vld [vmem:[#allocation11_spill] sm:$0xff] }
 0x359   :  { %2420 = vmatpush.msra.mxu1 %v3536_v33  ;;  %2443 = vmatpush.msra.mxu2 %v7547_v34  ;;  %v3560_v34 = vld [vmem:[%s7276_s3 + $0x510] sm:$0xff] }
 0x35a   :  { %2463 = vmatpush.msra.mxu3 %v7548_v46  ;;  %2401 = vmatpush.msra.mxu0 %v3537_v48  ;;  %v7574_v46 = vld [vmem:[#allocation101_spill] sm:$0xff]  ;;  %v7575_v48 = vld [vmem:[#allocation102_spill] sm:$0xff] }
 0x35b   :  { %2421 = vmatpush.msra.mxu1 %v3538_v10  ;;  %2444 = vmatpush.msra.mxu2 %v7549_v54  ;;  %v7576_v54 = vld [vmem:[#allocation28_spill] sm:$0xff] }
 0x35c   :  { %2464 = vmatpush.msra.mxu3 %v7550_v36  ;;  %2402 = vmatpush.msra.mxu0 %v3539_v45  ;;  %v7577_v36 = vld [vmem:[#allocation103_spill] sm:$0xff]  ;;  %v7578_v45 = vld [vmem:[#allocation104_spill] sm:$0xff] }
 0x35d   :  { %2422 = vmatpush.msra.mxu1 %v3540_v3  ;;  %2445 = vmatpush.msra.mxu2 %v7551_v4  ;;  %v3563_v3 = vld [vmem:[%s7276_s3 + $0x500] sm:$0xff]  ;;  %v7579_v4 = vld [vmem:[#allocation30_spill] sm:$0xff] }
 0x35e   :  { %2465 = vmatpush.msra.mxu3 %v7552_v43  ;;  %2403 = vmatpush.msra.mxu0 %v3541_v40  ;;  %v7580_v43 = vld [vmem:[#allocation7_spill] sm:$0xff]  ;;  %v7581_v40 = vld [vmem:[#allocation10_spill] sm:$0xff] }
 0x35f   :  { %2423 = vmatpush.msra.mxu1 %v3542_v31  ;;  %2446 = vmatpush.msra.mxu2 %v7553_v57  ;;  %v3564_v31 = vld [vmem:[%s7276_s3 + $0x778] sm:$0xff]  ;;  %v7582_v57 = vld [vmem:[#allocation32_spill] sm:$0xff] }
 0x360   :  { %2466 = vmatpush.msra.mxu3 %v7554_v51  ;;  %2404 = vmatpush.msra.mxu0 %v3543_v39  ;;  %v7583_v51 = vld [vmem:[#allocation105_spill] sm:$0xff]  ;;  %v7584_v39 = vld [vmem:[#allocation106_spill] sm:$0xff] }
 0x361   :  { %2424 = vmatpush.msra.mxu1 %v3544_v25  ;;  %2447 = vmatpush.msra.mxu2 %v7555_v47  ;;  %v3565_v25 = vld [vmem:[%s7276_s3 + $0x770] sm:$0xff]  ;;  %v7585_v47 = vld [vmem:[#allocation35_spill] sm:$0xff] }
 0x362   :  { %2467 = vmatpush.msra.mxu3 %v7556_v30  ;;  %2405 = vmatpush.msra.mxu0 %v3545_v2  ;;  %v7586_v30 = vld [vmem:[#allocation107_spill] sm:$0xff]  ;;  %v7587_v2 = vld [vmem:[#allocation108_spill] sm:$0xff] }
 0x363   :  { %2425 = vmatpush.msra.mxu1 %v3546_v14  ;;  %2448 = vmatpush.msra.mxu2 %v7557_v38  ;;  %v7588_v14 = vld [vmem:[#allocation34_spill] sm:$0xff]  ;;  %v7589_v38 = vld [vmem:[#allocation39_spill] sm:$0xff] }
 0x364   :  { %2468 = vmatpush.msra.mxu3 %v7558_v52  ;;  %2406 = vmatpush.msra.mxu0 %v3547_v41  ;;  %v7590_v52 = vld [vmem:[#allocation109_spill] sm:$0xff]  ;;  %v7591_v41 = vld [vmem:[#allocation110_spill] sm:$0xff] }
 0x365   :  { %2426 = vmatpush.msra.mxu1 %v3548_v26  ;;  %2449 = vmatpush.msra.mxu2 %v7559_v44  ;;  %v7592_v26 = vld [vmem:[#allocation43_spill] sm:$0xff]  ;;  %v7593_v44 = vld [vmem:[#allocation44_spill] sm:$0xff] }
 0x366   :  { %2469 = vmatpush.msra.mxu3 %v7560_v6  ;;  %2407 = vmatpush.msra.mxu0 %v3549_v49  ;;  %v7594_v6 = vld [vmem:[#allocation111_spill] sm:$0xff]  ;;  %v7595_v49 = vld [vmem:[#allocation112_spill] sm:$0xff] }
 0x367   :  { %2427 = vmatpush.msra.mxu1 %v3550_v50  ;;  %2450 = vmatpush.msra.mxu2 %v7561_v7  ;;  %v7596_v50 = vld [vmem:[#allocation47_spill] sm:$0xff]  ;;  %v7597_v7 = vld [vmem:[#allocation48_spill] sm:$0xff] }
 0x368   :  { %2470 = vmatpush.msra.mxu3 %v7562_v55  ;;  %2408 = vmatpush.msra.mxu0 %v3551_v56  ;;  %v7598_v55 = vld [vmem:[#allocation113_spill] sm:$0xff]  ;;  %v7599_v56 = vld [vmem:[#allocation114_spill] sm:$0xff] }
 0x369   :  { %2428 = vmatpush.msra.mxu1 %v3552_v59  ;;  %2451 = vmatpush.msra.mxu2 %v7563_v60  ;;  %v7600_v59 = vld [vmem:[#allocation51_spill] sm:$0xff]  ;;  %v7601_v60 = vld [vmem:[#allocation52_spill] sm:$0xff] }
 0x36a   :  { %2471 = vmatpush.msra.mxu3 %v7564_v35  ;;  %2409 = vmatpush.msra.mxu0 %v3553_v13  ;;  %v7602_v35 = vld [vmem:[#allocation115_spill] sm:$0xff]  ;;  %v7603_v13 = vld [vmem:[#allocation116_spill] sm:$0xff] }
 0x36b   :  { %2429 = vmatpush.msra.mxu1 %v3554_v61  ;;  %2452 = vmatpush.msra.mxu2 %v7565_v62  ;;  %v7604_v61 = vld [vmem:[#allocation55_spill] sm:$0xff]  ;;  %v7605_v62 = vld [vmem:[#allocation56_spill] sm:$0xff] }
 0x36c   :  { %2472 = vmatpush.msra.mxu3 %v7566_v0  ;;  %2410 = vmatpush.msra.mxu0 %v3555_v63  ;;  %v7606_v0 = vld [vmem:[#allocation117_spill] sm:$0xff]  ;;  %v7607_v63 = vld [vmem:[#allocation118_spill] sm:$0xff] }
 0x36d   :  { %2430 = vmatpush.msra.mxu1 %v3556_v37  ;;  %2453 = vmatpush.msra.mxu2 %v7567_v11  ;;  %v2097_v15 = vpop.f32.mrf.mxu0  ;;  %v7608_v37 = vld [vmem:[#allocation59_spill] sm:$0xff]  ;;  %v7609_v11 = vld [vmem:[#allocation60_spill] sm:$0xff] }
 0x36e   :  { %2473 = vmatpush.msra.mxu3 %v7568_v18  ;;  %2411 = vmatpush.msra.mxu0 %v3557_v58  ;;  %v2098_v12 = vadd.f32 %v2097_v15, %v6368_v32  ;;  %v2137_v9 = vpop.f32.mrf.mxu2  ;;  %v7572_v32 = vld [vmem:[#allocation13_spill] sm:$0xff]  ;;  %v7610_v18 = vld [vmem:[#allocation119_spill] sm:$0xff]  ;;  %v7611_v15 = vld [vmem:[#allocation120_spill] sm:$0xff] }
 0x36f   :  { %2431 = vmatpush.msra.mxu1 %v3558_v5  ;;  %2454 = vmatpush.msra.mxu2 %v5763_v27  ;;  %v7573_v27 = vld [vmem:[#allocation100_spill] sm:$0xff]  ;;  %v7612_v58 = vld [vmem:[#allocation63_spill] sm:$0xff] }
 0x370   :  { %2474 = vmatpush.msra.mxu3 %v7569_v1  ;;  %2412 = vmatpush.msra.mxu0 %v3559_v28  ;;  %v7613_v5 = vld [vmem:[#allocation64_spill] sm:$0xff]  ;;  %v7615_v1 = vld [vmem:[#allocation122_spill] sm:$0xff]  ;;  %v7616_v28 = vld [vmem:[#allocation67_spill] sm:$0xff] }
 0x371   :  { %2432 = vmatpush.msra.mxu1 %v7570_v53  ;;  %v2117_v42 = vpop.f32.mrf.mxu1  ;;  %2455 = vmatpush.msra.mxu2 %v5785_v23  ;;  %v3561_v23 = vld [vmem:[%s7276_s3 + $0x590] sm:$0xff]  ;;  %v7617_v53 = vld [vmem:[#allocation68_spill] sm:$0xff] }
 0x372   :  { %2475 = vmatpush.msra.mxu3 %v5794_v21  ;;  %v2118_v29 = vadd.f32 %v2117_v42, %v2098_v12  ;;  %2456 = vmatmul.f32.vlgmr.msra.gmra.mxu2 %v7571_v17  ;;  %v7614_v12 = vld [vmem:[#allocation121_spill] sm:$0xff]  ;;  %v7618_v42 = vld [vmem:[#allocation123_spill] sm:$0xff]  ;;  %v7621_v17 = vld [vmem:[#allocation72_spill] sm:$0xff] }
 0x373   :  { %2476 = vmatmul.f32.vlgmr.msra.gmra.mxu3 %v7572_v32  ;;  %2520 = vmatpush.msrb.mxu2 %v5802_v19  ;;  %v3562_v19 = vld [vmem:[%s7276_s3 + $0x508] sm:$0xff]  ;;  %v7622_v32 = vld [vmem:[#allocation125_spill] sm:$0xff] }
 0x374   :  { %2540 = vmatpush.msrb.mxu3 %v7573_v27  ;;  %v2138_v33 = vadd.f32 %v2137_v9, %v2118_v29  ;;  %2413 = vmatpush.msra.mxu0 %v3560_v34  ;;  %v2157_v21 = vpop.f32.mrf.mxu3  ;;  %v7619_v29 = vld [vmem:[#allocation124_spill] sm:$0xff]  ;;  %v7620_v9 = vld [vmem:[#allocation71_spill] sm:$0xff]  ;;  %v7623_v27 = vld [vmem:[#allocation126_spill] sm:$0xff] }
 0x375   :  { %2433 = vmatpush.msra.mxu1 %v3561_v23  ;;  %2521 = vmatpush.msrb.mxu2 %v7574_v46  ;;  %v7625_v34 = vld [vmem:[#allocation76_spill] sm:$0xff]  ;;  %v7626_v46 = vld [vmem:[#allocation79_spill] sm:$0xff] }
 0x376   :  { %2541 = vmatpush.msrb.mxu3 %v7575_v48  ;;  %v2158_v10 = vadd.f32 %v2157_v21, %v2138_v33  ;;  %2414 = vmatpush.msra.mxu0 %v3562_v19  ;;  %v7624_v33 = vld [vmem:[#allocation75_spill] sm:$0xff]  ;;  %v7627_v48 = vld [vmem:[#allocation80_spill] sm:$0xff] }
 0x377   :  { %2434 = vmatpush.msra.mxu1 %v7576_v54  ;;  %2522 = vmatpush.msrb.mxu2 %v7577_v36  ;;  %v7628_v36 = vld [vmem:[#allocation15_spill] sm:$0xff] }
 0x378   :  { %2542 = vmatpush.msrb.mxu3 %v7578_v45  ;;  %2415 = vmatpush.msra.mxu0 %v3563_v3  ;;  %v7629_v45 = vld [vmem:[#allocation16_spill] sm:$0xff]  ;;  %v7630_v3 = vld [vmem:[#allocation83_spill] sm:$0xff] }
 0x379   :  { %2435 = vmatpush.msra.mxu1 %v7579_v4  ;;  %2416 = vmatmul.f32.vlgmr.msra.gmra.mxu0 %v7580_v43  ;;  %v7634_v4 = vld [vmem:[#allocation91_spill] sm:$0xff]  ;;  %v7635_v43 = vld [vmem:[#allocation92_spill] sm:$0xff] }
 0x37a   :  { %2436 = vmatmul.f32.vlgmr.msra.gmra.mxu1 %v7581_v40  ;;  %2480 = vmatpush.msrb.mxu0 %v3564_v31 }
 0x37b   :  { %2500 = vmatpush.msrb.mxu1 %v7582_v57  ;;  %2523 = vmatpush.msrb.mxu2 %v7583_v51 }
 0x37c   :  { %2543 = vmatpush.msrb.mxu3 %v7584_v39  ;;  %2481 = vmatpush.msrb.mxu0 %v3565_v25 }
 0x37d   :  { %2501 = vmatpush.msrb.mxu1 %v7585_v47  ;;  %2524 = vmatpush.msrb.mxu2 %v7586_v30 }
 0x37e   :  { %2544 = vmatpush.msrb.mxu3 %v7587_v2  ;;  %2482 = vmatpush.msrb.mxu0 %v7588_v14 }
 0x37f   :  { %2502 = vmatpush.msrb.mxu1 %v7589_v38  ;;  %2525 = vmatpush.msrb.mxu2 %v7590_v52 }
 0x380   :  { %2545 = vmatpush.msrb.mxu3 %v7591_v41  ;;  %2483 = vmatpush.msrb.mxu0 %v7592_v26 }
 0x381   :  { %2503 = vmatpush.msrb.mxu1 %v7593_v44  ;;  %2526 = vmatpush.msrb.mxu2 %v7594_v6 }
 0x382   :  { %2546 = vmatpush.msrb.mxu3 %v7595_v49  ;;  %2484 = vmatpush.msrb.mxu0 %v7596_v50 }
 0x383   :  { %2504 = vmatpush.msrb.mxu1 %v7597_v7  ;;  %2527 = vmatpush.msrb.mxu2 %v7598_v55 }
 0x384   :  { %2547 = vmatpush.msrb.mxu3 %v7599_v56  ;;  %2485 = vmatpush.msrb.mxu0 %v7600_v59 }
 0x385   :  { %2505 = vmatpush.msrb.mxu1 %v7601_v60  ;;  %2528 = vmatpush.msrb.mxu2 %v7602_v35 }
 0x386   :  { %2548 = vmatpush.msrb.mxu3 %v7603_v13  ;;  %2486 = vmatpush.msrb.mxu0 %v7604_v61 }
 0x387   :  { %2506 = vmatpush.msrb.mxu1 %v7605_v62  ;;  %2529 = vmatpush.msrb.mxu2 %v7606_v0 }
 0x388   :  { %2549 = vmatpush.msrb.mxu3 %v7607_v63  ;;  %2487 = vmatpush.msrb.mxu0 %v7608_v37 }
 0x389   :  { %2507 = vmatpush.msrb.mxu1 %v7609_v11  ;;  %2530 = vmatpush.msrb.mxu2 %v7610_v18 }
 0x38a   :  { %2550 = vmatpush.msrb.mxu3 %v7611_v15  ;;  %2488 = vmatpush.msrb.mxu0 %v7612_v58 }
 0x38b   :  { %2508 = vmatpush.msrb.mxu1 %v7613_v5  ;;  %2531 = vmatpush.msrb.mxu2 %v7614_v12 }
 0x38c   :  { %2551 = vmatpush.msrb.mxu3 %v7615_v1  ;;  %2489 = vmatpush.msrb.mxu0 %v7616_v28  ;;  %v3566_v28 = vld [vmem:[%s7278_s5] sm:$0xff] }
 0x38d   :  { %2509 = vmatpush.msrb.mxu1 %v7617_v53  ;;  %2532 = vmatpush.msrb.mxu2 %v7618_v42  ;;  %v2590_v53 = vld [vmem:[%s7281_s8] sm:$0xff]  ;;  %v3737_v42 = vmov 0  }
 0x38e   :  { %2552 = vmatpush.msrb.mxu3 %v7619_v29  ;;  %2490 = vmatpush.msrb.mxu0 %v7620_v9  ;;  %v3348_v29 = vld [vmem:[%s7281_s8 + $0x8] sm:$0xff] }
 0x38f   :  { %2510 = vmatpush.msrb.mxu1 %v7621_v17  ;;  %2533 = vmatpush.msrb.mxu2 %v7622_v32  ;;  %v2585_v32 = vld [vmem:[%s7280_s7] sm:$0xff] }
 0x390   :  { %2553 = vmatpush.msrb.mxu3 %v7623_v27  ;;  %2491 = vmatpush.msrb.mxu0 %v7624_v33  ;;  %v2177_v23 = vpop.f32.mrf.mxu0  ;;  %v2217_v40 = vpop.f32.mrf.mxu2 }
 0x391   :  { %2511 = vmatpush.msrb.mxu1 %v7625_v34  ;;  %2534 = vmatpush.msrb.mxu2 %v6063_v24  ;;  %v2178_v21 = vadd.f32 %v2177_v23, %v2158_v10  ;;  %v7631_v24 = vld [vmem:[#allocation84_spill] sm:$0xff]  ;;  %v2218_v31 = vadd.f32 1e-12, %v2217_v40  ;;  %v2237_v57 = vpop.f32.mrf.mxu3 }
 0x392   :  { %2554 = vmatpush.msrb.mxu3 %v6068_v8  ;;  %2492 = vmatpush.msrb.mxu0 %v7626_v46  ;;  %v7632_v8 = vld [vmem:[#allocation87_spill] sm:$0xff]  ;;  %v7633_v10 = vld [vmem:[#allocation88_spill] sm:$0xff] }
 0x393   :  { %2512 = vmatpush.msrb.mxu1 %v7627_v48  ;;  %v2197_v19 = vpop.f32.mrf.mxu1  ;;  %2535 = vmatpush.msrb.mxu2 %v6085_v22  ;;  %v7636_v22 = vld [vmem:[#allocation12_spill] sm:$0xff]  ;;  %v2238_v39 = vadd.f32 %v2237_v57, %v2218_v31  ;;  %v2669_v31 = vld [vmem:[%s7279_s6 + $0x20] sm:$0xff] }
 0x394   :  { %2555 = vmatpush.msrb.mxu3 %v6090_v20  ;;  %v2198_v54 = vadd.f32 %v2197_v19, %v2178_v21  ;;  %2536 = vmatmul.f32.vlgmr.msrb.gmra.mxu2 %v7628_v36  ;;  %v7637_v20 = vld [vmem:[#allocation14_spill] sm:$0xff]  ;;  %v2679_v19 = vld [vmem:[%s7279_s6 + $0x70] sm:$0xff]  ;;  %v2677_v36 = vld [vmem:[%s7279_s6 + $0x60] sm:$0xff] }
 0x395   :  { %2556 = vmatmul.f32.vlgmr.msrb.gmra.mxu3 %v7629_v45  ;;  %2493 = vmatpush.msrb.mxu0 %v7630_v3  ;;  %v2678_v45 = vld [vmem:[%s7279_s6 + $0x68] sm:$0xff]  ;;  %v2675_v3 = vld [vmem:[%s7279_s6 + $0x50] sm:$0xff] }
 0x396   :  { %2513 = vmatpush.msrb.mxu1 %v7631_v24  ;;  %3375 = vset.pattern.permute.xlu0 %v3737_v42  ;;  %v2676_v24 = vld [vmem:[%s7279_s6 + $0x58] sm:$0xff]  ;;  %v2670_v57 = vld [vmem:[%s7279_s6 + $0x28] sm:$0xff] }
 0x397   :  { %2494 = vmatpush.msrb.mxu0 %v7632_v8  ;;  %3376 = vset.pattern.permute.xlu1 %v3737_v42  ;;  %v2673_v8 = vld [vmem:[%s7279_s6 + $0x40] sm:$0xff]  ;;  %v2733_v42 = vld [vmem:[%s7282_s9 + $0x38] sm:$0xff] }
 0x398   :  { %2514 = vmatpush.msrb.mxu1 %v7633_v10  ;;  %2597 = vperm.xlu0 %3375, %v2590_v53   ;;  %v2674_v10 = vld [vmem:[%s7279_s6 + $0x48] sm:$0xff] }
 0x399   :  { %2495 = vmatpush.msrb.mxu0 %v7634_v4  ;;  %2692 = vmatpush.msra.mxu2 %v2679_v19 }
 0x39a   :  { %2515 = vmatpush.msrb.mxu1 %v7635_v43  ;;  %2496 = vmatmul.f32.vlgmr.msrb.gmra.mxu0 %v7636_v22  ;;  %v2671_v22 = vld [vmem:[%s7279_s6 + $0x30] sm:$0xff] }
 0x39b   :  { %2516 = vmatmul.f32.vlgmr.msrb.gmra.mxu1 %v7637_v20  ;;  %2693 = vmatpush.msra.mxu2 %v2677_v36  ;;  %v2672_v20 = vld [vmem:[%s7279_s6 + $0x38] sm:$0xff]  ;;  %v2746_v36 = vld [vmem:[%s7282_s9 + $0xa0] sm:$0xff] }
 0x39d   :  { %2694 = vmatpush.msra.mxu2 %v2675_v3  ;;  %v2729_v3 = vld [vmem:[%s7282_s9 + $0x18] sm:$0xff] }
 0x39f   :  { %2695 = vmatpush.msra.mxu2 %v2673_v8 }
 0x3a0   :  { %2801 = vperm.xlu0 %3375, %v3348_v29   ;;  %v2749_v29 = vld [vmem:[%s7282_s9 + $0xb8] sm:$0xff] }
 0x3a1   :  { %2696 = vmatpush.msra.mxu2 %v2671_v22 }
 0x3a3   :  { %2697 = vmatpush.msra.mxu2 %v2669_v31 }
 0x3b1   :  { %v2297_v2 = vpop.f32.mrf.mxu2 }
 0x3b2   :  { %v2257_v51 = vpop.f32.mrf.mxu0  ;;  %v2317_v38 = vpop.f32.mrf.mxu3 }
 0x3b3   :  { %v2258_v25 = vadd.f32 %v2257_v51, %v2238_v39  ;;  %v2277_v47 = vpop.f32.mrf.mxu1 }
 0x3b5   :  { %v2278_v30 = vadd.f32 %v2277_v47, %v2258_v25  ;;  %v2667_v47 = vld [vmem:[%s7279_s6 + $0x10] sm:$0xff] }
 0x3b6   :  { %2698 = vmatpush.msra.mxu2 %v2667_v47  ;;  %v3569_v47 = vld [vmem:[%s7275_s2 + $0x370] sm:$0xff] }
 0x3b7   :  { %v2298_v14 = vadd.f32 %v2297_v2, %v2278_v30  ;;  %v2668_v30 = vld [vmem:[%s7279_s6 + $0x18] sm:$0xff]  ;;  %v2665_v2 = vld [vmem:[%s7279_s6] sm:$0xff] }
 0x3b8   :  { %2699 = vmatpush.msra.mxu2 %v2665_v2  ;;  %v3571_v2 = vld [vmem:[%s7275_s2 + $0x2e0] sm:$0xff] }
 0x3b9   :  { %v2318_v41 = vadd.f32 %v2317_v38, %v2298_v14  ;;  %v2666_v14 = vld [vmem:[%s7279_s6 + $0x8] sm:$0xff] }
 0x3d3   :  { %v2377_v49 = vpop.f32.mrf.mxu2 }
 0x3d4   :  { %v2337_v52 = vpop.f32.mrf.mxu0  ;;  %v2397_v7 = vpop.f32.mrf.mxu3 }
 0x3d5   :  { %v2338_v26 = vadd.f32 %v2337_v52, %v2318_v41  ;;  %v2357_v44 = vpop.f32.mrf.mxu1  ;;  %v2741_v41 = vld [vmem:[%s7282_s9 + $0x78] sm:$0xff] }
 0x3d7   :  { %v2358_v6 = vadd.f32 %v2357_v44, %v2338_v26  ;;  %v2757_v26 = vld [vmem:[%s7282_s9 + $0xf8] sm:$0xff]  ;;  %v2740_v44 = vld [vmem:[%s7282_s9 + $0x70] sm:$0xff] }
 0x3d9   :  { %v2378_v50 = vadd.f32 %v2377_v49, %v2358_v6  ;;  %v2756_v49 = vld [vmem:[%s7282_s9 + $0xf0] sm:$0xff] }
 0x3db   :  { %v2398_v56 = vadd.f32 %v2397_v7, %v2378_v50 }
 0x3f5   :  { %v2457_v13 = vpop.f32.mrf.mxu2 }
 0x3f6   :  { %v2417_v55 = vpop.f32.mrf.mxu0  ;;  %v2477_v62 = vpop.f32.mrf.mxu3 }
 0x3f7   :  { %v2418_v59 = vadd.f32 %v2417_v55, %v2398_v56  ;;  %v2437_v60 = vpop.f32.mrf.mxu1  ;;  %v2739_v55 = vld [vmem:[%s7282_s9 + $0x68] sm:$0xff] }
 0x3f8   :  { %v2755_v56 = vld [vmem:[%s7282_s9 + $0xe8] sm:$0xff] }
 0x3f9   :  { %v2438_v35 = vadd.f32 %v2437_v60, %v2418_v59  ;;  %v2738_v60 = vld [vmem:[%s7282_s9 + $0x60] sm:$0xff] }
 0x3fb   :  { %v2458_v61 = vadd.f32 %v2457_v13, %v2438_v35  ;;  %v2754_v35 = vld [vmem:[%s7282_s9 + $0xe0] sm:$0xff] }
 0x3fd   :  { %v2478_v0 = vadd.f32 %v2477_v62, %v2458_v61  ;;  %v2737_v62 = vld [vmem:[%s7282_s9 + $0x58] sm:$0xff] }
 0x40a   :  { %v2598_v27 = vpop.permute.xlu0 %2597 }
 0x417   :  { %v2497_v63 = vpop.f32.mrf.mxu0  ;;  %v2537_v15 = vpop.f32.mrf.mxu2 }
 0x418   :  { %v2498_v37 = vadd.f32 %v2497_v63, %v2478_v0  ;;  %v2517_v11 = vpop.f32.mrf.mxu1  ;;  %v2557_v5 = vpop.f32.mrf.mxu3  ;;  %v2753_v0 = vld [vmem:[%s7282_s9 + $0xd8] sm:$0xff] }
 0x41a   :  { %v2518_v18 = vadd.f32 %v2517_v11, %v2498_v37  ;;  %v2736_v37 = vld [vmem:[%s7282_s9 + $0x50] sm:$0xff] }
 0x41b   :  { %v2752_v11 = vld [vmem:[%s7282_s9 + $0xd0] sm:$0xff] }
 0x41c   :  { %v2538_v58 = vadd.f32 %v2537_v15, %v2518_v18 }
 0x41e   :  { %v2558_v12 = vadd.f32 %v2557_v5, %v2538_v58  ;;  %v2735_v58 = vld [vmem:[%s7282_s9 + $0x48] sm:$0xff] }
 0x41f   :  { %v2751_v5 = vld [vmem:[%s7282_s9 + $0xc8] sm:$0xff] }
 0x420   :  { %3417 = vrcp.f32 %v2558_v12 }
 0x426   :  { %v3418_v1 = vpop.eup %3417 }
 0x427   :  { %3344 = vmatpush.msk.msra.mxu0 %vm1407_vm2, %v3418_v1  ;;  %v2734_v1 = vld [vmem:[%s7282_s9 + $0x40] sm:$0xff] }
 0x428   :  { %3345 = vmatmul.msk.f32.vlgmr.msra.gmra.mxu0 %vm1403_vm3, %v3566_v28  ;;  %v2750_v28 = vld [vmem:[%s7282_s9 + $0xc0] sm:$0xff] }
 0x429   :  { %2759 = vmatpush.msrb.mxu0 %v2741_v41  ;;  %v3575_v41 = vld [vmem:[%s7275_s2 + $0x1c0] sm:$0xff] }
 0x42b   :  { %2760 = vmatpush.msrb.mxu0 %v2740_v44  ;;  %v3577_v44 = vld [vmem:[%s7275_s2 + $0x130] sm:$0xff] }
 0x42d   :  { %2761 = vmatpush.msrb.mxu0 %v2739_v55  ;;  %v3582_v55 = vld [vmem:[%s7275_s2 + $0x18] sm:$0xff] }
 0x42f   :  { %2762 = vmatpush.msrb.mxu0 %v2738_v60 }
 0x431   :  { %2763 = vmatpush.msrb.mxu0 %v2737_v62  ;;  %v3583_v62 = vld [vmem:[%s7275_s2 + $0x420] sm:$0xff] }
 0x433   :  { %2764 = vmatpush.msrb.mxu0 %v2736_v37  ;;  %v3586_v37 = vld [vmem:[%s7275_s2 + $0x398] sm:$0xff] }
 0x435   :  { %2765 = vmatpush.msrb.mxu0 %v2735_v58  ;;  %v3590_v58 = vld [vmem:[%s7275_s2 + $0x278] sm:$0xff] }
 0x437   :  { %2766 = vmatpush.msrb.mxu0 %v2734_v1  ;;  %v3593_v1 = vld [vmem:[%s7275_s2 + $0x150] sm:$0xff] }
 0x439   :  { %2767 = vmatpush.msrb.mxu0 %v2733_v42  ;;  %v3596_v42 = vld [vmem:[%s7275_s2 + $0xc8] sm:$0xff] }
 0x4a5   :  { %v2581_v9 = vpop.f32.mrf.mxu0 }
 0x4a6   :  { %v6590_v17 = vmul.f32 %v2581_v9, %v2198_v54  ;;  %v2680_v54 = vld [vmem:[%s7279_s6 + $0x78] sm:$0xff] }
 0x4a7   :  { %2712 = vmatpush.msra.mxu3 %v2680_v54  ;;  %v2730_v54 = vld [vmem:[%s7282_s9 + $0x20] sm:$0xff] }
 0x4a8   :  { %2618 = vmatpush.msra.mxu1 %v6590_v17 }
 0x4a9   :  { %3350 = vmatmul.msk.f32.vlgmr.msra.gmra.mxu1 %vm933_vm1, %v2585_v32  ;;  %2713 = vmatpush.msra.mxu3 %v2678_v45  ;;  %v2732_v32 = vld [vmem:[%s7282_s9 + $0x30] sm:$0xff] }
 0x4aa   :  { %2779 = vmatpush.msrb.mxu1 %v2757_v26  ;;  %2768 = vmatpush.msrb.mxu0 %v2732_v32  ;;  %v3576_v26 = vld [vmem:[%s7275_s2 + $0x1c8] sm:$0xff]  ;;  %v2758_v32 = vld [vmem:[%s7284_s11] sm:$0xff] }
 0x4ab   :  { %2714 = vmatpush.msra.mxu3 %v2676_v24  ;;  %v2745_v24 = vld [vmem:[%s7282_s9 + $0x98] sm:$0xff] }
 0x4ac   :  { %2780 = vmatpush.msrb.mxu1 %v2756_v49  ;;  %v3579_v49 = vld [vmem:[%s7275_s2 + $0xa0] sm:$0xff] }
 0x4ad   :  { %2715 = vmatpush.msra.mxu3 %v2674_v10  ;;  %v2728_v10 = vld [vmem:[%s7282_s9 + $0x10] sm:$0xff] }
 0x4ae   :  { %2781 = vmatpush.msrb.mxu1 %v2755_v56  ;;  %v2663_v56 = vld [vmem:[%s7283_s10] sm:$0xff] }
 0x4af   :  { %2716 = vmatpush.msra.mxu3 %v2672_v20 }
 0x4b0   :  { %2782 = vmatpush.msrb.mxu1 %v2754_v35 }
 0x4b1   :  { %2717 = vmatpush.msra.mxu3 %v2670_v57  ;;  %v2727_v57 = vld [vmem:[%s7282_s9 + $0x8] sm:$0xff] }
 0x4b2   :  { %2783 = vmatpush.msrb.mxu1 %v2753_v0  ;;  %v3584_v0 = vld [vmem:[%s7275_s2 + $0x428] sm:$0xff] }
 0x4b3   :  { %2718 = vmatpush.msra.mxu3 %v2668_v30  ;;  %v3570_v30 = vld [vmem:[%s7275_s2 + $0x378] sm:$0xff] }
 0x4b4   :  { %2784 = vmatpush.msrb.mxu1 %v2752_v11  ;;  %v3587_v11 = vld [vmem:[%s7275_s2 + $0x300] sm:$0xff] }
 0x4b5   :  { %2719 = vmatpush.msra.mxu3 %v2666_v14  ;;  %v3572_v14 = vld [vmem:[%s7275_s2 + $0x2e8] sm:$0xff] }
 0x4b6   :  { %2785 = vmatpush.msrb.mxu1 %v2751_v5  ;;  %v3591_v5 = vld [vmem:[%s7275_s2 + $0x1e0] sm:$0xff] }
 0x4b8   :  { %2786 = vmatpush.msrb.mxu1 %v2750_v28  ;;  %v3594_v28 = vld [vmem:[%s7275_s2 + $0x158] sm:$0xff] }
 0x4ba   :  { %2787 = vmatpush.msrb.mxu1 %v2749_v29  ;;  %v3597_v29 = vld [vmem:[%s7275_s2 + $0x30] sm:$0xff] }
 0x526   :  { %v2620_v33 = vpop.f32.mrf.mxu1 }
 0x527   :  { %v6597_v34 = vadd.f32 %v2620_v33, %v2598_v27  ;;  %v2748_v27 = vld [vmem:[%s7282_s9 + $0xb0] sm:$0xff] }
 0x528   :  { %2788 = vmatpush.msrb.mxu1 %v2748_v27 }
 0x529   :  { %v6600_v23 = vmul.f32 0.70710677, %v6597_v34  ;;  %v2623_v20 = vmul.f32 0.5, %v6597_v34  ;;  %v2726_v34 = vld [vmem:[%s7282_s9] sm:$0xff] }
 0x52b   :  { %v6603_v21 = vand.u32 2147483647, %v6600_v23  ;;  %vm2658_vm8 = vcmp.lt.f32.partialorder %v6600_v23, 0.0  ;;  %v2743_v23 = vld [vmem:[%s7282_s9 + $0x88] sm:$0xff] }
 0x52d   :  { %v2626_v46 = vmul.f32 0.3275911, %v6603_v21  ;;  %v2652_v7 = vsub.f32 0.0, %v6603_v21 }
 0x52f   :  { %v2627_v48 = vadd.f32 1.0, %v2626_v46  ;;  %v2653_v61 = vmul.f32 %v2652_v7, %v6603_v21  ;;  %v2731_v21 = vld [vmem:[%s7282_s9 + $0x28] sm:$0xff]  ;;  %v3581_v7 = vld [vmem:[%s7275_s2 + $0x10] sm:$0xff] }
 0x530   :  { %v2747_v46 = vld [vmem:[%s7282_s9 + $0xa8] sm:$0xff]  ;;  %2769 = vmatpush.msrb.mxu0 %v2731_v21 }
 0x531   :  { %3419 = vrcp.f32 %v2627_v48  ;;  %v2639_v51 = vand.u32 2147483648, %v2627_v48  ;;  %v2637_v25 = vand.u32 2147483647, %v2627_v48  ;;  %vm2633_vm5 = vweird.f32 %v2627_v48  ;;  %2789 = vmatpush.msrb.mxu1 %v2747_v46 }
 0x532   :  { %v2654_v15 = vmul.f32 1.442695, %v2653_v61  ;;  %2770 = vmatpush.msrb.mxu0 %v2730_v54  ;;  %v3600_v54 = vld [vmem:[%s7275_s2 + $0x360] sm:$0xff] }
 0x533   :  { %v2640_v52 = vor.u32 1.1754944e-38, %v2639_v51  ;;  %vm2638_vm7 = vcmp.eq.f32.partialorder %v2637_v25, 8.507059e+37  ;;  %2790 = vmatpush.msrb.mxu1 %v2746_v36  ;;  %v2742_v51 = vld [vmem:[%s7282_s9 + $0x80] sm:$0xff]  ;;  %v3568_v25 = vld [vmem:[%s7275_s2 + $0x408] sm:$0xff]  ;;  %v3601_v36 = vld [vmem:[%s7275_s2 + $0x2d0] sm:$0xff] }
 0x534   :  { %3421 = vpow2.f32 %v2654_v15  ;;  %2771 = vmatpush.msrb.mxu0 %v2729_v3  ;;  %v3589_v15 = vld [vmem:[%s7275_s2 + $0x270] sm:$0xff] }
 0x535   :  { %2791 = vmatpush.msrb.mxu1 %v2745_v24  ;;  %v3603_v3 = vld [vmem:[%s7275_s2 + $0x1b0] sm:$0xff]  ;;  %v3604_v24 = vld [vmem:[%s7275_s2 + $0x120] sm:$0xff] }
 0x536   :  { %2772 = vmatpush.msrb.mxu0 %v2728_v10  ;;  %v3606_v10 = vld [vmem:[%s7275_s2] sm:$0xff] }
 0x537   :  { %v3420_v4 = vpop.eup %3419 }
 0x538   :  { %v2629_v43 = vmul.f32 %v3420_v4, %v2627_v48  ;;  %vm2634_vm4 = vweird.f32 %v3420_v4  ;;  %2773 = vmatpush.msrb.mxu0 %v2727_v57  ;;  %v3612_v57 = vld [vmem:[%s7275_s2 + $0x140] sm:$0xff] }
 0x539   :  { %vm2635_vm6 = vmor %vm2633_vm5, %vm2634_vm4 }
 0x53a   :  { %v2630_v40 = vsub.f32 1.0, %v2629_v43  ;;  %v3422_v19 = vpop.eup %3421  ;;  %2774 = vmatpush.msrb.mxu0 %v2726_v34  ;;  %v3614_v34 = vld [vmem:[%s7275_s2 + $0x20] sm:$0xff] }
 0x53c   :  { %v2631_v39 = vmul.f32 %v3420_v4, %v2630_v40 }
 0x53e   :  { %v2632_v38 = vadd.f32 %v3420_v4, %v2631_v39  ;;  %v3567_v39 = vld [vmem:[%s7275_s2 + $0x400] sm:$0xff] }
 0x53f   :  { %2908 = vmatpush.msra.mxu0 %v3567_v39  ;;  %v2802_v39 = vpop.permute.xlu0 %2801 }
 0x540   :  { %v2636_v6 = vsel %vm2635_vm6, %v3420_v4, %v2632_v38  ;;  %v2744_v4 = vld [vmem:[%s7282_s9 + $0x90] sm:$0xff] }
 0x541   :  { %v2641_v50 = vsel %vm2638_vm7, %v2640_v52, %v2636_v6  ;;  %2792 = vmatpush.msrb.mxu1 %v2744_v4  ;;  %2909 = vmatpush.msra.mxu0 %v3569_v47  ;;  %v3573_v38 = vld [vmem:[%s7275_s2 + $0x250] sm:$0xff]  ;;  %v3574_v52 = vld [vmem:[%s7275_s2 + $0x258] sm:$0xff] }
 0x542   :  { %v2643_v59 = vmul.f32 1.0614054, %v2641_v50  ;;  %v3578_v6 = vld [vmem:[%s7275_s2 + $0x138] sm:$0xff]  ;;  %v3607_v4 = vld [vmem:[%s7275_s2 + $0x410] sm:$0xff] }
 0x543   :  { %2793 = vmatpush.msrb.mxu1 %v2743_v23  ;;  %2910 = vmatpush.msra.mxu0 %v3571_v2  ;;  %v3613_v23 = vld [vmem:[%s7275_s2 + $0xb0] sm:$0xff] }
 0x544   :  { %v2644_v13 = vadd.f32 -1.4531521, %v2643_v59  ;;  %v2664_v59 = vld [vmem:[%s7283_s10 + $0x8] sm:$0xff]  ;;  %v3347_v2 = vld [vmem:[%s7280_s7 + $0x10] sm:$0xff] }
 0x545   :  { %2794 = vmatpush.msrb.mxu1 %v2742_v51  ;;  %2911 = vmatpush.msra.mxu0 %v3573_v38  ;;  %v3349_v51 = vld [vmem:[%s7281_s8 + $0x10] sm:$0xff]  ;;  %v3616_v38 = vld [vmem:[%s7275_s2 + $0x368] sm:$0xff] }
 0x546   :  { %v2645_v63 = vmul.f32 %v2644_v13, %v2641_v50  ;;  %2830 = vperm.xlu1 %3376, %v3349_v51   ;;  %v3668_v51 = vld [vmem:[%s7275_s2 + $0x3c8] sm:$0xff] }
 0x547   :  { %2928 = vmatpush.msra.mxu1 %v3568_v25  ;;  %2912 = vmatpush.msra.mxu0 %v3575_v41  ;;  %v3619_v41 = vld [vmem:[%s7275_s2 + $0x1b8] sm:$0xff] }
 0x548   :  { %v2646_v18 = vadd.f32 1.4214138, %v2645_v63  ;;  %v3585_v63 = vld [vmem:[%s7275_s2 + $0x390] sm:$0xff] }
 0x549   :  { %2929 = vmatpush.msra.mxu1 %v3570_v30  ;;  %2913 = vmatpush.msra.mxu0 %v3577_v44  ;;  %v3621_v44 = vld [vmem:[%s7275_s2 + $0x98] sm:$0xff] }
 0x54a   :  { %v2647_v12 = vmul.f32 %v2646_v18, %v2641_v50  ;;  %v3588_v18 = vld [vmem:[%s7275_s2 + $0x308] sm:$0xff] }
 0x54b   :  { %2930 = vmatpush.msra.mxu1 %v3572_v14  ;;  %2914 = vmatpush.msra.mxu0 %v3579_v49  ;;  %v3615_v14 = vld [vmem:[%s7275_s2 + $0x3f8] sm:$0xff] }
 0x54c   :  { %v2648_v53 = vadd.f32 -0.28449672, %v2647_v12  ;;  %v3592_v12 = vld [vmem:[%s7275_s2 + $0x1e8] sm:$0xff]  ;;  %v3623_v49 = vld [vmem:[%s7275_s2 + $0x418] sm:$0xff] }
 0x54d   :  { %2931 = vmatpush.msra.mxu1 %v3574_v52  ;;  %2915 = vmatpush.msra.mxu0 %v3581_v7  ;;  %v3618_v52 = vld [vmem:[%s7275_s2 + $0x248] sm:$0xff]  ;;  %v3625_v7 = vld [vmem:[%s7275_s2 + $0x2f8] sm:$0xff] }
 0x54e   :  { %v2649_v9 = vmul.f32 %v2648_v53, %v2641_v50  ;;  %v3595_v53 = vld [vmem:[%s7275_s2 + $0xc0] sm:$0xff] }
 0x54f   :  { %2932 = vmatpush.msra.mxu1 %v3576_v26  ;;  %v3620_v26 = vld [vmem:[%s7275_s2 + $0x128] sm:$0xff] }
 0x550   :  { %v2650_v33 = vadd.f32 0.2548296, %v2649_v9  ;;  %v3598_v9 = vld [vmem:[%s7275_s2 + $0x38] sm:$0xff] }
 0x551   :  { %2933 = vmatpush.msra.mxu1 %v3578_v6  ;;  %v3622_v6 = vld [vmem:[%s7275_s2 + $0x8] sm:$0xff] }
 0x552   :  { %v2651_v48 = vmul.f32 %v2650_v33, %v2641_v50  ;;  %v3580_v50 = vld [vmem:[%s7275_s2 + $0xa8] sm:$0xff] }
 0x553   :  { %2934 = vmatpush.msra.mxu1 %v3580_v50  ;;  %v3624_v50 = vld [vmem:[%s7275_s2 + $0x388] sm:$0xff] }
 0x554   :  { %v2656_v45 = vmul.f32 %v3422_v19, %v2651_v48  ;;  %v3346_v48 = vld [vmem:[%s7280_s7 + $0x8] sm:$0xff]  ;;  %v3599_v19 = vld [vmem:[%s7275_s2 + $0x3f0] sm:$0xff] }
 0x555   :  { %2935 = vmatpush.msra.mxu1 %v3582_v55  ;;  %v3626_v55 = vld [vmem:[%s7275_s2 + $0x268] sm:$0xff] }
 0x556   :  { %v2657_v8 = vsub.f32 1.0, %v2656_v45  ;;  %v3602_v45 = vld [vmem:[%s7275_s2 + $0x240] sm:$0xff] }
 0x558   :  { %v2659_v43 = vsub.f32 0.0, %v2657_v8 }
 0x55a   :  { %v2660_v22 = vsel %vm2658_vm8, %v2659_v43, %v2657_v8  ;;  %v3605_v8 = vld [vmem:[%s7275_s2 + $0x90] sm:$0xff]  ;;  %v3608_v43 = vld [vmem:[%s7275_s2 + $0x380] sm:$0xff] }
 0x55b   :  { %v2661_v40 = vadd.f32 1.0, %v2660_v22  ;;  %v3609_v22 = vld [vmem:[%s7275_s2 + $0x2f0] sm:$0xff] }
 0x55d   :  { %v6742_v31 = vmul.f32 %v2661_v40, %v2623_v20  ;;  %v3610_v20 = vld [vmem:[%s7275_s2 + $0x260] sm:$0xff]  ;;  %v3611_v40 = vld [vmem:[%s7275_s2 + $0x1d0] sm:$0xff] }
 0x55f   :  { %3351 = vmatmul.msk.f32.vlgmr.msra.gmra.mxu2 %vm551_vm0, %v6742_v31  ;;  %3352 = vmatmul.msk.f32.vlgmr.msra.gmra.mxu3 %vm551_vm0, %v6742_v31 }
 0x5e2   :  { %v2701_v60 = vpop.f32.mrf.mxu2  ;;  %v2721_v35 = vpop.f32.mrf.mxu3 }
 0x5e3   :  { %v2724_v13 = vmul.f32 %v2701_v60, %v2663_v56  ;;  %v2725_v61 = vmul.f32 %v2721_v35, %v2664_v59  ;;  %v3627_v56 = vld [vmem:[%s7275_s2 + $0x1d8] sm:$0xff]  ;;  %v3628_v59 = vld [vmem:[%s7275_s2 + $0x148] sm:$0xff] }
 0x5e4   :  { %v3629_v60 = vld [vmem:[%s7275_s2 + $0xb8] sm:$0xff]  ;;  %v3630_v35 = vld [vmem:[%s7275_s2 + $0x28] sm:$0xff] }
 0x5e5   :  { %2775 = vmatmul.f32.vlgmr.msrb.gmra.mxu0 %v2724_v13  ;;  %2795 = vmatmul.f32.vlgmr.msrb.gmra.mxu1 %v2725_v61  ;;  %v2831_v13 = vpop.permute.xlu1 %2830 }
 0x5e6   :  { %2988 = vmatpush.msrb.mxu0 %v3583_v62  ;;  %3008 = vmatpush.msrb.mxu1 %v3584_v0 }
 0x5e8   :  { %2989 = vmatpush.msrb.mxu0 %v3585_v63  ;;  %3009 = vmatpush.msrb.mxu1 %v3586_v37  ;;  %v3631_v63 = vld [vmem:[%s7275_s2 + $0x430] sm:$0xff]  ;;  %v3633_v37 = vld [vmem:[%s7275_s2 + $0x440] sm:$0xff] }
 0x5ea   :  { %2990 = vmatpush.msrb.mxu0 %v3587_v11  ;;  %3010 = vmatpush.msrb.mxu1 %v3588_v18  ;;  %v3634_v11 = vld [vmem:[%s7275_s2 + $0x448] sm:$0xff]  ;;  %v3635_v18 = vld [vmem:[%s7275_s2 + $0x3a0] sm:$0xff] }
 0x5ec   :  { %2991 = vmatpush.msrb.mxu0 %v3589_v15  ;;  %3011 = vmatpush.msrb.mxu1 %v3590_v58  ;;  %v3636_v15 = vld [vmem:[%s7275_s2 + $0x3a8] sm:$0xff]  ;;  %v3637_v58 = vld [vmem:[%s7275_s2 + $0x3b0] sm:$0xff] }
 0x5ee   :  { %2992 = vmatpush.msrb.mxu0 %v3591_v5  ;;  %3012 = vmatpush.msrb.mxu1 %v3592_v12  ;;  %v3638_v5 = vld [vmem:[%s7275_s2 + $0x3b8] sm:$0xff]  ;;  %v3639_v12 = vld [vmem:[%s7275_s2 + $0x310] sm:$0xff] }
 0x5f0   :  { %2993 = vmatpush.msrb.mxu0 %v3593_v1  ;;  %3013 = vmatpush.msrb.mxu1 %v3594_v28  ;;  %v3640_v1 = vld [vmem:[%s7275_s2 + $0x318] sm:$0xff]  ;;  %v3641_v28 = vld [vmem:[%s7275_s2 + $0x320] sm:$0xff] }
 0x5f2   :  { %2994 = vmatpush.msrb.mxu0 %v3595_v53  ;;  %3014 = vmatpush.msrb.mxu1 %v3596_v42  ;;  %v3642_v53 = vld [vmem:[%s7275_s2 + $0x328] sm:$0xff]  ;;  %v3643_v42 = vld [vmem:[%s7275_s2 + $0x280] sm:$0xff] }
 0x5f4   :  { %2995 = vmatpush.msrb.mxu0 %v3597_v29  ;;  %3015 = vmatpush.msrb.mxu1 %v3598_v9  ;;  %v3644_v29 = vld [vmem:[%s7275_s2 + $0x288] sm:$0xff]  ;;  %v3645_v9 = vld [vmem:[%s7275_s2 + $0x290] sm:$0xff] }
 0x662   :  { %v2776_v27 = vpop.f32.mrf.mxu0  ;;  %v2796_v21 = vpop.f32.mrf.mxu1 }
 0x663   :  { %v2777_v33 = vadd.f32 %v2776_v27, %v2758_v32  ;;  %v3646_v32 = vld [vmem:[%s7275_s2 + $0x298] sm:$0xff]  ;;  %v3647_v27 = vld [vmem:[%s7275_s2 + $0x1f0] sm:$0xff] }
 0x665   :  { %v2797_v46 = vadd.f32 %v2796_v21, %v2777_v33  ;;  %v3648_v33 = vld [vmem:[%s7275_s2 + $0x1f8] sm:$0xff]  ;;  %v3649_v21 = vld [vmem:[%s7275_s2 + $0x200] sm:$0xff] }
 0x667   :  { %2822 = vmatpush.msrb.mxu2 %v2797_v46  ;;  %v3650_v46 = vld [vmem:[%s7275_s2 + $0x208] sm:$0xff] }
 0x668   :  { %3353 = vmatmul.msk.f32.vlgmr.msrb.gmra.mxu2 %vm933_vm1, %v3346_v48  ;;  %v3651_v48 = vld [vmem:[%s7275_s2 + $0x160] sm:$0xff] }
 0x669   :  { %2868 = vmatpush.msra.mxu2 %v3599_v19  ;;  %v3652_v19 = vld [vmem:[%s7275_s2 + $0x168] sm:$0xff] }
 0x66b   :  { %2869 = vmatpush.msra.mxu2 %v3600_v54  ;;  %v3653_v54 = vld [vmem:[%s7275_s2 + $0x170] sm:$0xff] }
 0x66d   :  { %2870 = vmatpush.msra.mxu2 %v3601_v36  ;;  %v3654_v36 = vld [vmem:[%s7275_s2 + $0x178] sm:$0xff] }
 0x66f   :  { %2871 = vmatpush.msra.mxu2 %v3602_v45  ;;  %v3655_v45 = vld [vmem:[%s7275_s2 + $0xd0] sm:$0xff] }
 0x671   :  { %2872 = vmatpush.msra.mxu2 %v3603_v3  ;;  %v3656_v3 = vld [vmem:[%s7275_s2 + $0xd8] sm:$0xff] }
 0x673   :  { %2873 = vmatpush.msra.mxu2 %v3604_v24  ;;  %v3657_v24 = vld [vmem:[%s7275_s2 + $0xe0] sm:$0xff] }
 0x675   :  { %2874 = vmatpush.msra.mxu2 %v3605_v8  ;;  %v3658_v8 = vld [vmem:[%s7275_s2 + $0xe8] sm:$0xff] }
 0x677   :  { %2875 = vmatpush.msra.mxu2 %v3606_v10  ;;  %v3659_v10 = vld [vmem:[%s7275_s2 + $0x40] sm:$0xff] }
 0x679   :  { %2948 = vmatpush.msrb.mxu2 %v3607_v4  ;;  %v3660_v4 = vld [vmem:[%s7275_s2 + $0x48] sm:$0xff] }
 0x67b   :  { %2949 = vmatpush.msrb.mxu2 %v3608_v43  ;;  %v3661_v43 = vld [vmem:[%s7275_s2 + $0x50] sm:$0xff] }
 0x67d   :  { %2950 = vmatpush.msrb.mxu2 %v3609_v22  ;;  %v3662_v22 = vld [vmem:[%s7275_s2 + $0x58] sm:$0xff] }
 0x67f   :  { %2951 = vmatpush.msrb.mxu2 %v3610_v20  ;;  %v3663_v20 = vld [vmem:[%s7275_s2 + $0x450] sm:$0xff] }
 0x681   :  { %2952 = vmatpush.msrb.mxu2 %v3611_v40  ;;  %v3664_v40 = vld [vmem:[%s7275_s2 + $0x458] sm:$0xff] }
 0x683   :  { %2953 = vmatpush.msrb.mxu2 %v3612_v57  ;;  %v3665_v57 = vld [vmem:[%s7275_s2 + $0x460] sm:$0xff] }
 0x685   :  { %2954 = vmatpush.msrb.mxu2 %v3613_v23  ;;  %v3666_v23 = vld [vmem:[%s7275_s2 + $0x468] sm:$0xff] }
 0x687   :  { %2955 = vmatpush.msrb.mxu2 %v3614_v34  ;;  %v3667_v34 = vld [vmem:[%s7275_s2 + $0x3c0] sm:$0xff] }
 0x6eb   :  { %v2824_v25 = vpop.f32.mrf.mxu2 }
 0x6ec   :  { %v2825_v47 = vadd.f32 %v2824_v25, %v2802_v39  ;;  %v3669_v39 = vld [vmem:[%s7275_s2 + $0x3d0] sm:$0xff]  ;;  %v3670_v25 = vld [vmem:[%s7275_s2 + $0x3d8] sm:$0xff] }
 0x6ee   :  { %v2827_v30 = vmul.f32 %v2825_v47, %v6742_v31  ;;  %v3617_v31 = vld [vmem:[%s7275_s2 + $0x2d8] sm:$0xff]  ;;  %v3671_v47 = vld [vmem:[%s7275_s2 + $0x330] sm:$0xff] }
 0x6f0   :  { %2851 = vmatpush.msrb.mxu3 %v2827_v30  ;;  %v3672_v30 = vld [vmem:[%s7275_s2 + $0x338] sm:$0xff] }
 0x6f1   :  { %3354 = vmatmul.msk.f32.vlgmr.msrb.gmra.mxu3 %vm933_vm1, %v3347_v2  ;;  %v3673_v2 = vld [vmem:[%s7275_s2 + $0x340] sm:$0xff] }
 0x6f2   :  { %2888 = vmatpush.msra.mxu3 %v3615_v14  ;;  %v3674_v14 = vld [vmem:[%s7275_s2 + $0x348] sm:$0xff] }
 0x6f4   :  { %2889 = vmatpush.msra.mxu3 %v3616_v38  ;;  %v3675_v38 = vld [vmem:[%s7275_s2 + $0x2a0] sm:$0xff] }
 0x6f6   :  { %2890 = vmatpush.msra.mxu3 %v3617_v31  ;;  %v3676_v31 = vld [vmem:[%s7275_s2 + $0x2a8] sm:$0xff] }
 0x6f8   :  { %2891 = vmatpush.msra.mxu3 %v3618_v52  ;;  %v3677_v52 = vld [vmem:[%s7275_s2 + $0x2b0] sm:$0xff] }
 0x6fa   :  { %2892 = vmatpush.msra.mxu3 %v3619_v41  ;;  %v3678_v41 = vld [vmem:[%s7275_s2 + $0x2b8] sm:$0xff] }
 0x6fc   :  { %2893 = vmatpush.msra.mxu3 %v3620_v26  ;;  %v3679_v26 = vld [vmem:[%s7275_s2 + $0x210] sm:$0xff] }
 0x6fe   :  { %2894 = vmatpush.msra.mxu3 %v3621_v44  ;;  %v3680_v44 = vld [vmem:[%s7275_s2 + $0x218] sm:$0xff] }
 0x700   :  { %2895 = vmatpush.msra.mxu3 %v3622_v6  ;;  %v3681_v6 = vld [vmem:[%s7275_s2 + $0x220] sm:$0xff] }
 0x702   :  { %2968 = vmatpush.msrb.mxu3 %v3623_v49  ;;  %v3682_v49 = vld [vmem:[%s7275_s2 + $0x228] sm:$0xff] }
 0x704   :  { %2969 = vmatpush.msrb.mxu3 %v3624_v50  ;;  %v3683_v50 = vld [vmem:[%s7275_s2 + $0x180] sm:$0xff] }
 0x706   :  { %2970 = vmatpush.msrb.mxu3 %v3625_v7  ;;  %v3684_v7 = vld [vmem:[%s7275_s2 + $0x188] sm:$0xff] }
 0x708   :  { %2971 = vmatpush.msrb.mxu3 %v3626_v55  ;;  %v3685_v55 = vld [vmem:[%s7275_s2 + $0x190] sm:$0xff] }
 0x70a   :  { %2972 = vmatpush.msrb.mxu3 %v3627_v56  ;;  %v3686_v56 = vld [vmem:[%s7275_s2 + $0x198] sm:$0xff] }
 0x70c   :  { %2973 = vmatpush.msrb.mxu3 %v3628_v59  ;;  %v3687_v59 = vld [vmem:[%s7275_s2 + $0xf0] sm:$0xff] }
 0x70e   :  { %2974 = vmatpush.msrb.mxu3 %v3629_v60  ;;  %v3688_v60 = vld [vmem:[%s7275_s2 + $0xf8] sm:$0xff] }
 0x710   :  { %2975 = vmatpush.msrb.mxu3 %v3630_v35  ;;  %v3689_v35 = vld [vmem:[%s7275_s2 + $0x100] sm:$0xff] }
 0x774   :  { %v2853_v61 = vpop.f32.mrf.mxu3 }
 0x775   :  { %v2854_v62 = vadd.f32 %v2853_v61, %v2831_v13  ;;  %v3690_v13 = vld [vmem:[%s7275_s2 + $0x108] sm:$0xff]  ;;  %v3691_v61 = vld [vmem:[%s7275_s2 + $0x60] sm:$0xff] }
 0x777   :  { %v6974_v0 = vadd.f32 %v2854_v62, %v6590_v17  ;;  %v3632_v17 = vld [vmem:[%s7275_s2 + $0x438] sm:$0xff]  ;;  %v3692_v62 = vld [vmem:[%s7275_s2 + $0x68] sm:$0xff] }
 0x779   :  { %3355 = vmatmul.msk.f32.vlgmr.msra.gmra.mxu2 %vm551_vm0, %v6974_v0  ;;  %3356 = vmatmul.msk.f32.vlgmr.msra.gmra.mxu3 %vm551_vm0, %v6974_v0 }
 0x77a   :  { %3357 = vmatmul.msk.f32.vlgmr.msra.gmra.mxu0 %vm551_vm0, %v6974_v0  ;;  %3358 = vmatmul.msk.f32.vlgmr.msra.gmra.mxu1 %vm551_vm0, %v6974_v0 }
 0x77b   :  { %3028 = vmatpush.msra.mxu2 %v3631_v63  ;;  %3048 = vmatpush.msra.mxu3 %v3632_v17  ;;  %v3693_v63 = vld [vmem:[%s7275_s2 + $0x70] sm:$0xff]  ;;  %v3694_v17 = vld [vmem:[%s7275_s2 + $0x78] sm:$0xff] }
 0x77c   :  { %3068 = vmatpush.msra.mxu0 %v3633_v37  ;;  %3088 = vmatpush.msra.mxu1 %v3634_v11  ;;  %v3695_v37 = vld [vmem:[%s7275_s2 + $0x470] sm:$0xff]  ;;  %v3696_v11 = vld [vmem:[%s7275_s2 + $0x478] sm:$0xff] }
 0x77d   :  { %3029 = vmatpush.msra.mxu2 %v3635_v18  ;;  %3049 = vmatpush.msra.mxu3 %v3636_v15  ;;  %v3697_v18 = vld [vmem:[%s7275_s2 + $0x3e0] sm:$0xff]  ;;  %v3698_v15 = vld [vmem:[%s7275_s2 + $0x3e8] sm:$0xff] }
 0x77e   :  { %3069 = vmatpush.msra.mxu0 %v3637_v58  ;;  %3089 = vmatpush.msra.mxu1 %v3638_v5  ;;  %v3699_v58 = vld [vmem:[%s7275_s2 + $0x350] sm:$0xff]  ;;  %v3700_v5 = vld [vmem:[%s7275_s2 + $0x358] sm:$0xff] }
 0x77f   :  { %3030 = vmatpush.msra.mxu2 %v3639_v12  ;;  %3050 = vmatpush.msra.mxu3 %v3640_v1  ;;  %v3701_v12 = vld [vmem:[%s7275_s2 + $0x2c0] sm:$0xff]  ;;  %v3702_v1 = vld [vmem:[%s7275_s2 + $0x2c8] sm:$0xff] }
 0x780   :  { %3070 = vmatpush.msra.mxu0 %v3641_v28  ;;  %3090 = vmatpush.msra.mxu1 %v3642_v53  ;;  %v3703_v28 = vld [vmem:[%s7275_s2 + $0x230] sm:$0xff]  ;;  %v3704_v53 = vld [vmem:[%s7275_s2 + $0x238] sm:$0xff] }
 0x781   :  { %3031 = vmatpush.msra.mxu2 %v3643_v42  ;;  %3051 = vmatpush.msra.mxu3 %v3644_v29  ;;  %v3705_v42 = vld [vmem:[%s7275_s2 + $0x1a0] sm:$0xff]  ;;  %v3706_v29 = vld [vmem:[%s7275_s2 + $0x1a8] sm:$0xff] }
 0x782   :  { %3071 = vmatpush.msra.mxu0 %v3645_v9  ;;  %3091 = vmatpush.msra.mxu1 %v3646_v32  ;;  %v3707_v9 = vld [vmem:[%s7275_s2 + $0x110] sm:$0xff]  ;;  %v3708_v32 = vld [vmem:[%s7275_s2 + $0x118] sm:$0xff] }
 0x783   :  { %3359 = vmatmul.msk.f32.vlgmr.msrb.gmra.mxu2 %vm551_vm0, %v6974_v0  ;;  %3360 = vmatmul.msk.f32.vlgmr.msrb.gmra.mxu3 %vm551_vm0, %v6974_v0 }
 0x784   :  { %3361 = vmatmul.msk.f32.vlgmr.msrb.gmra.mxu0 %vm551_vm0, %v6974_v0  ;;  %3362 = vmatmul.msk.f32.vlgmr.msrb.gmra.mxu1 %vm551_vm0, %v6974_v0 }
 0x785   :  { %3032 = vmatpush.msra.mxu2 %v3647_v27  ;;  %3052 = vmatpush.msra.mxu3 %v3648_v33  ;;  %v3709_v27 = vld [vmem:[%s7275_s2 + $0x80] sm:$0xff]  ;;  %v3710_v33 = vld [vmem:[%s7275_s2 + $0x88] sm:$0xff]  ;;  %s3738_s2 = smov [#allocation2]  }
 0x786   :  { %3072 = vmatpush.msra.mxu0 %v3649_v21  ;;  %3092 = vmatpush.msra.mxu1 %v3650_v46  ;;  %s3261_s21 = sshll.u32 %s3738_s2, 4  ;;  %s3262_s21 = int_to_ptr.vmem [resolvable:$true] %s3261_s21 }
 0x787   :  { %3033 = vmatpush.msra.mxu2 %v3651_v48  ;;  %3053 = vmatpush.msra.mxu3 %v3652_v19 }
 0x788   :  { %3073 = vmatpush.msra.mxu0 %v3653_v54  ;;  %3093 = vmatpush.msra.mxu1 %v3654_v36 }
 0x789   :  { %3034 = vmatpush.msra.mxu2 %v3655_v45  ;;  %3054 = vmatpush.msra.mxu3 %v3656_v3 }
 0x78a   :  { %3074 = vmatpush.msra.mxu0 %v3657_v24  ;;  %3094 = vmatpush.msra.mxu1 %v3658_v8  ;;  %v7638_v24 = vld [vmem:[#allocation18_spill] sm:$0xff] }
 0x78b   :  { %3035 = vmatpush.msra.mxu2 %v3659_v10  ;;  %3055 = vmatpush.msra.mxu3 %v3660_v4  ;;  %v7639_v10 = vld [vmem:[#allocation21_spill] sm:$0xff] }
 0x78c   :  { %3075 = vmatpush.msra.mxu0 %v3661_v43  ;;  %3095 = vmatpush.msra.mxu1 %v3662_v22  ;;  %v7640_v43 = vld [vmem:[#allocation17_spill] sm:$0xff] }
 0x78d   :  { %3108 = vmatpush.msrb.mxu2 %v3663_v20  ;;  %3128 = vmatpush.msrb.mxu3 %v3664_v40  ;;  %v7641_v20 = vld [vmem:[#allocation19_spill] sm:$0xff] }
 0x78e   :  { %3148 = vmatpush.msrb.mxu0 %v3665_v57  ;;  %3168 = vmatpush.msrb.mxu1 %v3666_v23  ;;  %v7642_v57 = vld [vmem:[#allocation23_spill] sm:$0xff] }
 0x78f   :  { %3363 = vmatmul.msk.f32.vlgmr.msra.gmra.mxu2 %vm551_vm0, %v6974_v0  ;;  %3364 = vmatmul.msk.f32.vlgmr.msra.gmra.mxu3 %vm551_vm0, %v6974_v0 }
 0x790   :  { %3365 = vmatmul.msk.f32.vlgmr.msra.gmra.mxu0 %vm551_vm0, %v6974_v0  ;;  %3366 = vmatmul.msk.f32.vlgmr.msra.gmra.mxu1 %vm551_vm0, %v6974_v0 }
 0x791   :  { %3109 = vmatpush.msrb.mxu2 %v3667_v34  ;;  %3129 = vmatpush.msrb.mxu3 %v3668_v51  ;;  %v7643_v34 = vld [vmem:[#allocation24_spill] sm:$0xff] }
 0x792   :  { %3149 = vmatpush.msrb.mxu0 %v3669_v39  ;;  %3169 = vmatpush.msrb.mxu1 %v3670_v25 }
 0x793   :  { %3110 = vmatpush.msrb.mxu2 %v3671_v47  ;;  %3130 = vmatpush.msrb.mxu3 %v3672_v30 }
 0x794   :  { %3150 = vmatpush.msrb.mxu0 %v3673_v2  ;;  %3170 = vmatpush.msrb.mxu1 %v3674_v14  ;;  %v7644_v14 = vld [vmem:[#allocation20_spill] sm:$0xff] }
 0x795   :  { %3111 = vmatpush.msrb.mxu2 %v3675_v38  ;;  %3131 = vmatpush.msrb.mxu3 %v3676_v31  ;;  %v7645_v31 = vld [vmem:[#allocation22_spill] sm:$0xff] }
 0x796   :  { %3151 = vmatpush.msrb.mxu0 %v3677_v52  ;;  %3171 = vmatpush.msrb.mxu1 %v3678_v41  ;;  %v7646_v41 = vld [vmem:[#allocation31_spill] sm:$0xff] }
 0x797   :  { %3112 = vmatpush.msrb.mxu2 %v3679_v26  ;;  %3132 = vmatpush.msrb.mxu3 %v3680_v44  ;;  %v7647_v44 = vld [vmem:[#allocation38_spill] sm:$0xff] }
 0x798   :  { %3152 = vmatpush.msrb.mxu0 %v3681_v6  ;;  %3172 = vmatpush.msrb.mxu1 %v3682_v49 }
 0x799   :  { %3113 = vmatpush.msrb.mxu2 %v3683_v50  ;;  %3133 = vmatpush.msrb.mxu3 %v3684_v7 }
 0x79a   :  { %3153 = vmatpush.msrb.mxu0 %v3685_v55  ;;  %3173 = vmatpush.msrb.mxu1 %v3686_v56 }
 0x79b   :  { %3114 = vmatpush.msrb.mxu2 %v3687_v59  ;;  %3134 = vmatpush.msrb.mxu3 %v3688_v60 }
 0x79c   :  { %3154 = vmatpush.msrb.mxu0 %v3689_v35  ;;  %3174 = vmatpush.msrb.mxu1 %v3690_v13  ;;  %v7648_v13 = vld [vmem:[#allocation26_spill] sm:$0xff] }
 0x79d   :  { %3115 = vmatpush.msrb.mxu2 %v3691_v61  ;;  %3135 = vmatpush.msrb.mxu3 %v3692_v62  ;;  %v7649_v62 = vld [vmem:[#allocation33_spill] sm:$0xff] }
 0x79e   :  { %3155 = vmatpush.msrb.mxu0 %v3693_v63  ;;  %3175 = vmatpush.msrb.mxu1 %v3694_v17  ;;  %v7650_v17 = vld [vmem:[#allocation96_spill] sm:$0xff] }
 0x79f   :  { %3367 = vmatmul.msk.f32.vlgmr.msrb.gmra.mxu2 %vm551_vm0, %v6974_v0  ;;  %3368 = vmatmul.msk.f32.vlgmr.msrb.gmra.mxu3 %vm551_vm0, %v6974_v0 }
 0x7a0   :  { %3369 = vmatmul.msk.f32.vlgmr.msrb.gmra.mxu0 %vm551_vm0, %v6974_v0  ;;  %3370 = vmatmul.msk.f32.vlgmr.msrb.gmra.mxu1 %vm551_vm0, %v6974_v0 }
 0x7a1   :  { %3188 = vmatpush.msra.mxu2 %v3695_v37  ;;  %3208 = vmatpush.msra.mxu3 %v3696_v11  ;;  %v7651_v11 = vld [vmem:[#allocation99_spill] sm:$0xff] }
 0x7a3   :  { %3189 = vmatpush.msra.mxu2 %v3697_v18  ;;  %3209 = vmatpush.msra.mxu3 %v3698_v15 }
 0x7a5   :  { %3190 = vmatpush.msra.mxu2 %v3699_v58  ;;  %3210 = vmatpush.msra.mxu3 %v3700_v5 }
 0x7a7   :  { %3191 = vmatpush.msra.mxu2 %v3701_v12  ;;  %3211 = vmatpush.msra.mxu3 %v3702_v1 }
 0x7a9   :  { %3192 = vmatpush.msra.mxu2 %v3703_v28  ;;  %3212 = vmatpush.msra.mxu3 %v3704_v53  ;;  %v7652_v53 = vld [vmem:[#allocation93_spill] sm:$0xff] }
 0x7ab   :  { %3193 = vmatpush.msra.mxu2 %v3705_v42  ;;  %3213 = vmatpush.msra.mxu3 %v3706_v29  ;;  %v7653_v29 = vld [vmem:[#allocation97_spill] sm:$0xff] }
 0x7ad   :  { %3194 = vmatpush.msra.mxu2 %v3707_v9  ;;  %3214 = vmatpush.msra.mxu3 %v3708_v32 }
 0x7af   :  { %3195 = vmatpush.msra.mxu2 %v3709_v27  ;;  %3215 = vmatpush.msra.mxu3 %v3710_v33  ;;  %v7654_v33 = vld [vmem:[#allocation127_spill] sm:$0xff] }
 0x7b0   :  { %3371 = vmatmul.msk.f32.vlgmr.msra.gmra.mxu2 %vm551_vm0, %v6974_v0  ;;  %3372 = vmatmul.msk.f32.vlgmr.msra.gmra.mxu3 %vm551_vm0, %v6974_v0 }
 0x7f7   :  { %v2917_v48 = vpop.f32.mrf.mxu0  ;;  %v2937_v19 = vpop.f32.mrf.mxu1 }
 0x7f8   :  { %v3222_v22 = vmul.f32 %v2917_v48, %v7640_v43  ;;  %v3223_v40 = vmul.f32 %v2937_v19, %v7641_v20 }
 0x7fc   :  { %v2877_v21 = vpop.f32.mrf.mxu2  ;;  %v2897_v46 = vpop.f32.mrf.mxu3 }
 0x7fd   :  { %v3220_v8 = vmul.f32 %v2877_v21, %v7638_v24  ;;  %v3221_v4 = vmul.f32 %v2897_v46, %v7639_v10 }
 0x7ff   :  { %v3238_v25 = vadd.f32 %v3222_v22, %v3220_v8  ;;  %v3239_v47 = vadd.f32 %v3223_v40, %v3221_v4 }
 0x801   :  { %v2997_v45 = vpop.f32.mrf.mxu0  ;;  %v3017_v3 = vpop.f32.mrf.mxu1 }
 0x802   :  { %v3226_v38 = vmul.f32 %v2997_v45, %v7644_v14  ;;  %v3227_v52 = vmul.f32 %v3017_v3, %v7645_v31 }
 0x806   :  { %v2957_v54 = vpop.f32.mrf.mxu2  ;;  %v2977_v36 = vpop.f32.mrf.mxu3 }
 0x807   :  { %v3224_v23 = vmul.f32 %v2957_v54, %v7642_v57  ;;  %v3225_v0 = vmul.f32 %v2977_v36, %v7643_v34 }
 0x809   :  { %v3240_v30 = vadd.f32 %v3238_v25, %v3224_v23  ;;  %v3241_v2 = vadd.f32 %v3239_v47, %v3225_v0 }
 0x80b   :  { %v3242_v7 = vadd.f32 %v3240_v30, %v3226_v38  ;;  %v3243_v55 = vadd.f32 %v3241_v2, %v3227_v52 }
 0x80d   :  { %v3077_v49 = vpop.f32.mrf.mxu0  ;;  %v3097_v50 = vpop.f32.mrf.mxu1 }
 0x80e   :  { %v3230_v61 = vmul.f32 %v3077_v49, %v7648_v13  ;;  %v3231_v63 = vmul.f32 %v3097_v50, %v7649_v62 }
 0x812   :  { %v3037_v51 = vpop.f32.mrf.mxu2  ;;  %v3057_v39 = vpop.f32.mrf.mxu3 }
 0x813   :  { %v3228_v26 = vmul.f32 %v3037_v51, %v7646_v41  ;;  %v3229_v6 = vmul.f32 %v3057_v39, %v7647_v44 }
 0x815   :  { %v3244_v60 = vadd.f32 %v3242_v7, %v3228_v26  ;;  %v3245_v35 = vadd.f32 %v3243_v55, %v3229_v6 }
 0x817   :  { %v3246_v15 = vadd.f32 %v3244_v60, %v3230_v61  ;;  %v3247_v58 = vadd.f32 %v3245_v35, %v3231_v63 }
 0x81d   :  { %v3157_v5 = vpop.f32.mrf.mxu0  ;;  %v3177_v12 = vpop.f32.mrf.mxu1 }
 0x81e   :  { %v3234_v42 = vmul.f32 %v3157_v5, %v7652_v53  ;;  %v3235_v9 = vmul.f32 %v3177_v12, %v7653_v29 }
 0x822   :  { %v3117_v56 = vpop.f32.mrf.mxu2  ;;  %v3137_v59 = vpop.f32.mrf.mxu3 }
 0x823   :  { %v3232_v37 = vmul.f32 %v3117_v56, %v7650_v17  ;;  %v3233_v18 = vmul.f32 %v3137_v59, %v7651_v11 }
 0x825   :  { %v3248_v1 = vadd.f32 %v3246_v15, %v3232_v37  ;;  %v3249_v28 = vadd.f32 %v3247_v58, %v3233_v18 }
 0x827   :  { %v3250_v46 = vadd.f32 %v3248_v1, %v3234_v42  ;;  %v3251_v19 = vadd.f32 %v3249_v28, %v3235_v9 }
 0x833   :  { %v3197_v32 = vpop.f32.mrf.mxu2  ;;  %v3217_v27 = vpop.f32.mrf.mxu3 }
 0x834   :  { %v3236_v21 = vmul.f32 %v3197_v32, %v7654_v33  ;;  %v3237_v48 = vmul.f32 %v3217_v27, %v6072_v16 }
 0x836   :  { %v3252_v54 = vadd.f32 %v3250_v46, %v3236_v21  ;;  %v3253_v36 = vadd.f32 %v3251_v19, %v3237_v48 }
 0x838   :  { %3254 = vst [vmem:[#allocation2] sm:$0xff] %v3252_v54 }
 0x839   :  { %3255 = vst [vmem:[#allocation2 + $0x8] sm:$0xff] %v3253_v36 }
 0x83a   :  { %3266 = dma.vmem_to_hbm [thread:$0]  %s3262_s21, 256, %s3264_s0, [#allocation3]  }
 0x83b   :  { %3735 = dma.done.wait [#allocation3], 256  }
 0x83c   :  { %3736 = vsyncadd [#allocation3], 4294967040 }
 0x83d   :  { %3271 = vsyncpa [#allocation3], 1 }

</bundles_post_ra>
